<compile_context>
chip_gen: v7x
topology: tpu7x:2x2x1
jax: 0.10.0
libtpu: 0.0.40
codegen_flags: <defaults>
</compile_context>

<pallas_src>
import functools

import jax
import jax.numpy as jnp
from jax import lax
from jax.experimental import pallas as pl
from jax.experimental.pallas import tpu as pltpu


def _round_up(v, m):
    return -(-v // m) * m


def _plan_padded_layout(N, H, W, *, max_rows_tile=1024):
    """Spatially padded, sublane/lane friendly layout shared by both kernels.

    Wa: padded width rounded up to a multiple of 8 so the per-ky row offsets of
        the tap matmuls (ky * Wa) stay sublane-aligned.
    Hs: padded height (>= H+3: top halo + image + bottom halo + >=1 slack row
        for the kx-shifted slices), rounded so each image is a whole number of
        kernel-1 row tiles.
    th: padded-image rows per kernel-1 row tile (tile rows = th * Wa).
    """
    Wa = _round_up(W + 2, 8)
    h_needed = H + 3
    th = max(1, min(max_rows_tile // Wa, h_needed))
    # guarantee at least 2 row tiles in total (megacore sharding / pipelining)
    while N * (-(-h_needed // th)) < 2 and th > 1:
        th = -(-th // 2)
    Hs = _round_up(h_needed, th)
    return Wa, Hs, th


# --------------------------------------------------------------------------------------
# Kernel 1: 1x1 conv (bf16 MXU matmul, f32 accumulate) fused with per-channel
# sum / sum-of-squares for training-mode BatchNorm statistics.
# --------------------------------------------------------------------------------------
def _conv1x1_stats_kernel(x_ref, w_ref, y_ref, s_ref):
    y = jnp.dot(x_ref[...], w_ref[...], preferred_element_type=jnp.float32)
    y_ref[...] = y.astype(y_ref.dtype)
    # one full-block store of this tile's BN partial statistics
    s_ref[...] = jnp.concatenate(
        [jnp.sum(y, axis=0, keepdims=True),
         jnp.sum(y * y, axis=0, keepdims=True)], axis=0)


def conv1x1_with_stats(x_pad2d, w1_g, *, tile_rows):
    rows, cin = x_pad2d.shape
    groups, _, cg = w1_g.shape
    t = rows // tile_rows
    return pl.pallas_call(
        _conv1x1_stats_kernel,
        out_shape=(jax.ShapeDtypeStruct((groups, rows, cg), jnp.bfloat16),
                   jax.ShapeDtypeStruct((t, groups, 2, cg), jnp.float32)),
        grid_spec=pltpu.PrefetchScalarGridSpec(
            num_scalar_prefetch=0,
            grid=(t, groups),                 # g inner: x tile stays resident
            in_specs=[
                pl.BlockSpec((tile_rows, cin), lambda i, g: (i, 0)),
                pl.BlockSpec((None, cin, cg), lambda i, g: (g, 0, 0)),
            ],
            out_specs=[
                pl.BlockSpec((None, tile_rows, cg), lambda i, g: (g, i, 0)),
                pl.BlockSpec((None, None, 2, cg), lambda i, g: (i, g, 0, 0)),
            ],
        ),
        compiler_params=pltpu.CompilerParams(
            dimension_semantics=("parallel", "parallel"),
            vmem_limit_bytes=40 * 1024 * 1024,
        ),
    )(x_pad2d, w1_g)


# --------------------------------------------------------------------------------------
# Kernel 2: BN(scale/shift) + ReLU fused into the grouped 3x3 conv (stride 1, pad 1).
# One (n, group) block per grid step; 3 fat MXU matmuls (kx folded into K).
# --------------------------------------------------------------------------------------
def _make_gconv_kernel(H, Wa):
    Hp = H + 2
    rows_a3 = Hp * Wa          # rows of the kx-folded activation
    rows_out = H * Wa          # output rows (padded-width columns discarded later)

    def kernel(y_ref, mask_ref, scale_ref, shift_ref, w_ref, o_ref, act3_ref):
        # y_ref:     (R, cg)  bf16   padded 1x1-conv activation of this group
        # mask_ref:  (R, 1)   f32    1.0 on interior pixels, 0.0 on halo/slack
        # scale/shift: (1, cg) f32
        # w_ref:     (3, 3*cg, cog_p) bf16  (ky, kx*cg+ci, cout_padded)
        # o_ref:     (H*Wa, cog_p) f32     (accumulated in place, lane-dense)
        # act3_ref:  (Hp*Wa, 3*cg) bf16    VMEM scratch
        a = y_ref[...].astype(jnp.float32) * scale_ref[...] + shift_ref[...]
        a = (jnp.maximum(a, 0.0) * mask_ref[...]).astype(jnp.bfloat16)

        # Fold the 3 kx taps into the contraction dim: act3[r, kx*cg+c] = a[r+kx, c].
        act3_ref[...] = jnp.concatenate(
            [a[0:rows_a3], a[1:rows_a3 + 1], a[2:rows_a3 + 2]], axis=1)

        # 3 fat matmuls (one per ky), 8-aligned row offsets, accumulate in the
        # f32 VMEM output block (no register-held accumulator).
        o_ref[...] = jnp.dot(act3_ref[0:rows_out, :], w_ref[0],
                             preferred_element_type=jnp.float32)
        o_ref[...] += jnp.dot(act3_ref[Wa:Wa + rows_out, :], w_ref[1],
                              preferred_element_type=jnp.float32)
        o_ref[...] += jnp.dot(act3_ref[2 * Wa:2 * Wa + rows_out, :], w_ref[2],
                              preferred_element_type=jnp.float32)

    return kernel


def grouped_conv3x3_fused_bn_relu(y_g, mask, scale_g, shift_g, w_fold, *, N, H, Wa):
    groups, total_rows, cg = y_g.shape
    rows = total_rows // N
    cog_p = w_fold.shape[-1]
    Hp = H + 2
    return pl.pallas_call(
        _make_gconv_kernel(H, Wa),
        out_shape=jax.ShapeDtypeStruct((N, groups, H * Wa, cog_p), jnp.float32),
        grid_spec=pltpu.PrefetchScalarGridSpec(
            num_scalar_prefetch=0,
            grid=(N, groups),
            in_specs=[
                pl.BlockSpec((None, rows, cg), lambda n, g: (g, n, 0)),
                pl.BlockSpec((rows, 1), lambda n, g: (0, 0)),
                pl.BlockSpec((None, 1, cg), lambda n, g: (g, 0, 0)),
                pl.BlockSpec((None, 1, cg), lambda n, g: (g, 0, 0)),
                pl.BlockSpec((None, 3, 3 * cg, cog_p), lambda n, g: (g, 0, 0, 0)),
            ],
            out_specs=pl.BlockSpec((None, None, H * Wa, cog_p),
                                   lambda n, g: (n, g, 0, 0)),
            scratch_shapes=[pltpu.VMEM((Hp * Wa, 3 * cg), jnp.bfloat16)],
        ),
        compiler_params=pltpu.CompilerParams(
            dimension_semantics=("parallel", "parallel"),
            vmem_limit_bytes=40 * 1024 * 1024,
        ),
    )(y_g, mask, scale_g, shift_g, w_fold)


# --------------------------------------------------------------------------------------
# Full module forward
# --------------------------------------------------------------------------------------
def module_forward(x_nchw, params, *, groups=4, eps=1e-5):
    w1, gamma, beta, w2 = params["w1"], params["gamma"], params["beta"], params["w2"]
    N, C, H, W = x_nchw.shape
    assert C % groups == 0 and w2.shape[0] == C and w2.shape[1] == C // groups
    cg = C // groups
    cog = C // groups
    cog_p = _round_up(cog, 128)          # lane-dense kernel-2 output channels

    Wa, Hs, th = _plan_padded_layout(N, H, W)
    R = Hs * Wa
    tile_rows = th * Wa

    # NCHW -> zero-padded NHWC (Hs, Wa) -> flat (N*R, Cin) bf16.  The halo pad is
    # fused into the (already necessary) input transpose; zero rows contribute 0
    # to both BN sums and produce zero 1x1-conv outputs.
    x_pad = jnp.pad(x_nchw.astype(jnp.bfloat16).transpose(0, 2, 3, 1),
                    ((0, 0), (1, Hs - H - 1), (1, Wa - W - 1), (0, 0)))
    x_pad2d = x_pad.reshape(N * R, C)

    # 1x1-conv weight split into per-group column slabs: (groups, Cin, cg).
    w1_g = (w1[:, :, 0, 0].T.reshape(C, groups, cg)
            .transpose(1, 0, 2).astype(jnp.bfloat16))

    y_g, part_stats = conv1x1_with_stats(x_pad2d, w1_g, tile_rows=tile_rows)

    # Training-mode BatchNorm statistics over the real (N, H, W) pixels only.
    count = N * H * W
    stats = part_stats.sum(axis=0)                      # (groups, 2, cg)
    mean = stats[:, 0, :] / count
    var = jnp.maximum(stats[:, 1, :] / count - mean * mean, 0.0)
    gamma_g = gamma.reshape(groups, cg)
    beta_g = beta.reshape(groups, cg)
    scale_g = (gamma_g * lax.rsqrt(var + eps)).astype(jnp.float32)
    shift_g = (beta_g - mean * scale_g).astype(jnp.float32)
    # TODO(synk): running_mean / running_var buffer updates (track_running_stats,
    # momentum=0.1) are not materialized; they don't affect the forward value.

    # Interior mask of the padded flat layout: halo y is 0, but BN shift + ReLU
    # would make it non-zero, so kernel 2 re-zeroes it with this mask.
    r = jnp.arange(R, dtype=jnp.int32)
    hp, wp = r // Wa, r % Wa
    interior = (hp >= 1) & (hp <= H) & (wp >= 1) & (wp <= W)
    mask = interior.astype(jnp.float32).reshape(R, 1)

    # PyTorch (Cout, Cin/groups, 3, 3) -> (groups, ky, kx*cg+ci, cout), cout
    # zero-padded to a multiple of 128, bf16.
    w_fold = (w2.reshape(groups, cog, cg, 3, 3)
                .transpose(0, 3, 4, 2, 1)               # (g, ky, kx, ci, o)
                .reshape(groups, 3, 3 * cg, cog))
    w_fold = jnp.pad(w_fold, ((0, 0), (0, 0), (0, 0), (0, cog_p - cog)))
    w_fold = w_fold.astype(jnp.bfloat16)

    out_p = grouped_conv3x3_fused_bn_relu(
        y_g, mask, scale_g.reshape(groups, 1, cg), shift_g.reshape(groups, 1, cg),
        w_fold, N=N, H=H, Wa=Wa)

    # (N, groups, H*Wa, cog_p) -> drop padded width columns / channels -> NCHW.
    out = out_p.reshape(N, groups, H, Wa, cog_p)[:, :, :, :W, :cog]
    return out.transpose(0, 1, 4, 2, 3).reshape(N, C, H, W)


def reference_forward(x, params, *, groups=4, eps=1e-5):
    w1, gamma, beta, w2 = params["w1"], params["gamma"], params["beta"], params["w2"]
    dn = ("NCHW", "OIHW", "NCHW")
    y = lax.conv_general_dilated(x, w1, (1, 1), "VALID", dimension_numbers=dn)
    mean = jnp.mean(y, axis=(0, 2, 3), keepdims=True)
    var = jnp.var(y, axis=(0, 2, 3), keepdims=True)
    z = (y - mean) * lax.rsqrt(var + eps)
    z = z * gamma.reshape(1, -1, 1, 1) + beta.reshape(1, -1, 1, 1)
    z = jnp.maximum(z, 0.0)
    return lax.conv_general_dilated(z, w2, (1, 1), ((1, 1), (1, 1)),
                                    dimension_numbers=dn, feature_group_count=groups)


if __name__ == "__main__":
    # Small shapes consistent with the module structure (1056 ch, groups=4, 28x28
    # spatial, scaled down): N=2, C=64, H=W=16, groups=4.
    N, C, H, W = 2, 64, 16, 16
    groups = 4

    key = jax.random.PRNGKey(0)
    k1, k2, k3, k4, k5 = jax.random.split(key, 5)
    x = jax.random.normal(k1, (N, C, H, W), jnp.float32)
    params = dict(
        w1=0.05 * jax.random.normal(k2, (C, C, 1, 1), jnp.float32),
        gamma=1.0 + 0.1 * jax.random.normal(k3, (C,), jnp.float32),
        beta=0.1 * jax.random.normal(k4, (C,), jnp.float32),
        w2=0.05 * jax.random.normal(k5, (C, C // groups, 3, 3), jnp.float32),
    )

    fwd = jax.jit(functools.partial(module_forward, groups=groups))
    out = jax.block_until_ready(fwd(x, params))
    assert out.shape == (N, C, H, W) and out.dtype == jnp.float32

    ref = reference_forward(x, params, groups=groups)
    max_err = float(jnp.max(jnp.abs(out - ref)))
    assert jnp.allclose(out, ref, atol=5e-2, rtol=5e-2), f"max abs err {max_err}"
    print("KERNEL_OK")
</pallas_src>

<mosaic_0001>
module attributes {stable_mosaic.version = 11 : i64} {
  func.func @_conv1x1_stats_kernel(%arg0: i32, %arg1: i32, %arg2: memref<456x64xbf16, #tpu.memory_space<vmem>>, %arg3: memref<1x64x16xbf16, #tpu.memory_space<vmem>>, %arg4: memref<1x456x16xbf16, #tpu.memory_space<vmem>>, %arg5: memref<1x1x2x16xf32, #tpu.memory_space<vmem>>) attributes {dimension_semantics = [#tpu.dimension_semantics<parallel>, #tpu.dimension_semantics<parallel>], iteration_bounds = array<i64: 2, 4>, scalar_prefetch = 0 : i64, scratch_operands = 0 : i64, tpu.core_type = #tpu.core_type<tc>, window_params = [{transform_indices = @transform_0, window_bounds = array<i64: 456, 64>}, {transform_indices = @transform_1, window_bounds = array<i64: 1, 64, 16>}, {transform_indices = @transform_2, window_bounds = array<i64: 1, 456, 16>}, {transform_indices = @transform_3, window_bounds = array<i64: 1, 1, 2, 16>}]} {
    %c0 = arith.constant 0 : index
    %c0_0 = arith.constant 0 : index
    %0 = vector.load %arg2[%c0, %c0_0] : memref<456x64xbf16, #tpu.memory_space<vmem>>, vector<456x64xbf16>
    %c0_1 = arith.constant 0 : index
    %c0_2 = arith.constant 0 : index
    %c0_3 = arith.constant 0 : index
    %1 = vector.load %arg3[%c0_1, %c0_2, %c0_3] : memref<1x64x16xbf16, #tpu.memory_space<vmem>>, vector<1x64x16xbf16>
    %2 = vector.shape_cast %1 : vector<1x64x16xbf16> to vector<64x16xbf16>
    %cst = arith.constant dense<0.000000e+00> : vector<456x16xf32>
    %3 = tpu.matmul %0, %2, %cst {dimension_numbers = #tpu.dot_dimension_numbers<[1], [0], [0], [1], [0, 0, 1, 1], [], []>} : vector<456x64xbf16>, vector<64x16xbf16>, vector<456x16xf32> -> vector<456x16xf32>
    %4 = arith.truncf %3 : vector<456x16xf32> to vector<456x16xbf16>
    %c0_4 = arith.constant 0 : index
    %c0_5 = arith.constant 0 : index
    %c0_6 = arith.constant 0 : index
    %5 = vector.load %arg4[%c0_4, %c0_5, %c0_6] : memref<1x456x16xbf16, #tpu.memory_space<vmem>>, vector<1x456x16xbf16>
    %6 = vector.shape_cast %5 : vector<1x456x16xbf16> to vector<456x16xbf16>
    %7 = vector.shape_cast %4 : vector<456x16xbf16> to vector<1x456x16xbf16>
    tpu.vector_store %arg4[%c0_4, %c0_5, %c0_6], %7 {strides = array<i32>} : memref<1x456x16xbf16, #tpu.memory_space<vmem>>, vector<1x456x16xbf16>,
    %cst_7 = arith.constant dense<0.000000e+00> : vector<16xf32>
    %8 = vector.multi_reduction <add>, %3, %cst_7 [0] : vector<456x16xf32> to vector<16xf32>
    %9 = vector.shape_cast %8 : vector<16xf32> to vector<1x16xf32>
    %10 = arith.mulf %3, %3 : vector<456x16xf32>
    %cst_8 = arith.constant dense<0.000000e+00> : vector<16xf32>
    %11 = vector.multi_reduction <add>, %10, %cst_8 [0] : vector<456x16xf32> to vector<16xf32>
    %12 = vector.shape_cast %11 : vector<16xf32> to vector<1x16xf32>
    %13 = tpu.concatenate %9, %12 in 0 : vector<1x16xf32>, vector<1x16xf32> -> vector<2x16xf32>
    %c0_9 = arith.constant 0 : index
    %c0_10 = arith.constant 0 : index
    %c0_11 = arith.constant 0 : index
    %c0_12 = arith.constant 0 : index
    %14 = vector.load %arg5[%c0_9, %c0_10, %c0_11, %c0_12] : memref<1x1x2x16xf32, #tpu.memory_space<vmem>>, vector<1x1x2x16xf32>
    %15 = vector.shape_cast %14 : vector<1x1x2x16xf32> to vector<2x16xf32>
    %16 = vector.shape_cast %13 : vector<2x16xf32> to vector<1x1x2x16xf32>
    tpu.vector_store %arg5[%c0_9, %c0_10, %c0_11, %c0_12], %16 {strides = array<i32>} : memref<1x1x2x16xf32, #tpu.memory_space<vmem>>, vector<1x1x2x16xf32>,
    return
  }
  func.func @transform_0(%arg0: i32, %arg1: i32) -> (i32, i32) {
    %c0_i32 = arith.constant 0 : i32
    %c0_i32_0 = arith.constant 0 : i32
    return %arg0, %c0_i32 : i32, i32
  }
  func.func @transform_1(%arg0: i32, %arg1: i32) -> (i32, i32, i32) {
    %c0_i32 = arith.constant 0 : i32
    %c0_i32_0 = arith.constant 0 : i32
    %c0_i32_1 = arith.constant 0 : i32
    return %arg1, %c0_i32, %c0_i32_0 : i32, i32, i32
  }
  func.func @transform_2(%arg0: i32, %arg1: i32) -> (i32, i32, i32) {
    %c0_i32 = arith.constant 0 : i32
    %c0_i32_0 = arith.constant 0 : i32
    return %arg1, %arg0, %c0_i32 : i32, i32, i32
  }
  func.func @transform_3(%arg0: i32, %arg1: i32) -> (i32, i32, i32, i32) {
    %c0_i32 = arith.constant 0 : i32
    %c0_i32_0 = arith.constant 0 : i32
    %c0_i32_1 = arith.constant 0 : i32
    return %arg0, %arg1, %c0_i32, %c0_i32_0 : i32, i32, i32, i32
  }
}

module attributes {stable_mosaic.version = 11 : i64} {
  func.func @kernel(%arg0: i32, %arg1: i32, %arg2: memref<1x456x16xbf16, #tpu.memory_space<vmem>>, %arg3: memref<456x1xf32, #tpu.memory_space<vmem>>, %arg4: memref<1x1x16xf32, #tpu.memory_space<vmem>>, %arg5: memref<1x1x16xf32, #tpu.memory_space<vmem>>, %arg6: memref<1x3x48x128xbf16, #tpu.memory_space<vmem>>, %arg7: memref<1x1x384x128xf32, #tpu.memory_space<vmem>>, %arg8: memref<432x48xbf16, #tpu.memory_space<vmem>>) attributes {dimension_semantics = [#tpu.dimension_semantics<parallel>, #tpu.dimension_semantics<parallel>], iteration_bounds = array<i64: 2, 4>, scalar_prefetch = 0 : i64, scratch_operands = 1 : i64, tpu.core_type = #tpu.core_type<tc>, window_params = [{transform_indices = @transform_0, window_bounds = array<i64: 1, 456, 16>}, {pipeline_mode = #tpu.pipeline_mode<synchronous>, transform_indices = @transform_1, window_bounds = array<i64: 456, 1>}, {transform_indices = @transform_2, window_bounds = array<i64: 1, 1, 16>}, {transform_indices = @transform_3, window_bounds = array<i64: 1, 1, 16>}, {transform_indices = @transform_4, window_bounds = array<i64: 1, 3, 48, 128>}, {transform_indices = @transform_5, window_bounds = array<i64: 1, 1, 384, 128>}]} {
    %c0 = arith.constant 0 : index
    %c0_0 = arith.constant 0 : index
    %c0_1 = arith.constant 0 : index
    %0 = vector.load %arg2[%c0, %c0_0, %c0_1] : memref<1x456x16xbf16, #tpu.memory_space<vmem>>, vector<1x456x16xbf16>
    %1 = vector.shape_cast %0 : vector<1x456x16xbf16> to vector<456x16xbf16>
    %2 = arith.extf %1 : vector<456x16xbf16> to vector<456x16xf32>
    %c0_2 = arith.constant 0 : index
    %c0_3 = arith.constant 0 : index
    %c0_4 = arith.constant 0 : index
    %3 = vector.load %arg4[%c0_2, %c0_3, %c0_4] : memref<1x1x16xf32, #tpu.memory_space<vmem>>, vector<1x1x16xf32>
    %4 = vector.shape_cast %3 : vector<1x1x16xf32> to vector<1x16xf32>
    %5 = vector.broadcast %4 : vector<1x16xf32> to vector<456x16xf32>
    %6 = arith.mulf %2, %5 : vector<456x16xf32>
    %c0_5 = arith.constant 0 : index
    %c0_6 = arith.constant 0 : index
    %c0_7 = arith.constant 0 : index
    %7 = vector.load %arg5[%c0_5, %c0_6, %c0_7] : memref<1x1x16xf32, #tpu.memory_space<vmem>>, vector<1x1x16xf32>
    %8 = vector.shape_cast %7 : vector<1x1x16xf32> to vector<1x16xf32>
    %9 = vector.broadcast %8 : vector<1x16xf32> to vector<456x16xf32>
    %10 = arith.addf %6, %9 : vector<456x16xf32>
    %cst = arith.constant 0.000000e+00 : f32
    %11 = vector.broadcast %cst : f32 to vector<456x16xf32>
    %12 = arith.maximumf %10, %11 : vector<456x16xf32>
    %c0_8 = arith.constant 0 : index
    %c0_9 = arith.constant 0 : index
    %13 = vector.load %arg3[%c0_8, %c0_9] : memref<456x1xf32, #tpu.memory_space<vmem>>, vector<456x1xf32>
    %14 = vector.broadcast %13 : vector<456x1xf32> to vector<456x16xf32>
    %15 = arith.mulf %12, %14 : vector<456x16xf32>
    %16 = arith.truncf %15 : vector<456x16xf32> to vector<456x16xbf16>
    %17 = vector.extract_strided_slice %16 {offsets = [0, 0], sizes = [432, 16], strides = [1, 1]} : vector<456x16xbf16> to vector<432x16xbf16>
    %18 = vector.extract_strided_slice %16 {offsets = [1, 0], sizes = [432, 16], strides = [1, 1]} : vector<456x16xbf16> to vector<432x16xbf16>
    %19 = vector.extract_strided_slice %16 {offsets = [2, 0], sizes = [432, 16], strides = [1, 1]} : vector<456x16xbf16> to vector<432x16xbf16>
    %20 = tpu.concatenate %17, %18, %19 in 1 : vector<432x16xbf16>, vector<432x16xbf16>, vector<432x16xbf16> -> vector<432x48xbf16>
    %c0_10 = arith.constant 0 : index
    %c0_11 = arith.constant 0 : index
    %21 = vector.load %arg8[%c0_10, %c0_11] : memref<432x48xbf16, #tpu.memory_space<vmem>>, vector<432x48xbf16>
    tpu.vector_store %arg8[%c0_10, %c0_11], %20 {strides = array<i32>} : memref<432x48xbf16, #tpu.memory_space<vmem>>, vector<432x48xbf16>,
    %c0_12 = arith.constant 0 : index
    %c0_13 = arith.constant 0 : index
    %22 = vector.load %arg8[%c0_12, %c0_13] : memref<432x48xbf16, #tpu.memory_space<vmem>>, vector<384x48xbf16>
    %c0_14 = arith.constant 0 : index
    %c0_15 = arith.constant 0 : index
    %c0_16 = arith.constant 0 : index
    %c0_17 = arith.constant 0 : index
    %23 = vector.load %arg6[%c0_14, %c0_15, %c0_16, %c0_17] : memref<1x3x48x128xbf16, #tpu.memory_space<vmem>>, vector<1x1x48x128xbf16>
    %24 = vector.shape_cast %23 : vector<1x1x48x128xbf16> to vector<48x128xbf16>
    %cst_18 = arith.constant dense<0.000000e+00> : vector<384x128xf32>
    %25 = tpu.matmul %22, %24, %cst_18 {dimension_numbers = #tpu.dot_dimension_numbers<[1], [0], [0], [1], [0, 0, 1, 1], [], []>} : vector<384x48xbf16>, vector<48x128xbf16>, vector<384x128xf32> -> vector<384x128xf32>
    %c0_19 = arith.constant 0 : index
    %c0_20 = arith.constant 0 : index
    %c0_21 = arith.constant 0 : index
    %c0_22 = arith.constant 0 : index
    %26 = vector.load %arg7[%c0_19, %c0_20, %c0_21, %c0_22] : memref<1x1x384x128xf32, #tpu.memory_space<vmem>>, vector<1x1x384x128xf32>
    %27 = vector.shape_cast %26 : vector<1x1x384x128xf32> to vector<384x128xf32>
    %28 = vector.shape_cast %25 : vector<384x128xf32> to vector<1x1x384x128xf32>
    tpu.vector_store %arg7[%c0_19, %c0_20, %c0_21, %c0_22], %28 {strides = array<i32>} : memref<1x1x384x128xf32, #tpu.memory_space<vmem>>, vector<1x1x384x128xf32>,
    %c0_23 = arith.constant 0 : index
    %c0_24 = arith.constant 0 : index
    %c0_25 = arith.constant 0 : index
    %c0_26 = arith.constant 0 : index
    %29 = vector.load %arg7[%c0_23, %c0_24, %c0_25, %c0_26] : memref<1x1x384x128xf32, #tpu.memory_space<vmem>>, vector<1x1x384x128xf32>
    %30 = vector.shape_cast %29 : vector<1x1x384x128xf32> to vector<384x128xf32>
    %c24 = arith.constant 24 : index
    %c0_27 = arith.constant 0 : index
    %31 = vector.load %arg8[%c24, %c0_27] : memref<432x48xbf16, #tpu.memory_space<vmem>>, vector<384x48xbf16>
    %c0_28 = arith.constant 0 : index
    %c1 = arith.constant 1 : index
    %c0_29 = arith.constant 0 : index
    %c0_30 = arith.constant 0 : index
    %32 = vector.load %arg6[%c0_28, %c1, %c0_29, %c0_30] : memref<1x3x48x128xbf16, #tpu.memory_space<vmem>>, vector<1x1x48x128xbf16>
    %33 = vector.shape_cast %32 : vector<1x1x48x128xbf16> to vector<48x128xbf16>
    %cst_31 = arith.constant dense<0.000000e+00> : vector<384x128xf32>
    %34 = tpu.matmul %31, %33, %cst_31 {dimension_numbers = #tpu.dot_dimension_numbers<[1], [0], [0], [1], [0, 0, 1, 1], [], []>} : vector<384x48xbf16>, vector<48x128xbf16>, vector<384x128xf32> -> vector<384x128xf32>
    %35 = arith.addf %30, %34 : vector<384x128xf32>
    %c0_32 = arith.constant 0 : index
    %c0_33 = arith.constant 0 : index
    %c0_34 = arith.constant 0 : index
    %c0_35 = arith.constant 0 : index
    %36 = vector.load %arg7[%c0_32, %c0_33, %c0_34, %c0_35] : memref<1x1x384x128xf32, #tpu.memory_space<vmem>>, vector<1x1x384x128xf32>
    %37 = vector.shape_cast %36 : vector<1x1x384x128xf32> to vector<384x128xf32>
    %38 = vector.shape_cast %35 : vector<384x128xf32> to vector<1x1x384x128xf32>
    tpu.vector_store %arg7[%c0_32, %c0_33, %c0_34, %c0_35], %38 {strides = array<i32>} : memref<1x1x384x128xf32, #tpu.memory_space<vmem>>, vector<1x1x384x128xf32>,
    %c0_36 = arith.constant 0 : index
    %c0_37 = arith.constant 0 : index
    %c0_38 = arith.constant 0 : index
    %c0_39 = arith.constant 0 : index
    %39 = vector.load %arg7[%c0_36, %c0_37, %c0_38, %c0_39] : memref<1x1x384x128xf32, #tpu.memory_space<vmem>>, vector<1x1x384x128xf32>
    %40 = vector.shape_cast %39 : vector<1x1x384x128xf32> to vector<384x128xf32>
    %c48 = arith.constant 48 : index
    %c0_40 = arith.constant 0 : index
    %41 = vector.load %arg8[%c48, %c0_40] : memref<432x48xbf16, #tpu.memory_space<vmem>>, vector<384x48xbf16>
    %c0_41 = arith.constant 0 : index
    %c2 = arith.constant 2 : index
    %c0_42 = arith.constant 0 : index
    %c0_43 = arith.constant 0 : index
    %42 = vector.load %arg6[%c0_41, %c2, %c0_42, %c0_43] : memref<1x3x48x128xbf16, #tpu.memory_space<vmem>>, vector<1x1x48x128xbf16>
    %43 = vector.shape_cast %42 : vector<1x1x48x128xbf16> to vector<48x128xbf16>
    %cst_44 = arith.constant dense<0.000000e+00> : vector<384x128xf32>
    %44 = tpu.matmul %41, %43, %cst_44 {dimension_numbers = #tpu.dot_dimension_numbers<[1], [0], [0], [1], [0, 0, 1, 1], [], []>} : vector<384x48xbf16>, vector<48x128xbf16>, vector<384x128xf32> -> vector<384x128xf32>
    %45 = arith.addf %40, %44 : vector<384x128xf32>
    %c0_45 = arith.constant 0 : index
    %c0_46 = arith.constant 0 : index
    %c0_47 = arith.constant 0 : index
    %c0_48 = arith.constant 0 : index
    %46 = vector.load %arg7[%c0_45, %c0_46, %c0_47, %c0_48] : memref<1x1x384x128xf32, #tpu.memory_space<vmem>>, vector<1x1x384x128xf32>
    %47 = vector.shape_cast %46 : vector<1x1x384x128xf32> to vector<384x128xf32>
    %48 = vector.shape_cast %45 : vector<384x128xf32> to vector<1x1x384x128xf32>
    tpu.vector_store %arg7[%c0_45, %c0_46, %c0_47, %c0_48], %48 {strides = array<i32>} : memref<1x1x384x128xf32, #tpu.memory_space<vmem>>, vector<1x1x384x128xf32>,
    return
  }
  func.func @transform_0(%arg0: i32, %arg1: i32) -> (i32, i32, i32) {
    %c0_i32 = arith.constant 0 : i32
    %c0_i32_0 = arith.constant 0 : i32
    return %arg1, %arg0, %c0_i32 : i32, i32, i32
  }
  func.func @transform_1(%arg0: i32, %arg1: i32) -> (i32, i32) {
    %c0_i32 = arith.constant 0 : i32
    %c0_i32_0 = arith.constant 0 : i32
    %c0_i32_1 = arith.constant 0 : i32
    return %c0_i32, %c0_i32_0 : i32, i32
  }
  func.func @transform_2(%arg0: i32, %arg1: i32) -> (i32, i32, i32) {
    %c0_i32 = arith.constant 0 : i32
    %c0_i32_0 = arith.constant 0 : i32
    %c0_i32_1 = arith.constant 0 : i32
    return %arg1, %c0_i32, %c0_i32_0 : i32, i32, i32
  }
  func.func @transform_3(%arg0: i32, %arg1: i32) -> (i32, i32, i32) {
    %c0_i32 = arith.constant 0 : i32
    %c0_i32_0 = arith.constant 0 : i32
    %c0_i32_1 = arith.constant 0 : i32
    return %arg1, %c0_i32, %c0_i32_0 : i32, i32, i32
  }
  func.func @transform_4(%arg0: i32, %arg1: i32) -> (i32, i32, i32, i32) {
    %c0_i32 = arith.constant 0 : i32
    %c0_i32_0 = arith.constant 0 : i32
    %c0_i32_1 = arith.constant 0 : i32
    %c0_i32_2 = arith.constant 0 : i32
    return %arg1, %c0_i32, %c0_i32_0, %c0_i32_1 : i32, i32, i32, i32
  }
  func.func @transform_5(%arg0: i32, %arg1: i32) -> (i32, i32, i32, i32) {
    %c0_i32 = arith.constant 0 : i32
    %c0_i32_0 = arith.constant 0 : i32
    %c0_i32_1 = arith.constant 0 : i32
    return %arg0, %arg1, %c0_i32, %c0_i32_0 : i32, i32, i32, i32
  }
}

</mosaic_0001>

<bundles_post_ra>
// kernel: module_forward.2
= control target key start
LH: loop header
LB: loop body
LE: loop exit
PB: predicated region body
PF: predicated region fallthrough
CT: control target
= control target key end

     0   :  { %s2045_s12 = smov 0   ;;  %s2047_s13 = smov 0   ;;  %s2661_s0 = inlined_call_operand.vmem [shape: bf16[912,64], index: 0, kind: input, shape index: {}]   ;;  %s2662_s1 = inlined_call_operand.vmem [shape: bf16[4,64,16], index: 1, kind: input, shape index: {}]   ;;  %s2663_s2 = inlined_call_operand.vmem [shape: bf16[4,912,16], index: 2, kind: output, shape index: {0}]   ;;  %s2664_s3 = inlined_call_operand.vmem [shape: f32[2,4,2,16], index: 3, kind: output, shape index: {1}]  }
   0x1   :  { %s2049_s14 = smov 0   ;;  %s2051_s15 = smov 0  }
   0x2   :  { %s2053_s16 = smov 0  }
   0x3 LB: > { %s23_s17 = sadd.s32 1, %s2013_s14  ;;  %s26_s18 = sadd.s32 1, %s2017_s15  ;;  %s2021_s16 = sphi %s2053_s16, %s14_s16   ;;  %s2017_s15 = sphi %s2051_s15, %s2668_s15   ;;  %s2013_s14 = sphi %s2049_s14, %s2667_s14   ;;  %s2009_s13 = sphi %s2047_s13, %s2666_s13   ;;  %s2005_s12 = sphi %s2045_s12, %s2665_s12  }
   0x4   : > { %p24_p0 = scmp.ge.s32.totalorder %s23_s17, 4  ;;  %p1556_p1 = scmp.ge.s32.totalorder %s2021_s16, 1 }
   0x5   : > { %p167_p2 = scmp.lt.s32.totalorder %s2021_s16, 9 }
   0x6   : > { %s2670_s17 = smov (%p24_p0, %s23_s17), 0  ;;  %s2672_s18 = smov (!%p24_p0, %s26_s18), %s2017_s15 }
   0x7   : > { %p168_p3 = pnand %p1556_p1, %p167_p2  ;;  %p28_p4 = scmp.ge.s32.totalorder %s2672_s18, 2 }
   0x8   : > { %s208_s19 = smul.u32 (!%p168_p3), 57, %s2009_s13  ;;  %p214_p5 = scmp.lt.s32.totalorder (!%p168_p3), %s2005_s12, 3  ;;  %v2023_v0 = vmov (!%p168_p3), 0.0   ;;  %vm2024_vm0 = vmmov (!%p168_p3), 0   ;;  %vm470_vm1 = vcmask (!%p168_p3), 523264   ;;  %vm1051_vm2 = vcmask (!%p168_p3), 125952  }
   0x9   : > { %s2674_s18 = smov (%p28_p4, %s2672_s18), 0  ;;  %171 = sbr.rel (%p168_p3) target bundleno = 434 (0x1b2), region = 28 }
   0xa   : > { %1775 = vmatprep.subr.bf16.mxu0 (!%p168_p3), %v2023_v0  ;;  %1783 = vmatprep.mubr.msk.bf16.mxu0 (!%p168_p3), %vm2024_vm0, %v2023_v0  ;;  %p209_p6 = scmp.lt.s32.totalorder (!%p168_p3), %s208_s19, 113  ;;  %vm1109_vm3 = vcmask (!%p168_p3), 130048   ;;  %p229_p7 = scmp.lt.s32.totalorder (!%p168_p3), %s2009_s13, 1  ;;  %vm1405_vm4 = vcmask (!%p168_p3), 1040384   ;;  %vm1407_vm5 = vcmask (!%p168_p3), 123904  }
   0xb   : > { %1899 = vmatprep.subr.bf16.mxu1 (!%p168_p3), %v2023_v0  ;;  %1843 = vmatprep.mubr.msk.bf16.mxu1 (!%p168_p3), %vm2024_vm0, %v2023_v0 }
  0x10   : > { %s2676_s12 = smov (!%p214_p5, %s2005_s12), 3  ;;  %s2678_s19 = smov (!%p209_p6, %s208_s19), 113 }
  0x11   : > { %s1684_s20 = sshll.u32 %s2676_s12, 5  ;;  %s1557_s24 = sshll.u32 %s2678_s19, 2 }
  0x12   : > { %s218_s23 = scalar_lea.vmem %s2662_s1, %s1684_s20  ;;  %s2096_s27 = scalar_lea.vmem %s2661_s0, %s1557_s24 }
  0x13   : > { %v1950_v1 = vld [vmem:[%s218_s23] sm:$0xff]   ;;  %v1951_v2 = vld [vmem:[%s218_s23 + $0x8] sm:$0xff]   ;;  %v1952_v3 = vld [vmem:[%s218_s23 + $0x10] sm:$0xff]   ;;  %s1907_s28 = smul.u32 114, %s2676_s12  ;;  %s2680_s13 = smov (!%p229_p7, %s2009_s13), 1 }
  0x14   : > { %1776 = vmatpush3.bf16.msra.mxu0 %v1950_v1  ;;  %1903 = vmatpush3.bf16.msra.mxu1 %v1950_v1  ;;  %v1953_v4 = vld [vmem:[%s218_s23 + $0x18] sm:$0xff]   ;;  %v1954_v5 = vld [vmem:[%s2096_s27] sm:$0xff]   ;;  %v1955_v7 = vld [vmem:[%s2096_s27 + $0x8] sm:$0xff]   ;;  %s1561_s7 = sshll.u32 %s2680_s13, 2 }
  0x15   : > { %1777 = vmatprep.subr.bf16.mxu0 %v2023_v0  ;;  %1900 = vmatprep.subr.bf16.mxu1 %v2023_v0  ;;  %v1962_v6 = vld [vmem:[%s2096_s27 + $0x78] sm:$0xff]   ;;  %v1964_v8 = vld [vmem:[%s2096_s27 + $0x80] sm:$0xff]   ;;  %v1956_v9 = vld [vmem:[%s2096_s27 + $0x10] sm:$0xff]   ;;  %s225_s29 = sadd.s32 %s1907_s28, %s2678_s19  ;;  %s234_s8 = sadd.s32 %s1561_s7, %s2676_s12 }
  0x16   : > { %v1966_v10 = vld [vmem:[%s2096_s27 + $0x88] sm:$0xff]   ;;  %v1957_v11 = vld [vmem:[%s2096_s27 + $0x18] sm:$0xff]   ;;  %v1968_v12 = vld [vmem:[%s2096_s27 + $0x90] sm:$0xff]   ;;  %s1560_s30 = sshll.u32 %s225_s29, 2  ;;  %s1562_s9 = sshll.u32 %s234_s8, 1 }
  0x17   : > { %v1958_v13 = vld [vmem:[%s2096_s27 + $0x20] sm:$0xff]   ;;  %v1970_v14 = vld [vmem:[%s2096_s27 + $0x98] sm:$0xff]   ;;  %v1959_v15 = vld [vmem:[%s2096_s27 + $0x28] sm:$0xff]   ;;  %s2221_s6 = scalar_lea.vmem %s2663_s2, %s1560_s30  ;;  %s236_s19 = scalar_lea.vmem %s2664_s3, %s1562_s9 }
  0x18   : > { %1778 = vmatpush3.bf16.msra.mxu0 %v1951_v2  ;;  %1904 = vmatpush3.bf16.msra.mxu1 %v1951_v2  ;;  %v1972_v16 = vld [vmem:[%s2096_s27 + $0xa0] sm:$0xff]   ;;  %v1960_v17 = vld [vmem:[%s2096_s27 + $0x30] sm:$0xff]   ;;  %v1974_v18 = vld [vmem:[%s2096_s27 + $0xa8] sm:$0xff]  }
  0x19   : > { %1779 = vmatprep.subr.bf16.mxu0 %v2023_v0  ;;  %1901 = vmatprep.subr.bf16.mxu1 %v2023_v0  ;;  %v1961_v19 = vld [vmem:[%s2096_s27 + $0x38] sm:$0xff]   ;;  %v1976_v20 = vld [vmem:[%s2096_s27 + $0xb0] sm:$0xff]   ;;  %v1963_v21 = vld [vmem:[%s2096_s27 + $0x40] sm:$0xff]  }
  0x1a   : > { %v1977_v22 = vld [vmem:[%s2096_s27 + $0xb8] sm:$0xff]   ;;  %v1965_v23 = vld [vmem:[%s2096_s27 + $0x48] sm:$0xff]   ;;  %v1978_v24 = vld [vmem:[%s2096_s27 + $0xc0] sm:$0xff]  }
  0x1b   : > { %v1967_v25 = vld [vmem:[%s2096_s27 + $0x50] sm:$0xff]   ;;  %v1979_v26 = vld [vmem:[%s2096_s27 + $0xc8] sm:$0xff]   ;;  %v1969_v27 = vld [vmem:[%s2096_s27 + $0x58] sm:$0xff]  }
  0x1c   : > { %1780 = vmatpush3.bf16.msra.mxu0 %v1952_v3  ;;  %1905 = vmatpush3.bf16.msra.mxu1 %v1952_v3  ;;  %v1980_v28 = vld [vmem:[%s2096_s27 + $0xd0] sm:$0xff]   ;;  %v1971_v29 = vld [vmem:[%s2096_s27 + $0x60] sm:$0xff]   ;;  %v1981_v30 = vld [vmem:[%s2096_s27 + $0xd8] sm:$0xff]  }
  0x1d   : > { %1781 = vmatprep.subr.bf16.mxu0 %v2023_v0  ;;  %1902 = vmatprep.subr.bf16.mxu1 %v2023_v0  ;;  %v1973_v31 = vld [vmem:[%s2096_s27 + $0x68] sm:$0xff]   ;;  %v1982_v32 = vld [vmem:[%s2096_s27 + $0xe0] ss:$0 sps:$4 sm:$0xff]   ;;  %v1975_v33 = vld [vmem:[%s2096_s27 + $0x70] sm:$0xff]  }
  0x20   : > { %1782 = vmatpush3.bf16.msra.mxu0 %v1953_v4  ;;  %1906 = vmatpush3.bf16.msra.mxu1 %v1953_v4 }
  0x23   : > { %1784 = vmatmul.mubr.msk.bf16.vlgmr.msra.gmra.mrb[0].mxu0 %vm470_vm1, %v1954_v5  ;;  %1844 = vmatmul.mubr.msk.bf16.vlgmr.msra.gmra.mrb[0].mxu1 %vm470_vm1, %v1962_v6 }
  0x24   : > { %1787 = vmatprep.mubr.msk.bf16.mxu0 %vm2024_vm0, %v2023_v0  ;;  %1847 = vmatprep.mubr.msk.bf16.mxu1 %vm2024_vm0, %v2023_v0 }
  0x2b   : > { %1788 = vmatmul.mubr.msk.bf16.gmra.mrb[4].mxu0 %vm470_vm1, %v1955_v7  ;;  %1848 = vmatmul.mubr.msk.bf16.gmra.mrb[4].mxu1 %vm470_vm1, %v1964_v8 }
  0x2c   : > { %1791 = vmatprep.mubr.msk.bf16.mxu0 %vm2024_vm0, %v2023_v0  ;;  %1851 = vmatprep.mubr.msk.bf16.mxu1 %vm2024_vm0, %v2023_v0 }
  0x33   : > { %1792 = vmatmul.mubr.msk.bf16.gmra.mrb[8].mxu0 %vm470_vm1, %v1956_v9  ;;  %1852 = vmatmul.mubr.msk.bf16.gmra.mrb[8].mxu1 %vm470_vm1, %v1966_v10 }
  0x34   : > { %1795 = vmatprep.mubr.msk.bf16.mxu0 %vm2024_vm0, %v2023_v0  ;;  %1855 = vmatprep.mubr.msk.bf16.mxu1 %vm2024_vm0, %v2023_v0 }
  0x3b   : > { %1796 = vmatmul.mubr.msk.bf16.gmra.mrb[12].mxu0 %vm470_vm1, %v1957_v11  ;;  %1856 = vmatmul.mubr.msk.bf16.gmra.mrb[12].mxu1 %vm470_vm1, %v1968_v12 }
  0x3c   : > { %1799 = vmatprep.mubr.msk.bf16.mxu0 %vm2024_vm0, %v2023_v0  ;;  %1859 = vmatprep.mubr.msk.bf16.mxu1 %vm2024_vm0, %v2023_v0 }
  0x43   : > { %1800 = vmatmul.mubr.msk.bf16.gmra.mrb[16].mxu0 %vm470_vm1, %v1958_v13  ;;  %1860 = vmatmul.mubr.msk.bf16.gmra.mrb[16].mxu1 %vm470_vm1, %v1970_v14 }
  0x44   : > { %1803 = vmatprep.mubr.msk.bf16.mxu0 %vm2024_vm0, %v2023_v0  ;;  %1863 = vmatprep.mubr.msk.bf16.mxu1 %vm2024_vm0, %v2023_v0 }
  0x4b   : > { %1804 = vmatmul.mubr.msk.bf16.gmra.mrb[20].mxu0 %vm470_vm1, %v1959_v15  ;;  %1864 = vmatmul.mubr.msk.bf16.gmra.mrb[20].mxu1 %vm470_vm1, %v1972_v16 }
  0x4c   : > { %1807 = vmatprep.mubr.msk.bf16.mxu0 %vm2024_vm0, %v2023_v0  ;;  %1867 = vmatprep.mubr.msk.bf16.mxu1 %vm2024_vm0, %v2023_v0 }
  0x53   : > { %1808 = vmatmul.mubr.msk.bf16.gmra.mrb[24].mxu0 %vm470_vm1, %v1960_v17  ;;  %1868 = vmatmul.mubr.msk.bf16.gmra.mrb[24].mxu1 %vm470_vm1, %v1974_v18 }
  0x54   : > { %1811 = vmatprep.mubr.msk.bf16.mxu0 %vm2024_vm0, %v2023_v0  ;;  %1871 = vmatprep.mubr.msk.bf16.mxu1 %vm2024_vm0, %v2023_v0 }
  0x5b   : > { %1812 = vmatmul.mubr.msk.bf16.gmra.mrb[28].mxu0 %vm470_vm1, %v1961_v19  ;;  %1872 = vmatmul.mubr.msk.bf16.gmra.mrb[28].mxu1 %vm470_vm1, %v1976_v20 }
  0x5c   : > { %1815 = vmatprep.mubr.msk.bf16.mxu0 %vm2024_vm0, %v2023_v0  ;;  %1875 = vmatprep.mubr.msk.bf16.mxu1 %vm2024_vm0, %v2023_v0 }
  0x63   : > { %1816 = vmatmul.mubr.msk.bf16.gmra.mrb[32].mxu0 %vm470_vm1, %v1963_v21  ;;  %1876 = vmatmul.mubr.msk.bf16.gmra.mrb[32].mxu1 %vm470_vm1, %v1977_v22 }
  0x64   : > { %1819 = vmatprep.mubr.msk.bf16.mxu0 %vm2024_vm0, %v2023_v0  ;;  %1879 = vmatprep.mubr.msk.bf16.mxu1 %vm2024_vm0, %v2023_v0 }
  0x6b   : > { %1820 = vmatmul.mubr.msk.bf16.gmra.mrb[36].mxu0 %vm470_vm1, %v1965_v23  ;;  %1880 = vmatmul.mubr.msk.bf16.gmra.mrb[36].mxu1 %vm470_vm1, %v1978_v24 }
  0x6c   : > { %1823 = vmatprep.mubr.msk.bf16.mxu0 %vm2024_vm0, %v2023_v0  ;;  %1883 = vmatprep.mubr.msk.bf16.mxu1 %vm2024_vm0, %v2023_v0 }
  0x73   : > { %1824 = vmatmul.mubr.msk.bf16.gmra.mrb[40].mxu0 %vm470_vm1, %v1967_v25  ;;  %1884 = vmatmul.mubr.msk.bf16.gmra.mrb[40].mxu1 %vm470_vm1, %v1979_v26 }
  0x74   : > { %1827 = vmatprep.mubr.msk.bf16.mxu0 %vm2024_vm0, %v2023_v0  ;;  %1887 = vmatprep.mubr.msk.bf16.mxu1 %vm2024_vm0, %v2023_v0 }
  0x7b   : > { %1828 = vmatmul.mubr.msk.bf16.gmra.mrb[44].mxu0 %vm470_vm1, %v1969_v27  ;;  %1888 = vmatmul.mubr.msk.bf16.gmra.mrb[44].mxu1 %vm470_vm1, %v1980_v28 }
  0x7c   : > { %1831 = vmatprep.mubr.msk.bf16.mxu0 %vm2024_vm0, %v2023_v0  ;;  %1891 = vmatprep.mubr.msk.bf16.mxu1 %vm2024_vm0, %v2023_v0 }
  0x83   : > { %1832 = vmatmul.mubr.msk.bf16.gmra.mrb[48].mxu0 %vm470_vm1, %v1971_v29  ;;  %1892 = vmatmul.mubr.msk.bf16.gmra.mrb[48].mxu1 %vm470_vm1, %v1981_v30 }
  0x84   : > { %1835 = vmatprep.mubr.msk.bf16.mxu0 %vm2024_vm0, %v2023_v0  ;;  %1895 = vmatprep.mubr.msk.bf16.mxu1 %vm2024_vm0, %v2023_v0 }
  0x8b   : > { %1836 = vmatmul.mubr.msk.bf16.gmra.mrb[52].mxu0 %vm470_vm1, %v1973_v31  ;;  %1896 = vmatmul.mubr.msk.bf16.gmra.mrb[52].mxu1 %vm470_vm1, %v1982_v32 }
  0x8c   : > { %1839 = vmatprep.mubr.msk.bf16.mxu0 %vm2024_vm0, %v2023_v0 }
  0x93   : > { %1840 = vmatmul.mubr.msk.bf16.gmra.mrb[56].mxu0 %vm470_vm1, %v1975_v33 }
  0xf6   : > { %v592_v34 = vpop.f32.mrb[0].mxu0  ;;  %v2223_v35 = vpop.f32.mrb[0].mxu1 }
  0xf7   : > { %v1685_v36 = vpack.c.bf16 %v592_v34, %v592_v34  ;;  %v1229_v37 = vmul.f32 %v592_v34, %v592_v34  ;;  %v1785_v38 = vpop.f32.mrb[1].mxu0  ;;  %v1715_v39 = vpack.c.bf16 %v2223_v35, %v2223_v35  ;;  %v1845_v40 = vpop.f32.mrb[1].mxu1  ;;  %v1110_v43 = vsel %vm1109_vm3, %v592_v34, 0.0 }
  0xf8   : > { %v595_v41 = vpop.f32.mrb[2].mxu0  ;;  %v2227_v42 = vpop.f32.mrb[2].mxu1 }
  0xf9   : > { %1052 = vst.msk [vmem:[%s2221_s6] sm:$0xf] %vm1051_vm2, %v1685_v36  ;;  %v1686_v44 = vpack.c.bf16 %v595_v41, %v595_v41  ;;  %v1111_v45 = vsel %vm1109_vm3, %v595_v41, 0.0  ;;  %v1230_v46 = vmul.f32 %v595_v41, %v595_v41  ;;  %v1786_v47 = vpop.f32.mrb[3].mxu0  ;;  %1082 = vst.msk [vmem:[%s2221_s6 + $0x78] sm:$0xf] %vm1051_vm2, %v1715_v39  ;;  %v1716_v50 = vpack.c.bf16 %v2227_v42, %v2227_v42 }
  0xfa   : > { %v1846_v48 = vpop.f32.mrb[3].mxu1  ;;  %v1112_v49 = vadd.f32 %v1111_v45, %v1110_v43  ;;  %v1286_v51 = vsel %vm1109_vm3, %v1229_v37, 0.0 }
  0xfb   : > { %1053 = vst.msk [vmem:[%s2221_s6 + $0x4] sm:$0xf] %vm1051_vm2, %v1686_v44  ;;  %v1287_v52 = vsel %vm1109_vm3, %v1230_v46, 0.0  ;;  %1083 = vst.msk [vmem:[%s2221_s6 + $0x7c] sm:$0xf] %vm1051_vm2, %v1716_v50 }
  0xfc   : > { %v1288_v53 = vadd.f32 %v1287_v52, %v1286_v51 }
  0xfe   : > { %v600_v54 = vpop.f32.mrb[4].mxu0  ;;  %v2243_v55 = vpop.f32.mrb[4].mxu1 }
  0xff   : > { %v1687_v56 = vpack.c.bf16 %v600_v54, %v600_v54  ;;  %v1113_v57 = vsel %vm1109_vm3, %v600_v54, 0.0  ;;  %v1231_v58 = vmul.f32 %v600_v54, %v600_v54  ;;  %v1789_v59 = vpop.f32.mrb[5].mxu0  ;;  %v1717_v60 = vpack.c.bf16 %v2243_v55, %v2243_v55  ;;  %v1849_v61 = vpop.f32.mrb[5].mxu1 }
 0x100   : > { %v1114_v62 = vadd.f32 %v1113_v57, %v1112_v49  ;;  %v603_v63 = vpop.f32.mrb[6].mxu0  ;;  %v2248_v0 = vpop.f32.mrb[6].mxu1 }
 0x101   : > { %1054 = vst.msk [vmem:[%s2221_s6 + $0x8] sm:$0xf] %vm1051_vm2, %v1687_v56  ;;  %v1289_v1 = vsel %vm1109_vm3, %v1231_v58, 0.0  ;;  %v1688_v2 = vpack.c.bf16 %v603_v63, %v603_v63  ;;  %v1115_v3 = vsel %vm1109_vm3, %v603_v63, 0.0  ;;  %v1232_v4 = vmul.f32 %v603_v63, %v603_v63  ;;  %v1790_v5 = vpop.f32.mrb[7].mxu0  ;;  %v1850_v6 = vpop.f32.mrb[7].mxu1 }
 0x102   : > { %1084 = vst.msk [vmem:[%s2221_s6 + $0x80] sm:$0xf] %vm1051_vm2, %v1717_v60  ;;  %v1290_v7 = vadd.f32 %v1289_v1, %v1288_v53  ;;  %v1116_v8 = vadd.f32 %v1115_v3, %v1114_v62  ;;  %v1718_v9 = vpack.c.bf16 %v2248_v0, %v2248_v0 }
 0x103   : > { %1055 = vst.msk [vmem:[%s2221_s6 + $0xc] sm:$0xf] %vm1051_vm2, %v1688_v2  ;;  %v1291_v10 = vsel %vm1109_vm3, %v1232_v4, 0.0 }
 0x104   : > { %v1292_v11 = vadd.f32 %v1291_v10, %v1290_v7  ;;  %1085 = vst.msk [vmem:[%s2221_s6 + $0x84] sm:$0xf] %vm1051_vm2, %v1718_v9 }
 0x106   : > { %v608_v12 = vpop.f32.mrb[8].mxu0  ;;  %v2263_v13 = vpop.f32.mrb[8].mxu1 }
 0x107   : > { %v1689_v14 = vpack.c.bf16 %v608_v12, %v608_v12  ;;  %v1117_v15 = vsel %vm1109_vm3, %v608_v12, 0.0  ;;  %v1233_v16 = vmul.f32 %v608_v12, %v608_v12  ;;  %v1793_v17 = vpop.f32.mrb[9].mxu0  ;;  %v1719_v18 = vpack.c.bf16 %v2263_v13, %v2263_v13  ;;  %v1853_v19 = vpop.f32.mrb[9].mxu1 }
 0x108   : > { %v1118_v20 = vadd.f32 %v1117_v15, %v1116_v8  ;;  %v611_v21 = vpop.f32.mrb[10].mxu0  ;;  %v2268_v22 = vpop.f32.mrb[10].mxu1 }
 0x109   : > { %1056 = vst.msk [vmem:[%s2221_s6 + $0x10] sm:$0xf] %vm1051_vm2, %v1689_v14  ;;  %v1293_v23 = vsel %vm1109_vm3, %v1233_v16, 0.0  ;;  %v1690_v24 = vpack.c.bf16 %v611_v21, %v611_v21  ;;  %v1119_v25 = vsel %vm1109_vm3, %v611_v21, 0.0  ;;  %v1234_v26 = vmul.f32 %v611_v21, %v611_v21  ;;  %v1794_v27 = vpop.f32.mrb[11].mxu0  ;;  %v1854_v28 = vpop.f32.mrb[11].mxu1 }
 0x10a   : > { %1086 = vst.msk [vmem:[%s2221_s6 + $0x88] sm:$0xf] %vm1051_vm2, %v1719_v18  ;;  %v1294_v29 = vadd.f32 %v1293_v23, %v1292_v11  ;;  %v1120_v30 = vadd.f32 %v1119_v25, %v1118_v20  ;;  %v1720_v31 = vpack.c.bf16 %v2268_v22, %v2268_v22 }
 0x10b   : > { %1057 = vst.msk [vmem:[%s2221_s6 + $0x14] sm:$0xf] %vm1051_vm2, %v1690_v24  ;;  %v1295_v32 = vsel %vm1109_vm3, %v1234_v26, 0.0 }
 0x10c   : > { %v1296_v33 = vadd.f32 %v1295_v32, %v1294_v29  ;;  %1087 = vst.msk [vmem:[%s2221_s6 + $0x8c] sm:$0xf] %vm1051_vm2, %v1720_v31 }
 0x10e   : > { %v616_v34 = vpop.f32.mrb[12].mxu0  ;;  %v2283_v36 = vpop.f32.mrb[12].mxu1 }
 0x10f   : > { %v1691_v37 = vpack.c.bf16 %v616_v34, %v616_v34  ;;  %v1121_v38 = vsel %vm1109_vm3, %v616_v34, 0.0  ;;  %v1235_v39 = vmul.f32 %v616_v34, %v616_v34  ;;  %v1797_v40 = vpop.f32.mrb[13].mxu0  ;;  %v1721_v41 = vpack.c.bf16 %v2283_v36, %v2283_v36  ;;  %v1857_v43 = vpop.f32.mrb[13].mxu1 }
 0x110   : > { %v1122_v44 = vadd.f32 %v1121_v38, %v1120_v30  ;;  %v619_v45 = vpop.f32.mrb[14].mxu0  ;;  %v2288_v46 = vpop.f32.mrb[14].mxu1 }
 0x111   : > { %1058 = vst.msk [vmem:[%s2221_s6 + $0x18] sm:$0xf] %vm1051_vm2, %v1691_v37  ;;  %v1297_v47 = vsel %vm1109_vm3, %v1235_v39, 0.0  ;;  %v1692_v48 = vpack.c.bf16 %v619_v45, %v619_v45  ;;  %v1123_v49 = vsel %vm1109_vm3, %v619_v45, 0.0  ;;  %v1236_v50 = vmul.f32 %v619_v45, %v619_v45  ;;  %v1798_v51 = vpop.f32.mrb[15].mxu0  ;;  %v1858_v52 = vpop.f32.mrb[15].mxu1 }
 0x112   : > { %1088 = vst.msk [vmem:[%s2221_s6 + $0x90] sm:$0xf] %vm1051_vm2, %v1721_v41  ;;  %v1298_v53 = vadd.f32 %v1297_v47, %v1296_v33  ;;  %v1124_v54 = vadd.f32 %v1123_v49, %v1122_v44  ;;  %v1722_v56 = vpack.c.bf16 %v2288_v46, %v2288_v46 }
 0x113   : > { %1059 = vst.msk [vmem:[%s2221_s6 + $0x1c] sm:$0xf] %vm1051_vm2, %v1692_v48  ;;  %v1299_v57 = vsel %vm1109_vm3, %v1236_v50, 0.0 }
 0x114   : > { %v1300_v58 = vadd.f32 %v1299_v57, %v1298_v53  ;;  %1089 = vst.msk [vmem:[%s2221_s6 + $0x94] sm:$0xf] %vm1051_vm2, %v1722_v56 }
 0x116   : > { %v624_v59 = vpop.f32.mrb[16].mxu0  ;;  %v2303_v60 = vpop.f32.mrb[16].mxu1 }
 0x117   : > { %v1693_v61 = vpack.c.bf16 %v624_v59, %v624_v59  ;;  %v1125_v62 = vsel %vm1109_vm3, %v624_v59, 0.0  ;;  %v1237_v63 = vmul.f32 %v624_v59, %v624_v59  ;;  %v1801_v1 = vpop.f32.mrb[17].mxu0  ;;  %v1723_v2 = vpack.c.bf16 %v2303_v60, %v2303_v60  ;;  %v1861_v3 = vpop.f32.mrb[17].mxu1 }
 0x118   : > { %v1126_v4 = vadd.f32 %v1125_v62, %v1124_v54  ;;  %v627_v5 = vpop.f32.mrb[18].mxu0  ;;  %v2308_v6 = vpop.f32.mrb[18].mxu1 }
 0x119   : > { %1060 = vst.msk [vmem:[%s2221_s6 + $0x20] sm:$0xf] %vm1051_vm2, %v1693_v61  ;;  %v1301_v7 = vsel %vm1109_vm3, %v1237_v63, 0.0  ;;  %v1694_v8 = vpack.c.bf16 %v627_v5, %v627_v5  ;;  %v1127_v9 = vsel %vm1109_vm3, %v627_v5, 0.0  ;;  %v1238_v10 = vmul.f32 %v627_v5, %v627_v5  ;;  %v1802_v11 = vpop.f32.mrb[19].mxu0  ;;  %v1862_v12 = vpop.f32.mrb[19].mxu1 }
 0x11a   : > { %1090 = vst.msk [vmem:[%s2221_s6 + $0x98] sm:$0xf] %vm1051_vm2, %v1723_v2  ;;  %v1302_v14 = vadd.f32 %v1301_v7, %v1300_v58  ;;  %v1128_v15 = vadd.f32 %v1127_v9, %v1126_v4  ;;  %v1724_v16 = vpack.c.bf16 %v2308_v6, %v2308_v6 }
 0x11b   : > { %1061 = vst.msk [vmem:[%s2221_s6 + $0x24] sm:$0xf] %vm1051_vm2, %v1694_v8  ;;  %v1303_v17 = vsel %vm1109_vm3, %v1238_v10, 0.0 }
 0x11c   : > { %v1304_v18 = vadd.f32 %v1303_v17, %v1302_v14  ;;  %1091 = vst.msk [vmem:[%s2221_s6 + $0x9c] sm:$0xf] %vm1051_vm2, %v1724_v16 }
 0x11e   : > { %v632_v19 = vpop.f32.mrb[20].mxu0  ;;  %v2323_v20 = vpop.f32.mrb[20].mxu1 }
 0x11f   : > { %v1695_v21 = vpack.c.bf16 %v632_v19, %v632_v19  ;;  %v1129_v23 = vsel %vm1109_vm3, %v632_v19, 0.0  ;;  %v1239_v24 = vmul.f32 %v632_v19, %v632_v19  ;;  %v1805_v25 = vpop.f32.mrb[21].mxu0  ;;  %v1725_v26 = vpack.c.bf16 %v2323_v20, %v2323_v20  ;;  %v1865_v27 = vpop.f32.mrb[21].mxu1 }
 0x120   : > { %v1130_v28 = vadd.f32 %v1129_v23, %v1128_v15  ;;  %v635_v29 = vpop.f32.mrb[22].mxu0  ;;  %v2328_v30 = vpop.f32.mrb[22].mxu1 }
 0x121   : > { %1062 = vst.msk [vmem:[%s2221_s6 + $0x28] sm:$0xf] %vm1051_vm2, %v1695_v21  ;;  %v1305_v31 = vsel %vm1109_vm3, %v1239_v24, 0.0  ;;  %v1696_v32 = vpack.c.bf16 %v635_v29, %v635_v29  ;;  %v1131_v33 = vsel %vm1109_vm3, %v635_v29, 0.0  ;;  %v1240_v34 = vmul.f32 %v635_v29, %v635_v29  ;;  %v1806_v37 = vpop.f32.mrb[23].mxu0  ;;  %v1866_v38 = vpop.f32.mrb[23].mxu1 }
 0x122   : > { %1092 = vst.msk [vmem:[%s2221_s6 + $0xa0] sm:$0xf] %vm1051_vm2, %v1725_v26  ;;  %v1306_v39 = vadd.f32 %v1305_v31, %v1304_v18  ;;  %v1132_v40 = vadd.f32 %v1131_v33, %v1130_v28  ;;  %v1726_v41 = vpack.c.bf16 %v2328_v30, %v2328_v30 }
 0x123   : > { %1063 = vst.msk [vmem:[%s2221_s6 + $0x2c] sm:$0xf] %vm1051_vm2, %v1696_v32  ;;  %v1307_v43 = vsel %vm1109_vm3, %v1240_v34, 0.0 }
 0x124   : > { %v1308_v44 = vadd.f32 %v1307_v43, %v1306_v39  ;;  %1093 = vst.msk [vmem:[%s2221_s6 + $0xa4] sm:$0xf] %vm1051_vm2, %v1726_v41 }
 0x126   : > { %v640_v45 = vpop.f32.mrb[24].mxu0  ;;  %v2343_v47 = vpop.f32.mrb[24].mxu1 }
 0x127   : > { %v1697_v48 = vpack.c.bf16 %v640_v45, %v640_v45  ;;  %v1133_v49 = vsel %vm1109_vm3, %v640_v45, 0.0  ;;  %v1241_v50 = vmul.f32 %v640_v45, %v640_v45  ;;  %v1809_v51 = vpop.f32.mrb[25].mxu0  ;;  %v1727_v52 = vpack.c.bf16 %v2343_v47, %v2343_v47  ;;  %v1869_v53 = vpop.f32.mrb[25].mxu1 }
 0x128   : > { %v1134_v54 = vadd.f32 %v1133_v49, %v1132_v40  ;;  %v643_v56 = vpop.f32.mrb[26].mxu0  ;;  %v2348_v57 = vpop.f32.mrb[26].mxu1 }
 0x129   : > { %1064 = vst.msk [vmem:[%s2221_s6 + $0x30] sm:$0xf] %vm1051_vm2, %v1697_v48  ;;  %v1309_v58 = vsel %vm1109_vm3, %v1241_v50, 0.0  ;;  %v1698_v59 = vpack.c.bf16 %v643_v56, %v643_v56  ;;  %v1135_v61 = vsel %vm1109_vm3, %v643_v56, 0.0  ;;  %v1242_v62 = vmul.f32 %v643_v56, %v643_v56  ;;  %v1810_v63 = vpop.f32.mrb[27].mxu0  ;;  %v1870_v1 = vpop.f32.mrb[27].mxu1 }
 0x12a   : > { %1094 = vst.msk [vmem:[%s2221_s6 + $0xa8] sm:$0xf] %vm1051_vm2, %v1727_v52  ;;  %v1310_v2 = vadd.f32 %v1309_v58, %v1308_v44  ;;  %v1136_v3 = vadd.f32 %v1135_v61, %v1134_v54  ;;  %v1728_v4 = vpack.c.bf16 %v2348_v57, %v2348_v57 }
 0x12b   : > { %1065 = vst.msk [vmem:[%s2221_s6 + $0x34] sm:$0xf] %vm1051_vm2, %v1698_v59  ;;  %v1311_v5 = vsel %vm1109_vm3, %v1242_v62, 0.0 }
 0x12c   : > { %v1312_v7 = vadd.f32 %v1311_v5, %v1310_v2  ;;  %1095 = vst.msk [vmem:[%s2221_s6 + $0xac] sm:$0xf] %vm1051_vm2, %v1728_v4 }
 0x12e   : > { %v648_v8 = vpop.f32.mrb[28].mxu0  ;;  %v2363_v9 = vpop.f32.mrb[28].mxu1 }
 0x12f   : > { %v1699_v10 = vpack.c.bf16 %v648_v8, %v648_v8  ;;  %v1137_v11 = vsel %vm1109_vm3, %v648_v8, 0.0  ;;  %v1243_v12 = vmul.f32 %v648_v8, %v648_v8  ;;  %v1813_v14 = vpop.f32.mrb[29].mxu0  ;;  %v1729_v15 = vpack.c.bf16 %v2363_v9, %v2363_v9  ;;  %v1873_v16 = vpop.f32.mrb[29].mxu1 }
 0x130   : > { %v1138_v17 = vadd.f32 %v1137_v11, %v1136_v3  ;;  %v651_v18 = vpop.f32.mrb[30].mxu0  ;;  %v2368_v19 = vpop.f32.mrb[30].mxu1 }
 0x131   : > { %1066 = vst.msk [vmem:[%s2221_s6 + $0x38] sm:$0xf] %vm1051_vm2, %v1699_v10  ;;  %v1313_v21 = vsel %vm1109_vm3, %v1243_v12, 0.0  ;;  %v1700_v23 = vpack.c.bf16 %v651_v18, %v651_v18  ;;  %v1139_v24 = vsel %vm1109_vm3, %v651_v18, 0.0  ;;  %v1244_v25 = vmul.f32 %v651_v18, %v651_v18  ;;  %v1814_v26 = vpop.f32.mrb[31].mxu0  ;;  %v1874_v27 = vpop.f32.mrb[31].mxu1 }
 0x132   : > { %1096 = vst.msk [vmem:[%s2221_s6 + $0xb0] sm:$0xf] %vm1051_vm2, %v1729_v15  ;;  %v1314_v28 = vadd.f32 %v1313_v21, %v1312_v7  ;;  %v1140_v29 = vadd.f32 %v1139_v24, %v1138_v17  ;;  %v1730_v31 = vpack.c.bf16 %v2368_v19, %v2368_v19 }
 0x133   : > { %1067 = vst.msk [vmem:[%s2221_s6 + $0x3c] sm:$0xf] %vm1051_vm2, %v1700_v23  ;;  %v1315_v32 = vsel %vm1109_vm3, %v1244_v25, 0.0 }
 0x134   : > { %v1316_v33 = vadd.f32 %v1315_v32, %v1314_v28  ;;  %1097 = vst.msk [vmem:[%s2221_s6 + $0xb4] sm:$0xf] %vm1051_vm2, %v1730_v31 }
 0x136   : > { %v656_v34 = vpop.f32.mrb[32].mxu0  ;;  %v2383_v37 = vpop.f32.mrb[32].mxu1 }
 0x137   : > { %v1701_v38 = vpack.c.bf16 %v656_v34, %v656_v34  ;;  %v1141_v39 = vsel %vm1109_vm3, %v656_v34, 0.0  ;;  %v1245_v40 = vmul.f32 %v656_v34, %v656_v34  ;;  %v1817_v41 = vpop.f32.mrb[33].mxu0  ;;  %v1731_v43 = vpack.c.bf16 %v2383_v37, %v2383_v37  ;;  %v1877_v44 = vpop.f32.mrb[33].mxu1 }
 0x138   : > { %v1142_v45 = vadd.f32 %v1141_v39, %v1140_v29  ;;  %v659_v48 = vpop.f32.mrb[34].mxu0  ;;  %v2388_v49 = vpop.f32.mrb[34].mxu1 }
 0x139   : > { %1068 = vst.msk [vmem:[%s2221_s6 + $0x40] sm:$0xf] %vm1051_vm2, %v1701_v38  ;;  %v1317_v50 = vsel %vm1109_vm3, %v1245_v40, 0.0  ;;  %v1702_v51 = vpack.c.bf16 %v659_v48, %v659_v48  ;;  %v1143_v52 = vsel %vm1109_vm3, %v659_v48, 0.0  ;;  %v1246_v53 = vmul.f32 %v659_v48, %v659_v48  ;;  %v1818_v54 = vpop.f32.mrb[35].mxu0  ;;  %v1878_v56 = vpop.f32.mrb[35].mxu1 }
 0x13a   : > { %1098 = vst.msk [vmem:[%s2221_s6 + $0xb8] sm:$0xf] %vm1051_vm2, %v1731_v43  ;;  %v1318_v58 = vadd.f32 %v1317_v50, %v1316_v33  ;;  %v1144_v59 = vadd.f32 %v1143_v52, %v1142_v45  ;;  %v1732_v61 = vpack.c.bf16 %v2388_v49, %v2388_v49 }
 0x13b   : > { %1069 = vst.msk [vmem:[%s2221_s6 + $0x44] sm:$0xf] %vm1051_vm2, %v1702_v51  ;;  %v1319_v62 = vsel %vm1109_vm3, %v1246_v53, 0.0 }
 0x13c   : > { %v1320_v63 = vadd.f32 %v1319_v62, %v1318_v58  ;;  %1099 = vst.msk [vmem:[%s2221_s6 + $0xbc] sm:$0xf] %vm1051_vm2, %v1732_v61 }
 0x13e   : > { %v664_v1 = vpop.f32.mrb[36].mxu0  ;;  %v2403_v2 = vpop.f32.mrb[36].mxu1 }
 0x13f   : > { %v1703_v3 = vpack.c.bf16 %v664_v1, %v664_v1  ;;  %v1145_v4 = vsel %vm1109_vm3, %v664_v1, 0.0  ;;  %v1247_v5 = vmul.f32 %v664_v1, %v664_v1  ;;  %v1821_v7 = vpop.f32.mrb[37].mxu0  ;;  %v1733_v8 = vpack.c.bf16 %v2403_v2, %v2403_v2  ;;  %v1881_v10 = vpop.f32.mrb[37].mxu1 }
 0x140   : > { %v1146_v11 = vadd.f32 %v1145_v4, %v1144_v59  ;;  %v667_v12 = vpop.f32.mrb[38].mxu0  ;;  %v2408_v14 = vpop.f32.mrb[38].mxu1 }
 0x141   : > { %1070 = vst.msk [vmem:[%s2221_s6 + $0x48] sm:$0xf] %vm1051_vm2, %v1703_v3  ;;  %v1321_v15 = vsel %vm1109_vm3, %v1247_v5, 0.0  ;;  %v1704_v16 = vpack.c.bf16 %v667_v12, %v667_v12  ;;  %v1147_v17 = vsel %vm1109_vm3, %v667_v12, 0.0  ;;  %v1248_v18 = vmul.f32 %v667_v12, %v667_v12  ;;  %v1822_v21 = vpop.f32.mrb[39].mxu0  ;;  %v1882_v23 = vpop.f32.mrb[39].mxu1 }
 0x142   : > { %1100 = vst.msk [vmem:[%s2221_s6 + $0xc0] sm:$0xf] %vm1051_vm2, %v1733_v8  ;;  %v1322_v24 = vadd.f32 %v1321_v15, %v1320_v63  ;;  %v1148_v25 = vadd.f32 %v1147_v17, %v1146_v11  ;;  %v1734_v26 = vpack.c.bf16 %v2408_v14, %v2408_v14 }
 0x143   : > { %1071 = vst.msk [vmem:[%s2221_s6 + $0x4c] sm:$0xf] %vm1051_vm2, %v1704_v16  ;;  %v1323_v27 = vsel %vm1109_vm3, %v1248_v18, 0.0 }
 0x144   : > { %v1324_v28 = vadd.f32 %v1323_v27, %v1322_v24  ;;  %1101 = vst.msk [vmem:[%s2221_s6 + $0xc4] sm:$0xf] %vm1051_vm2, %v1734_v26 }
 0x146   : > { %v672_v29 = vpop.f32.mrb[40].mxu0  ;;  %v2423_v31 = vpop.f32.mrb[40].mxu1 }
 0x147   : > { %v1705_v32 = vpack.c.bf16 %v672_v29, %v672_v29  ;;  %v1149_v33 = vsel %vm1109_vm3, %v672_v29, 0.0  ;;  %v1249_v34 = vmul.f32 %v672_v29, %v672_v29  ;;  %v1825_v38 = vpop.f32.mrb[41].mxu0  ;;  %v1735_v39 = vpack.c.bf16 %v2423_v31, %v2423_v31  ;;  %v1885_v40 = vpop.f32.mrb[41].mxu1 }
 0x148   : > { %v1150_v41 = vadd.f32 %v1149_v33, %v1148_v25  ;;  %v675_v43 = vpop.f32.mrb[42].mxu0  ;;  %v2428_v44 = vpop.f32.mrb[42].mxu1 }
 0x149   : > { %1072 = vst.msk [vmem:[%s2221_s6 + $0x50] sm:$0xf] %vm1051_vm2, %v1705_v32  ;;  %v1325_v45 = vsel %vm1109_vm3, %v1249_v34, 0.0  ;;  %v1706_v48 = vpack.c.bf16 %v675_v43, %v675_v43  ;;  %v1151_v50 = vsel %vm1109_vm3, %v675_v43, 0.0  ;;  %v1250_v51 = vmul.f32 %v675_v43, %v675_v43  ;;  %v1826_v52 = vpop.f32.mrb[43].mxu0  ;;  %v1886_v53 = vpop.f32.mrb[43].mxu1 }
 0x14a   : > { %1102 = vst.msk [vmem:[%s2221_s6 + $0xc8] sm:$0xf] %vm1051_vm2, %v1735_v39  ;;  %v1326_v54 = vadd.f32 %v1325_v45, %v1324_v28  ;;  %v1152_v56 = vadd.f32 %v1151_v50, %v1150_v41  ;;  %v1736_v58 = vpack.c.bf16 %v2428_v44, %v2428_v44 }
 0x14b   : > { %1073 = vst.msk [vmem:[%s2221_s6 + $0x54] sm:$0xf] %vm1051_vm2, %v1706_v48  ;;  %v1327_v59 = vsel %vm1109_vm3, %v1250_v51, 0.0 }
 0x14c   : > { %v1328_v61 = vadd.f32 %v1327_v59, %v1326_v54  ;;  %1103 = vst.msk [vmem:[%s2221_s6 + $0xcc] sm:$0xf] %vm1051_vm2, %v1736_v58 }
 0x14e   : > { %v680_v62 = vpop.f32.mrb[44].mxu0  ;;  %v2443_v63 = vpop.f32.mrb[44].mxu1 }
 0x14f   : > { %v1707_v1 = vpack.c.bf16 %v680_v62, %v680_v62  ;;  %v1153_v3 = vsel %vm1109_vm3, %v680_v62, 0.0  ;;  %v1251_v4 = vmul.f32 %v680_v62, %v680_v62  ;;  %v1829_v5 = vpop.f32.mrb[45].mxu0  ;;  %v1737_v7 = vpack.c.bf16 %v2443_v63, %v2443_v63  ;;  %v1889_v8 = vpop.f32.mrb[45].mxu1 }
 0x150   : > { %v1154_v10 = vadd.f32 %v1153_v3, %v1152_v56  ;;  %v683_v11 = vpop.f32.mrb[46].mxu0  ;;  %v2448_v12 = vpop.f32.mrb[46].mxu1 }
 0x151   : > { %1074 = vst.msk [vmem:[%s2221_s6 + $0x58] sm:$0xf] %vm1051_vm2, %v1707_v1  ;;  %v1329_v15 = vsel %vm1109_vm3, %v1251_v4, 0.0  ;;  %v1708_v16 = vpack.c.bf16 %v683_v11, %v683_v11  ;;  %v1155_v17 = vsel %vm1109_vm3, %v683_v11, 0.0  ;;  %v1252_v18 = vmul.f32 %v683_v11, %v683_v11  ;;  %v1830_v21 = vpop.f32.mrb[47].mxu0  ;;  %v1890_v23 = vpop.f32.mrb[47].mxu1 }
 0x152   : > { %1104 = vst.msk [vmem:[%s2221_s6 + $0xd0] sm:$0xf] %vm1051_vm2, %v1737_v7  ;;  %v1330_v24 = vadd.f32 %v1329_v15, %v1328_v61  ;;  %v1156_v25 = vadd.f32 %v1155_v17, %v1154_v10  ;;  %v1738_v26 = vpack.c.bf16 %v2448_v12, %v2448_v12 }
 0x153   : > { %1075 = vst.msk [vmem:[%s2221_s6 + $0x5c] sm:$0xf] %vm1051_vm2, %v1708_v16  ;;  %v1331_v27 = vsel %vm1109_vm3, %v1252_v18, 0.0 }
 0x154   : > { %v1332_v28 = vadd.f32 %v1331_v27, %v1330_v24  ;;  %1105 = vst.msk [vmem:[%s2221_s6 + $0xd4] sm:$0xf] %vm1051_vm2, %v1738_v26 }
 0x156   : > { %v688_v29 = vpop.f32.mrb[48].mxu0  ;;  %v2463_v32 = vpop.f32.mrb[48].mxu1 }
 0x157   : > { %v1709_v33 = vpack.c.bf16 %v688_v29, %v688_v29  ;;  %v1157_v34 = vsel %vm1109_vm3, %v688_v29, 0.0  ;;  %v1253_v38 = vmul.f32 %v688_v29, %v688_v29  ;;  %v1833_v39 = vpop.f32.mrb[49].mxu0  ;;  %v1739_v40 = vpack.c.bf16 %v2463_v32, %v2463_v32  ;;  %v1893_v41 = vpop.f32.mrb[49].mxu1 }
 0x158   : > { %v1158_v43 = vadd.f32 %v1157_v34, %v1156_v25  ;;  %v691_v45 = vpop.f32.mrb[50].mxu0  ;;  %v2468_v48 = vpop.f32.mrb[50].mxu1 }
 0x159   : > { %1076 = vst.msk [vmem:[%s2221_s6 + $0x60] sm:$0xf] %vm1051_vm2, %v1709_v33  ;;  %v1333_v50 = vsel %vm1109_vm3, %v1253_v38, 0.0  ;;  %v1710_v51 = vpack.c.bf16 %v691_v45, %v691_v45  ;;  %v1159_v52 = vsel %vm1109_vm3, %v691_v45, 0.0  ;;  %v1254_v53 = vmul.f32 %v691_v45, %v691_v45  ;;  %v1834_v54 = vpop.f32.mrb[51].mxu0  ;;  %v1894_v56 = vpop.f32.mrb[51].mxu1 }
 0x15a   : > { %1106 = vst.msk [vmem:[%s2221_s6 + $0xd8] sm:$0xf] %vm1051_vm2, %v1739_v40  ;;  %v1334_v58 = vadd.f32 %v1333_v50, %v1332_v28  ;;  %v1160_v59 = vadd.f32 %v1159_v52, %v1158_v43  ;;  %v1740_v61 = vpack.c.bf16 %v2468_v48, %v2468_v48  ;;  %v1259_v45 = vmul.f32 %v2223_v35, %v2223_v35 }
 0x15b   : > { %1077 = vst.msk [vmem:[%s2221_s6 + $0x64] sm:$0xf] %vm1051_vm2, %v1710_v51  ;;  %v1335_v62 = vsel %vm1109_vm3, %v1254_v53, 0.0 }
 0x15c   : > { %v1336_v1 = vadd.f32 %v1335_v62, %v1334_v58  ;;  %1107 = vst.msk [vmem:[%s2221_s6 + $0xdc] sm:$0xf] %vm1051_vm2, %v1740_v61  ;;  %v1169_v62 = vsel %vm1109_vm3, %v2223_v35, 0.0 }
 0x15e   : > { %v696_v3 = vpop.f32.mrb[52].mxu0  ;;  %v2483_v4 = vpop.f32.mrb[52].mxu1 }
 0x15f   : > { %v1711_v5 = vpack.c.bf16 %v696_v3, %v696_v3  ;;  %v1161_v7 = vsel %vm1109_vm3, %v696_v3, 0.0  ;;  %v1255_v8 = vmul.f32 %v696_v3, %v696_v3  ;;  %v1837_v10 = vpop.f32.mrb[53].mxu0  ;;  %v1741_v11 = vpack.c.bf16 %v2483_v4, %v2483_v4  ;;  %v1897_v15 = vpop.f32.mrb[53].mxu1 }
 0x160   : > { %v1162_v16 = vadd.f32 %v1161_v7, %v1160_v59  ;;  %v699_v17 = vpop.f32.mrb[54].mxu0  ;;  %v819_v18 = vpop.f32.mrb[54].mxu1  ;;  %v1171_v10 = vsel %vm1109_vm3, %v2227_v42, 0.0 }
 0x161   : > { %1078 = vst.msk [vmem:[%s2221_s6 + $0x68] sm:$0xf] %vm1051_vm2, %v1711_v5  ;;  %v1337_v21 = vsel %vm1109_vm3, %v1255_v8, 0.0  ;;  %v1712_v23 = vpack.c.bf16 %v699_v17, %v699_v17  ;;  %v1163_v24 = vsel %vm1109_vm3, %v699_v17, 0.0  ;;  %v1256_v25 = vmul.f32 %v699_v17, %v699_v17  ;;  %v1838_v26 = vpop.f32.mrb[55].mxu0  ;;  %v1898_v27 = vpop.f32.mrb[55].mxu1 }
 0x162   : > { %1108 = vst.msk [vmem:[%s2221_s6 + $0xe0] sm:$0xf] %vm1051_vm2, %v1741_v11  ;;  %v1338_v28 = vadd.f32 %v1337_v21, %v1336_v1  ;;  %v1164_v29 = vadd.f32 %v1163_v24, %v1162_v16  ;;  %v1260_v1 = vmul.f32 %v2227_v42, %v2227_v42  ;;  %v1345_v8 = vsel %vm1109_vm3, %v1259_v45, 0.0 }
 0x163   : > { %1079 = vst.msk [vmem:[%s2221_s6 + $0x6c] sm:$0xf] %vm1051_vm2, %v1712_v23  ;;  %v1339_v33 = vsel %vm1109_vm3, %v1256_v25, 0.0  ;;  %v1261_v11 = vmul.f32 %v2243_v55, %v2243_v55  ;;  %v1173_v17 = vsel %vm1109_vm3, %v2243_v55, 0.0  ;;  %v1262_v18 = vmul.f32 %v2248_v0, %v2248_v0 }
 0x164   : > { %v1340_v34 = vadd.f32 %v1339_v33, %v1338_v28  ;;  %v1347_v35 = vsel %vm1109_vm3, %v1260_v1, 0.0  ;;  %v1175_v42 = vsel %vm1109_vm3, %v2248_v0, 0.0  ;;  %v1263_v25 = vmul.f32 %v2263_v13, %v2263_v13 }
 0x165   : > { %v1349_v24 = vsel %vm1109_vm3, %v1261_v11, 0.0  ;;  %v1351_v28 = vsel %vm1109_vm3, %v1262_v18, 0.0  ;;  %v1177_v55 = vsel %vm1109_vm3, %v2263_v13, 0.0  ;;  %v1179_v0 = vsel %vm1109_vm3, %v2268_v22, 0.0 }
 0x166   : > { %v704_v38 = vpop.f32.mrb[56].mxu0  ;;  %v1181_v13 = vsel %vm1109_vm3, %v2283_v36, 0.0  ;;  %v1266_v45 = vmul.f32 %v2288_v46, %v2288_v46 }
 0x167   : > { %v1713_v39 = vpack.c.bf16 %v704_v38, %v704_v38  ;;  %v1165_v40 = vsel %vm1109_vm3, %v704_v38, 0.0  ;;  %v1257_v41 = vmul.f32 %v704_v38, %v704_v38  ;;  %v1841_v43 = vpop.f32.mrb[57].mxu0  ;;  %v1353_v38 = vsel %vm1109_vm3, %v1263_v25, 0.0 }
 0x168   : > { %v1166_v50 = vadd.f32 %v1165_v40, %v1164_v29  ;;  %v707_v51 = vpop.f32.mrb[58].mxu0  ;;  %v1264_v29 = vmul.f32 %v2268_v22, %v2268_v22  ;;  %v1183_v22 = vsel %vm1109_vm3, %v2288_v46, 0.0  ;;  %v1187_v46 = vsel %vm1109_vm3, %v2308_v6, 0.0 }
 0x169   : > { %1080 = vst.msk [vmem:[%s2221_s6 + $0x70] sm:$0xf] %vm1051_vm2, %v1713_v39  ;;  %v1341_v52 = vsel %vm1109_vm3, %v1257_v41, 0.0  ;;  %v1714_v53 = vpack.c.bf16 %v707_v51, %v707_v51  ;;  %v1167_v54 = vsel %vm1109_vm3, %v707_v51, 0.0  ;;  %v1258_v56 = vmul.f32 %v707_v51, %v707_v51  ;;  %v1842_v58 = vpop.f32.mrb[59].mxu0 }
 0x16a   : > { %v1342_v59 = vadd.f32 %v1341_v52, %v1340_v34  ;;  %v1168_v61 = vadd.f32 %v1167_v54, %v1166_v50  ;;  %v1265_v39 = vmul.f32 %v2283_v36, %v2283_v36  ;;  %v1355_v43 = vsel %vm1109_vm3, %v1264_v29, 0.0 }
 0x16b   : > { %1081 = vst.msk [vmem:[%s2221_s6 + $0x74] sm:$0xf] %vm1051_vm2, %v1714_v53  ;;  %v1343_v3 = vsel %vm1109_vm3, %v1258_v56, 0.0  ;;  %v1267_v53 = vmul.f32 %v2303_v60, %v2303_v60  ;;  %v1359_v58 = vsel %vm1109_vm3, %v1266_v45, 0.0  ;;  %v1185_v36 = vsel %vm1109_vm3, %v2303_v60, 0.0 }
 0x16c   : > { %v1170_v5 = vadd.f32 %v1169_v62, %v1168_v61  ;;  %v1344_v7 = vadd.f32 %v1343_v3, %v1342_v59  ;;  %v1357_v52 = vsel %vm1109_vm3, %v1265_v39, 0.0  ;;  %v1268_v59 = vmul.f32 %v2308_v6, %v2308_v6 }
 0x16d   : > { %v1361_v1 = vsel %vm1109_vm3, %v1267_v53, 0.0  ;;  %v1269_v3 = vmul.f32 %v2323_v20, %v2323_v20  ;;  %v1189_v60 = vsel %vm1109_vm3, %v2323_v20, 0.0  ;;  %v1191_v6 = vsel %vm1109_vm3, %v2328_v30, 0.0 }
 0x16e   : > { %v1172_v15 = vadd.f32 %v1171_v10, %v1170_v5  ;;  %v1346_v16 = vadd.f32 %v1345_v8, %v1344_v7  ;;  %v1363_v8 = vsel %vm1109_vm3, %v1268_v59, 0.0  ;;  %v1270_v10 = vmul.f32 %v2328_v30, %v2328_v30 }
 0x16f   : > { %v1193_v20 = vsel %vm1109_vm3, %v2343_v47, 0.0  ;;  %v1195_v30 = vsel %vm1109_vm3, %v2348_v57, 0.0  ;;  %v1274_v29 = vmul.f32 %v2368_v19, %v2368_v19  ;;  %v1279_v59 = vmul.f32 %v2423_v31, %v2423_v31 }
 0x170   : > { %v1174_v21 = vadd.f32 %v1173_v17, %v1172_v15  ;;  %v1348_v23 = vadd.f32 %v1347_v35, %v1346_v16  ;;  %v1365_v16 = vsel %vm1109_vm3, %v1269_v3, 0.0  ;;  %v1271_v35 = vmul.f32 %v2343_v47, %v2343_v47 }
 0x171   : > { %v1197_v47 = vsel %vm1109_vm3, %v2363_v9, 0.0 }
 0x172   : > { %v1176_v26 = vadd.f32 %v1175_v42, %v1174_v21  ;;  %v1350_v27 = vadd.f32 %v1349_v24, %v1348_v23  ;;  %v1367_v21 = vsel %vm1109_vm3, %v1270_v10, 0.0  ;;  %v1272_v23 = vmul.f32 %v2348_v57, %v2348_v57 }
 0x173   : > { %v1369_v25 = vsel %vm1109_vm3, %v1271_v35, 0.0  ;;  %v1199_v57 = vsel %vm1109_vm3, %v2368_v19, 0.0  ;;  %v1203_v19 = vsel %vm1109_vm3, %v2388_v49, 0.0 }
 0x174   : > { %v1178_v33 = vadd.f32 %v1177_v55, %v1176_v26  ;;  %v1352_v34 = vadd.f32 %v1351_v28, %v1350_v27  ;;  %v1273_v26 = vmul.f32 %v2363_v9, %v2363_v9  ;;  %v1371_v55 = vsel %vm1109_vm3, %v1272_v23, 0.0 }
 0x175   : > { %v1201_v9 = vsel %vm1109_vm3, %v2383_v37, 0.0  ;;  %v1284_v23 = vmul.f32 %v2468_v48, %v2468_v48 }
 0x176   : > { %v1180_v40 = vadd.f32 %v1179_v0, %v1178_v33  ;;  %v1354_v41 = vadd.f32 %v1353_v38, %v1352_v34  ;;  %v1373_v38 = vsel %vm1109_vm3, %v1273_v26, 0.0  ;;  %v1275_v0 = vmul.f32 %v2383_v37, %v2383_v37 }
 0x177   : > { %v1205_v37 = vsel %vm1109_vm3, %v2403_v2, 0.0  ;;  %v1221_v26 = vsel %vm1109_vm3, %v2483_v4, 0.0 }
 0x178   : > { %v1182_v50 = vadd.f32 %v1181_v13, %v1180_v40  ;;  %v1356_v51 = vadd.f32 %v1355_v43, %v1354_v41  ;;  %v1375_v41 = vsel %vm1109_vm3, %v1274_v29, 0.0  ;;  %v1276_v43 = vmul.f32 %v2388_v49, %v2388_v49 }
 0x179   : > { %v1207_v49 = vsel %vm1109_vm3, %v2408_v14, 0.0 }
 0x17a   : > { %v1358_v54 = vadd.f32 %v1357_v52, %v1356_v51  ;;  %v1184_v56 = vadd.f32 %v1183_v22, %v1182_v50  ;;  %v1377_v50 = vsel %vm1109_vm3, %v1275_v0, 0.0  ;;  %v1277_v51 = vmul.f32 %v2403_v2, %v2403_v2 }
 0x17b   : > { %v1379_v53 = vsel %vm1109_vm3, %v1276_v43, 0.0  ;;  %v1209_v2 = vsel %vm1109_vm3, %v2423_v31, 0.0  ;;  %v1213_v31 = vsel %vm1109_vm3, %v2443_v63, 0.0 }
 0x17c   : > { %v1186_v61 = vadd.f32 %v1185_v36, %v1184_v56  ;;  %v1360_v62 = vadd.f32 %v1359_v58, %v1358_v54  ;;  %v1278_v54 = vmul.f32 %v2408_v14, %v2408_v14  ;;  %v1381_v36 = vsel %vm1109_vm3, %v1277_v51, 0.0 }
 0x17d   : > { %v1211_v14 = vsel %vm1109_vm3, %v2428_v44, 0.0 }
 0x17e   : > { %v1188_v5 = vadd.f32 %v1187_v46, %v1186_v61  ;;  %v1362_v7 = vadd.f32 %v1361_v1, %v1360_v62  ;;  %v1383_v1 = vsel %vm1109_vm3, %v1278_v54, 0.0  ;;  %v1280_v46 = vmul.f32 %v2428_v44, %v2428_v44 }
 0x17f   : > { %v1215_v44 = vsel %vm1109_vm3, %v2448_v12, 0.0 }
 0x180   : > { %v1190_v11 = vadd.f32 %v1189_v60, %v1188_v5  ;;  %v1364_v15 = vadd.f32 %v1363_v8, %v1362_v7  ;;  %v1385_v7 = vsel %vm1109_vm3, %v1279_v59, 0.0  ;;  %v1281_v8 = vmul.f32 %v2443_v63, %v2443_v63 }
 0x181   : > { %v1217_v63 = vsel %vm1109_vm3, %v2463_v32, 0.0 }
 0x182   : > { %v1192_v17 = vadd.f32 %v1191_v6, %v1190_v11  ;;  %v1366_v18 = vadd.f32 %v1365_v16, %v1364_v15  ;;  %v1387_v11 = vsel %vm1109_vm3, %v1280_v46, 0.0  ;;  %v1282_v15 = vmul.f32 %v2448_v12, %v2448_v12 }
 0x183   : > { %v1389_v35 = vsel %vm1109_vm3, %v1281_v8, 0.0 }
 0x184   : > { %v1194_v24 = vadd.f32 %v1193_v20, %v1192_v17  ;;  %v1368_v42 = vadd.f32 %v1367_v21, %v1366_v18  ;;  %v1283_v17 = vmul.f32 %v2463_v32, %v2463_v32  ;;  %v1391_v20 = vsel %vm1109_vm3, %v1282_v15, 0.0 }
 0x186   : > { %v1196_v27 = vadd.f32 %v1195_v30, %v1194_v24  ;;  %v1370_v28 = vadd.f32 %v1369_v25, %v1368_v42  ;;  %v1285_v24 = vmul.f32 %v2483_v4, %v2483_v4  ;;  %v1393_v12 = vsel %vm1109_vm3, %v1283_v17, 0.0 }
 0x187   : > { %v1219_v30 = vsel %vm1109_vm3, %v2468_v48, 0.0 }
 0x188   : > { %v1198_v33 = vadd.f32 %v1197_v47, %v1196_v27  ;;  %v1372_v34 = vadd.f32 %v1371_v55, %v1370_v28  ;;  %v1395_v28 = vsel %vm1109_vm3, %v1284_v23, 0.0  ;;  %v1397_v55 = vsel %vm1109_vm3, %v1285_v24, 0.0 }
 0x18a   : > { %v1374_v39 = vadd.f32 %v1373_v38, %v1372_v34  ;;  %v1200_v40 = vadd.f32 %v1199_v57, %v1198_v33 }
 0x18c   : > { %v1376_v13 = vadd.f32 %v1375_v41, %v1374_v39  ;;  %v1202_v45 = vadd.f32 %v1201_v9, %v1200_v40 }
 0x18e   : > { %v1378_v52 = vadd.f32 %v1377_v50, %v1376_v13  ;;  %v1204_v22 = vadd.f32 %v1203_v19, %v1202_v45 }
 0x190   : > { %v1380_v56 = vadd.f32 %v1379_v53, %v1378_v52  ;;  %v1206_v58 = vadd.f32 %v1205_v37, %v1204_v22 }
 0x192   : > { %v1382_v61 = vadd.f32 %v1381_v36, %v1380_v56  ;;  %v1208_v62 = vadd.f32 %v1207_v49, %v1206_v58 }
 0x194   : > { %v1384_v3 = vadd.f32 %v1383_v1, %v1382_v61  ;;  %v1210_v5 = vadd.f32 %v1209_v2, %v1208_v62 }
 0x196   : > { %v1386_v60 = vadd.f32 %v1385_v7, %v1384_v3  ;;  %v1212_v10 = vadd.f32 %v1211_v14, %v1210_v5 }
 0x198   : > { %v1388_v16 = vadd.f32 %v1387_v11, %v1386_v60  ;;  %v1214_v6 = vadd.f32 %v1213_v31, %v1212_v10 }
 0x19a   : > { %v1390_v18 = vadd.f32 %v1389_v35, %v1388_v16  ;;  %v1216_v21 = vadd.f32 %v1215_v44, %v1214_v6 }
 0x19c   : > { %v1392_v42 = vadd.f32 %v1391_v20, %v1390_v18  ;;  %v1218_v25 = vadd.f32 %v1217_v63, %v1216_v21 }
 0x19e   : > { %v1394_v27 = vadd.f32 %v1393_v12, %v1392_v42  ;;  %v1220_v32 = vadd.f32 %v1219_v30, %v1218_v25 }
 0x1a0   : > { %v1396_v47 = vadd.f32 %v1395_v28, %v1394_v27  ;;  %v1222_v29 = vadd.f32 %v1221_v26, %v1220_v32 }
 0x1a2   : > { %v1223_v33 = vrot.slane %v1222_v29, 4  ;;  %v1398_v34 = vadd.f32 %v1397_v55, %v1396_v47 }
 0x1a4   : > { %v1224_v38 = vadd.f32 %v1223_v33, %v1222_v29  ;;  %v1399_v57 = vrot.slane %v1398_v34, 4 }
 0x1a6   : > { %v1225_v48 = vrot.slane %v1224_v38, 2  ;;  %v1400_v0 = vadd.f32 %v1399_v57, %v1398_v34 }
 0x1a8   : > { %v1226_v39 = vadd.f32 %v1225_v48, %v1224_v38  ;;  %v1401_v40 = vrot.slane %v1400_v0, 2 }
 0x1aa   : > { %v1227_v4 = vrot.slane %v1226_v39, 1  ;;  %v1402_v41 = vadd.f32 %v1401_v40, %v1400_v0 }
 0x1ac   : > { %v1403_v9 = vrot.slane %v1402_v41, 1  ;;  %v1228_v43 = vadd.f32 %v1227_v4, %v1226_v39 }
 0x1ae   : > { %v1404_v13 = vadd.f32 %v1403_v9, %v1402_v41 }
 0x1b0   : > { %v1406_v45 = vsel %vm1405_vm4, %v1228_v43, %v1404_v13 }
 0x1b1   : > { %1408 = vst.msk [vmem:[%s236_s19] sm:$0x3] %vm1407_vm5, %v1406_v45 }
 0x1b2 PF: > { %s14_s16 = sadd.s32 1, %s2021_s16   ;;  %s2665_s12 = smov %s2013_s14 }
 0x1b3   : > { %p11_p8 = scmp.ge.s32.totalorder %s14_s16, 10   ;;  %s2666_s13 = smov %s2017_s15 }
 0x1b4   : > { %s2667_s14 = smov %s2670_s17  ;;  %s2668_s15 = smov %s2674_s18 }
 0x1b5   :  { %13 = sbr.rel (!%p11_p8) target bundleno = 3 (0x3), region = 73 }

// kernel: module_forward.3
= control target key start
LH: loop header
LB: loop body
LE: loop exit
PB: predicated region body
PF: predicated region fallthrough
CT: control target
= control target key end

     0   :  { %s3993_s18 = smov 0   ;;  %s3995_s19 = smov 0   ;;  %s5147_s0 = inlined_call_operand.vmem [shape: bf16[4,912,16], index: 0, kind: input, shape index: {}]   ;;  %s5148_s1 = inlined_call_operand.vmem [shape: f32[456,1], index: 1, kind: input, shape index: {}]   ;;  %s5149_s2 = inlined_call_operand.vmem [shape: f32[4,1,16], index: 2, kind: input, shape index: {}]   ;;  %s5150_s3 = inlined_call_operand.vmem [shape: f32[4,1,16], index: 3, kind: input, shape index: {}]   ;;  %s5151_s4 = inlined_call_operand.vmem [shape: bf16[4,3,48,128], index: 4, kind: input, shape index: {}]   ;;  %s5152_s5 = inlined_call_operand.vmem [shape: f32[2,4,384,128], index: 5, kind: output, shape index: {}]  }
   0x1   :  { %s3997_s20 = smov 0   ;;  %s3999_s21 = smov 0  }
   0x2   :  { %s4001_s22 = smov 0  }
   0x3 LB: > { %s24_s23 = sadd.s32 1, %s3950_s20  ;;  %s27_s24 = sadd.s32 1, %s3954_s21  ;;  %s3958_s22 = sphi %s4001_s22, %s15_s22   ;;  %s3954_s21 = sphi %s3999_s21, %s5156_s21   ;;  %s3950_s20 = sphi %s3997_s20, %s5155_s20   ;;  %s3946_s19 = sphi %s3995_s19, %s5154_s19   ;;  %s3942_s18 = sphi %s3993_s18, %s5153_s18  }
   0x4   : > { %p25_p0 = scmp.ge.s32.totalorder %s24_s23, 4  ;;  %p3179_p1 = scmp.ge.s32.totalorder %s3958_s22, 1 }
   0x5   : > { %p234_p2 = scmp.lt.s32.totalorder %s3958_s22, 9 }
   0x6   : > { %s5158_s23 = smov (%p25_p0, %s24_s23), 0  ;;  %s5160_s24 = smov (!%p25_p0, %s27_s24), %s3954_s21 }
   0x7   : > { %p235_p3 = pnand %p3179_p1, %p234_p2  ;;  %p29_p4 = scmp.ge.s32.totalorder %s5160_s24, 2 }
   0x8   : > { %v608_v0 = vld [vmem:[%s5148_s1 + $0x10] sm:$0xff] (!%p235_p3)  ;;  %v606_v1 = vld [vmem:[%s5148_s1] sm:$0xff] (!%p235_p3)  ;;  %v3960_v2 = vmov (!%p235_p3), 0   ;;  %v609_v3 = vld [vmem:[%s5148_s1 + $0x18] sm:$0xff] (!%p235_p3)  ;;  %p282_p5 = scmp.lt.s32.totalorder (!%p235_p3), %s3942_s18, 3  ;;  %s281_s6 = smul.u32 (!%p235_p3), 57, %s3946_s19 }
   0x9   : > { %s5162_s24 = smov (%p29_p4, %s5160_s24), 0  ;;  %238 = sbr.rel (%p235_p3) target bundleno = 722 (0x2d2), region = 40 }
   0xa   : > { %3908 = vset.pattern.permute.xlu1 (!%p235_p3), %v3960_v2  ;;  %3907 = vset.pattern.permute.xlu0 (!%p235_p3), %v3960_v2  ;;  %v607_v4 = vld [vmem:[%s5148_s1 + $0x8] sm:$0xff] (!%p235_p3)  ;;  %v610_v6 = vld [vmem:[%s5148_s1 + $0x20] sm:$0xff] (!%p235_p3)  ;;  %v613_v7 = vld [vmem:[%s5148_s1 + $0x38] sm:$0xff] (!%p235_p3)  ;;  %p284_p6 = scmp.lt.s32.totalorder (!%p235_p3), %s281_s6, 113  ;;  %vm1329_vm0 = vcmask (!%p235_p3), 1046528   ;;  %s3961_s30 = smov (!%p235_p3), 32  }
   0xb   : > { %674 = vperm.xlu1 (!%p235_p3), %3908, %v608_v0   ;;  %664 = vperm.xlu0 (!%p235_p3), %3907, %v606_v1   ;;  %v611_v5 = vld [vmem:[%s5148_s1 + $0x28] sm:$0xff] (!%p235_p3)  ;;  %v612_v8 = vld [vmem:[%s5148_s1 + $0x30] sm:$0xff] (!%p235_p3)  ;;  %v614_v10 = vld [vmem:[%s5148_s1 + $0x40] sm:$0xff] (!%p235_p3)  ;;  %vm1026_vm1 = vsmask.f32 (!%p235_p3), 7424  ;;  %s3962_s10 = smov (!%p235_p3), 16  }
   0xc   : > { %v615_v9 = vld [vmem:[%s5148_s1 + $0x48] sm:$0xff] (!%p235_p3)  ;;  %v617_v11 = vld [vmem:[%s5148_s1 + $0x58] sm:$0xff] (!%p235_p3)  ;;  %v616_v12 = vld [vmem:[%s5148_s1 + $0x50] sm:$0xff] (!%p235_p3)  ;;  %vm1439_vm2 = vcmask (!%p235_p3), 130048   ;;  %vm1494_vm3 = vcmask (!%p235_p3), 261120   ;;  %vm1576_vm4 = vcmask (!%p235_p3), 392192  }
   0xd   : > { %v619_v13 = vld [vmem:[%s5148_s1 + $0x68] sm:$0xff] (!%p235_p3)  ;;  %v618_v14 = vld [vmem:[%s5148_s1 + $0x60] sm:$0xff] (!%p235_p3)  ;;  %v621_v15 = vld [vmem:[%s5148_s1 + $0x78] sm:$0xff] (!%p235_p3)  ;;  %vm2102_vm5 = vcmask (!%p235_p3), 1043456   ;;  %p302_p7 = scmp.lt.s32.totalorder (!%p235_p3), %s3946_s19, 1 }
   0xe   : > { %v620_v16 = vld [vmem:[%s5148_s1 + $0x70] sm:$0xff] (!%p235_p3)  ;;  %v623_v17 = vld [vmem:[%s5148_s1 + $0x88] sm:$0xff] (!%p235_p3)  ;;  %v622_v18 = vld [vmem:[%s5148_s1 + $0x80] sm:$0xff] (!%p235_p3) }
   0xf   : > { %679 = vperm.xlu1 (!%p235_p3), %3908, %v609_v3   ;;  %669 = vperm.xlu0 (!%p235_p3), %3907, %v607_v4   ;;  %v625_v19 = vld [vmem:[%s5148_s1 + $0x98] sm:$0xff] (!%p235_p3)  ;;  %v624_v20 = vld [vmem:[%s5148_s1 + $0x90] sm:$0xff] (!%p235_p3)  ;;  %v627_v21 = vld [vmem:[%s5148_s1 + $0xa8] sm:$0xff] (!%p235_p3) }
  0x10   : > { %v626_v22 = vld [vmem:[%s5148_s1 + $0xa0] sm:$0xff]  ;;  %v629_v23 = vld [vmem:[%s5148_s1 + $0xb8] sm:$0xff]  ;;  %v628_v24 = vld [vmem:[%s5148_s1 + $0xb0] sm:$0xff]  ;;  %s5164_s18 = smov (!%p282_p5, %s3942_s18), 3  ;;  %s5166_s6 = smov (!%p284_p6, %s281_s6), 113 }
  0x11   : > { %v631_v25 = vld [vmem:[%s5148_s1 + $0xc8] sm:$0xff]  ;;  %v630_v26 = vld [vmem:[%s5148_s1 + $0xc0] sm:$0xff]  ;;  %v633_v27 = vld [vmem:[%s5148_s1 + $0xd8] sm:$0xff]  ;;  %s3860_s11 = smul.u32 114, %s5164_s18  ;;  %s4194_s26 = scalar_lea.vmem %s5149_s2, %s5164_s18 }
  0x12   : > { %v632_v28 = vld [vmem:[%s5148_s1 + $0xd0] sm:$0xff]  ;;  %v635_v29 = vld [vmem:[%s5148_s1 + $0xe8] sm:$0xff]  ;;  %v634_v30 = vld [vmem:[%s5148_s1 + $0xe0] sm:$0xff]  ;;  %s4204_s29 = scalar_lea.vmem %s5150_s3, %s5164_s18  ;;  %s5168_s19 = smov (!%p302_p7, %s3946_s19), 1 }
  0x13   : > { %689 = vperm.xlu1 %3908, %v611_v5   ;;  %684 = vperm.xlu0 %3907, %v610_v6   ;;  %v637_v31 = vld [vmem:[%s5148_s1 + $0xf8] sm:$0xff]  ;;  %v636_v32 = vld [vmem:[%s5148_s1 + $0xf0] sm:$0xff]  ;;  %v639_v33 = vld [vmem:[%s5148_s1 + $0x108] sm:$0xff]  ;;  %s287_s12 = sadd.s32 %s3860_s11, %s5166_s6  ;;  %s3861_s6 = smul.u32 72, %s5164_s18 }
  0x14   : > { %v638_v34 = vld [vmem:[%s5148_s1 + $0x100] sm:$0xff]  ;;  %v641_v35 = vld [vmem:[%s5148_s1 + $0x118] sm:$0xff]  ;;  %v640_v36 = vld [vmem:[%s5148_s1 + $0x110] sm:$0xff]  ;;  %s3180_s13 = sshll.u32 %s287_s12, 2 }
  0x15   : > { %v643_v37 = vld [vmem:[%s5148_s1 + $0x128] sm:$0xff]  ;;  %v642_v38 = vld [vmem:[%s5148_s1 + $0x120] sm:$0xff]  ;;  %v645_v39 = vld [vmem:[%s5148_s1 + $0x138] sm:$0xff]  ;;  %s4186_s16 = scalar_lea.vmem %s5147_s0, %s3180_s13  ;;  %s4341_s9 = scalar_lea.vmem %s5151_s4, %s3861_s6 }
  0x16   : > { %v644_v40 = vld [vmem:[%s5148_s1 + $0x130] sm:$0xff]  ;;  %v647_v41 = vld [vmem:[%s5148_s1 + $0x148] sm:$0xff]  ;;  %v646_v42 = vld [vmem:[%s5148_s1 + $0x140] sm:$0xff] }
  0x17   : > { %699 = vperm.xlu1 %3908, %v613_v7   ;;  %694 = vperm.xlu0 %3907, %v612_v8   ;;  %v649_v43 = vld [vmem:[%s5148_s1 + $0x158] sm:$0xff]  ;;  %v648_v44 = vld [vmem:[%s5148_s1 + $0x150] sm:$0xff]  ;;  %v650_v45 = vld [vmem:[%s5148_s1 + $0x160] sm:$0xff] }
  0x18   : > { %v651_v46 = vld [vmem:[%s5148_s1 + $0x168] sm:$0xff]  ;;  %v653_v47 = vld [vmem:[%s5148_s1 + $0x178] sm:$0xff]  ;;  %v652_v48 = vld [vmem:[%s5148_s1 + $0x170] sm:$0xff] }
  0x19   : > { %v654_v49 = vld [vmem:[%s5148_s1 + $0x180] sm:$0xff]  ;;  %v655_v50 = vld [vmem:[%s5148_s1 + $0x188] sm:$0xff]  ;;  %v3393_v53 = vld [vmem:[%s4186_s16 + $0x10] sm:$0xff]  }
  0x1a   : > { %v3392_v51 = vld [vmem:[%s4186_s16 + $0x8] sm:$0xff]   ;;  %v3281_v52 = vld [vmem:[%s4186_s16] sm:$0xff]   ;;  %v3291_v59 = vunpack.c.h.bf16 %v3393_v53  ;;  %v3394_v60 = vld [vmem:[%s4186_s16 + $0x18] sm:$0xff]   ;;  %v3290_v62 = vunpack.c.l.bf16 %v3393_v53 }
  0x1b   : > { %709 = vperm.xlu1 %3908, %v615_v9   ;;  %704 = vperm.xlu0 %3907, %v614_v10   ;;  %v3286_v54 = vunpack.c.l.bf16 %v3392_v51  ;;  %v3282_v55 = vunpack.c.l.bf16 %v3281_v52  ;;  %v3287_v56 = vunpack.c.h.bf16 %v3392_v51  ;;  %v3283_v57 = vunpack.c.h.bf16 %v3281_v52  ;;  %v4198_v58 = vld [vmem:[%s4194_s26] ss:$0 sm:$0xff]  ;;  %v3396_v10 = vld [vmem:[%s4186_s16 + $0x28] sm:$0xff]  }
  0x1c   : > { %v3395_v61 = vld [vmem:[%s4186_s16 + $0x20] sm:$0xff]   ;;  %v3295_v4 = vunpack.c.h.bf16 %v3394_v60  ;;  %v3294_v5 = vunpack.c.l.bf16 %v3394_v60  ;;  %v436_v7 = vmul.f32 %v3291_v59, %v4198_v58  ;;  %v435_v8 = vmul.f32 %v3290_v62, %v4198_v58 }
  0x1d   : > { %v433_v63 = vmul.f32 %v3286_v54, %v4198_v58  ;;  %v431_v0 = vmul.f32 %v3282_v55, %v4198_v58  ;;  %v434_v1 = vmul.f32 %v3287_v56, %v4198_v58  ;;  %v432_v2 = vmul.f32 %v3283_v57, %v4198_v58  ;;  %v4213_v3 = vld [vmem:[%s4204_s29] ss:$0 sm:$0xff]  ;;  %v3400_v57 = vld [vmem:[%s4186_s16 + $0x48] sm:$0xff]  }
  0x1e   : > { %v3299_v6 = vunpack.c.h.bf16 %v3395_v61  ;;  %v3298_v9 = vunpack.c.l.bf16 %v3395_v61  ;;  %v3399_v56 = vld [vmem:[%s4186_s16 + $0x40] sm:$0xff]  }
  0x1f   : > { %719 = vperm.xlu1 %3908, %v617_v11   ;;  %714 = vperm.xlu0 %3907, %v616_v12   ;;  %v496_v11 = vadd.f32 %v4213_v3, %v433_v63  ;;  %v494_v12 = vadd.f32 %v4213_v3, %v431_v0 }
  0x23   : > { %729 = vperm.xlu1 %3908, %v619_v13   ;;  %724 = vperm.xlu0 %3907, %v618_v14   ;;  %v497_v13 = vadd.f32 %v4213_v3, %v434_v1  ;;  %v495_v14 = vadd.f32 %v4213_v3, %v432_v2  ;;  %v3401_v1 = vld [vmem:[%s4186_s16 + $0x50] sm:$0xff]  }
  0x27   : > { %739 = vperm.xlu1 %3908, %v621_v15   ;;  %734 = vperm.xlu0 %3907, %v620_v16   ;;  %v438_v15 = vmul.f32 %v3295_v4, %v4198_v58  ;;  %v437_v16 = vmul.f32 %v3294_v5, %v4198_v58 }
  0x2b   : > { %749 = vperm.xlu1 %3908, %v623_v17   ;;  %744 = vperm.xlu0 %3907, %v622_v18   ;;  %v440_v17 = vmul.f32 %v3299_v6, %v4198_v58  ;;  %v499_v18 = vadd.f32 %v4213_v3, %v436_v7  ;;  %v3315_v7 = vunpack.c.h.bf16 %v3399_v56 }
  0x2f   : > { %759 = vperm.xlu1 %3908, %v625_v19   ;;  %754 = vperm.xlu0 %3907, %v624_v20   ;;  %v3303_v19 = vunpack.c.h.bf16 %v3396_v10  ;;  %v3397_v20 = vld [vmem:[%s4186_s16 + $0x30] sm:$0xff]  }
  0x33   : > { %769 = vperm.xlu1 %3908, %v627_v21   ;;  %764 = vperm.xlu0 %3907, %v626_v22  }
  0x37   : > { %779 = vperm.xlu1 %3908, %v629_v23   ;;  %774 = vperm.xlu0 %3907, %v628_v24   ;;  %v498_v23 = vadd.f32 %v4213_v3, %v435_v8  ;;  %v439_v24 = vmul.f32 %v3298_v9, %v4198_v58  ;;  %v3314_v8 = vunpack.c.l.bf16 %v3399_v56  ;;  %v3319_v9 = vunpack.c.h.bf16 %v3400_v57 }
  0x3b   : > { %789 = vperm.xlu1 %3908, %v631_v25   ;;  %784 = vperm.xlu0 %3907, %v630_v26   ;;  %v3302_v25 = vunpack.c.l.bf16 %v3396_v10  ;;  %v552_v26 = vmax.f32 %v496_v11, 0.0  ;;  %v3318_v10 = vunpack.c.l.bf16 %v3400_v57 }
  0x3f   : > { %799 = vperm.xlu1 %3908, %v633_v27   ;;  %794 = vperm.xlu0 %3907, %v632_v28   ;;  %v550_v27 = vmax.f32 %v494_v12, 0.0  ;;  %v553_v28 = vmax.f32 %v497_v13, 0.0 }
  0x43   : > { %809 = vperm.xlu1 %3908, %v635_v29   ;;  %804 = vperm.xlu0 %3907, %v634_v30   ;;  %v551_v29 = vmax.f32 %v495_v14, 0.0  ;;  %v3398_v30 = vld [vmem:[%s4186_s16 + $0x38] sm:$0xff]   ;;  %v3323_v14 = vunpack.c.h.bf16 %v3401_v1 }
  0x44   : > { %v3310_v0 = vunpack.c.l.bf16 %v3398_v30 }
  0x47   : > { %819 = vperm.xlu1 %3908, %v637_v31   ;;  %814 = vperm.xlu0 %3907, %v636_v32   ;;  %v501_v31 = vadd.f32 %v4213_v3, %v438_v15  ;;  %v500_v32 = vadd.f32 %v4213_v3, %v437_v16 }
  0x4b   : > { %829 = vperm.xlu1 %3908, %v639_v33   ;;  %824 = vperm.xlu0 %3907, %v638_v34   ;;  %v4233_v33 = vadd.f32 %v4213_v3, %v440_v17  ;;  %v3307_v34 = vunpack.c.h.bf16 %v3397_v20 }
  0x4d   : > { %v444_v51 = vmul.f32 %v3307_v34, %v4198_v58 }
  0x4f   : > { %839 = vperm.xlu1 %3908, %v641_v35   ;;  %834 = vperm.xlu0 %3907, %v640_v36   ;;  %v555_v35 = vmax.f32 %v499_v18, 0.0  ;;  %v442_v36 = vmul.f32 %v3303_v19, %v4198_v58  ;;  %v4264_v13 = vadd.f32 %v4213_v3, %v444_v51  ;;  %v445_v19 = vmul.f32 %v3310_v0, %v4198_v58 }
  0x51   : > { %v4247_v54 = vadd.f32 %v4213_v3, %v442_v36  ;;  %v563_v36 = vmax.f32 %v4264_v13, 0.0 }
  0x53   : > { %849 = vperm.xlu1 %3908, %v643_v37   ;;  %844 = vperm.xlu0 %3907, %v642_v38   ;;  %v3306_v37 = vunpack.c.l.bf16 %v3397_v20  ;;  %v561_v17 = vmax.f32 %v4247_v54, 0.0  ;;  %v3322_v20 = vunpack.c.l.bf16 %v3401_v1 }
  0x55   : > { %v443_v55 = vmul.f32 %v3306_v37, %v4198_v58  ;;  %v4289_v37 = vadd.f32 %v4213_v3, %v445_v19 }
  0x57   : > { %859 = vperm.xlu1 %3908, %v645_v39   ;;  %854 = vperm.xlu0 %3907, %v644_v40   ;;  %v554_v40 = vmax.f32 %v498_v23, 0.0  ;;  %v4269_v18 = vadd.f32 %v4213_v3, %v443_v55 }
  0x5b   : > { %869 = vperm.xlu1 %3908, %v647_v41   ;;  %864 = vperm.xlu0 %3907, %v646_v42   ;;  %v4237_v41 = vadd.f32 %v4213_v3, %v439_v24  ;;  %v441_v42 = vmul.f32 %v3302_v25, %v4198_v58  ;;  %v3402_v25 = vld [vmem:[%s4186_s16 + $0x58] sm:$0xff]  }
  0x5c   : > { %v3326_v54 = vunpack.c.l.bf16 %v3402_v25 }
  0x5d   : > { %v558_v61 = vmax.f32 %v4237_v41, 0.0  ;;  %v4254_v62 = vadd.f32 %v4213_v3, %v441_v42 }
  0x5f   : > { %879 = vperm.xlu1 %3908, %v649_v43   ;;  %874 = vperm.xlu0 %3907, %v648_v44   ;;  %v3311_v43 = vunpack.c.h.bf16 %v3398_v30  ;;  %v560_v24 = vmax.f32 %v4254_v62, 0.0 }
  0x61   : > { %v446_v63 = vmul.f32 %v3311_v43, %v4198_v58  ;;  %v562_v43 = vmax.f32 %v4269_v18, 0.0  ;;  %v3404_v18 = vld [vmem:[%s4186_s16 + $0x68] sm:$0xff]  }
  0x63   : > { %884 = vperm.xlu1 %3908, %v650_v45   ;;  %889 = vperm.xlu0 %3907, %v651_v46  }
  0x67   : > { %899 = vperm.xlu1 %3908, %v653_v47   ;;  %894 = vperm.xlu0 %3907, %v652_v48   ;;  %v557_v48 = vmax.f32 %v501_v31, 0.0 }
  0x6b   : > { %904 = vperm.xlu1 %3908, %v654_v49   ;;  %909 = vperm.xlu0 %3907, %v655_v50   ;;  %v556_v49 = vmax.f32 %v500_v32, 0.0  ;;  %v559_v50 = vmax.f32 %v4233_v33, 0.0  ;;  %v4283_v32 = vadd.f32 %v4213_v3, %v446_v63  ;;  %v452_v33 = vmul.f32 %v3323_v14, %v4198_v58 }
  0x6d   : > { %v4311_v51 = vadd.f32 %v4213_v3, %v452_v33  ;;  %v565_v57 = vmax.f32 %v4283_v32, 0.0 }
  0x8a   : > { %v675_v21 = vpop.permute.xlu1 %674  ;;  %v665_v22 = vpop.permute.xlu0 %664 }
  0x8b   : > { %v944_v44 = vmul.f32 %v675_v21, %v552_v26  ;;  %v942_v45 = vmul.f32 %v665_v22, %v550_v27  ;;  %v448_v26 = vmul.f32 %v3315_v7, %v4198_v58  ;;  %v447_v27 = vmul.f32 %v3314_v8, %v4198_v58 }
  0x8e   : > { %v680_v38 = vpop.permute.xlu1 %679  ;;  %v670_v39 = vpop.permute.xlu0 %669 }
  0x8f   : > { %v945_v46 = vmul.f32 %v680_v38, %v553_v28  ;;  %v943_v47 = vmul.f32 %v670_v39, %v551_v29  ;;  %v450_v28 = vmul.f32 %v3319_v9, %v4198_v58  ;;  %v449_v29 = vmul.f32 %v3318_v10, %v4198_v58 }
  0x90   : > { %v451_v38 = vmul.f32 %v3322_v20, %v4198_v58  ;;  %v3327_v39 = vunpack.c.h.bf16 %v3402_v25  ;;  %v571_v9 = vmax.f32 %v4311_v51, 0.0  ;;  %v453_v10 = vmul.f32 %v3326_v54, %v4198_v58 }
  0x91   : > { %v4242_v52 = vpack.c.bf16 %v945_v46, %v944_v44  ;;  %v4244_v53 = vpack.c.bf16 %v943_v47, %v942_v45  ;;  %v4295_v44 = vadd.f32 %v4213_v3, %v448_v26  ;;  %v4298_v45 = vadd.f32 %v4213_v3, %v447_v27 }
  0x92   : > { %v690_v59 = vpop.permute.xlu1 %689  ;;  %v685_v60 = vpop.permute.xlu0 %684  ;;  %v4301_v46 = vadd.f32 %v4213_v3, %v450_v28  ;;  %v4304_v47 = vadd.f32 %v4213_v3, %v449_v29  ;;  %v4355_v29 = vadd.f32 %v4213_v3, %v453_v10 }
  0x93   : > { %v947_v2 = vmul.f32 %v690_v59, %v555_v35  ;;  %v946_v4 = vmul.f32 %v685_v60, %v554_v40  ;;  %v1330_v5 = vrot.slane %v4244_v53, 1  ;;  %v1331_v6 = vrot.slane %v4242_v52, 1 }
  0x94   : > { %v564_v59 = vmax.f32 %v4289_v37, 0.0  ;;  %v4317_v60 = vadd.f32 %v4213_v3, %v451_v38  ;;  %v1035_v14 = vshll.u32 %v4242_v52, 16  ;;  %v1030_v26 = vshll.u32 %v4244_v53, 16 }
  0x95   : > { %v4260_v11 = vpack.c.bf16 %v947_v2, %v946_v4  ;;  %v1332_v12 = vsel %vm1329_vm0, %v1330_v5, %v1331_v6  ;;  %v567_v2 = vmax.f32 %v4295_v44, 0.0  ;;  %v566_v4 = vmax.f32 %v4298_v45, 0.0 }
  0x96   : > { %v700_v15 = vpop.permute.xlu1 %699  ;;  %v695_v16 = vpop.permute.xlu0 %694  ;;  %1385 = vrot.lane.b32.xlu0 %v1332_v12, %s3961_s30  ;;  %v569_v5 = vmax.f32 %v4301_v46, 0.0  ;;  %v1037_v33 = vrot.slane %v1035_v14, 1  ;;  %v3334_v44 = vunpack.c.l.bf16 %v3404_v18  ;;  %v572_v14 = vmax.f32 %v4355_v29, 0.0 }
  0x97   : > { %v949_v21 = vmul.f32 %v700_v15, %v557_v48  ;;  %v948_v22 = vmul.f32 %v695_v16, %v556_v49  ;;  %v1333_v23 = vrot.slane %v4260_v11, 1  ;;  %v3403_v48 = vld [vmem:[%s4186_s16 + $0x60] sm:$0xff]   ;;  %v570_v15 = vmax.f32 %v4317_v60, 0.0 }
  0x98   : > { %v3331_v1 = vunpack.c.h.bf16 %v3403_v48  ;;  %v1043_v25 = vshll.u32 %v4260_v11, 16 }
  0x99   : > { %v4279_v30 = vpack.c.bf16 %v949_v21, %v948_v22  ;;  %v1334_v31 = vsel %vm1329_vm0, %v1331_v6, %v1333_v23  ;;  %v568_v6 = vmax.f32 %v4304_v47, 0.0 }
  0x9a   : > { %v710_v34 = vpop.permute.xlu1 %709  ;;  %v705_v35 = vpop.permute.xlu0 %704  ;;  %1387 = vrot.lane.b32.xlu1 %v1334_v31, %s3961_s30  ;;  %v456_v22 = vmul.f32 %v3331_v1, %v4198_v58  ;;  %v4370_v54 = vrot.slane %v1043_v25, 1 }
  0x9b   : > { %v951_v40 = vmul.f32 %v710_v34, %v559_v50  ;;  %v950_v41 = vmul.f32 %v705_v35, %v558_v61  ;;  %v1335_v42 = vrot.slane %v4279_v30, 1  ;;  %v454_v61 = vmul.f32 %v3327_v39, %v4198_v58 }
  0x9c   : > { %v1051_v10 = vshll.u32 %v4279_v30, 16 }
  0x9d   : > { %v4307_v49 = vpack.c.bf16 %v951_v40, %v950_v41  ;;  %v1336_v50 = vsel %vm1329_vm0, %v1333_v23, %v1335_v42  ;;  %v4335_v16 = vadd.f32 %v4213_v3, %v454_v61  ;;  %v4346_v23 = vld [vmem:[%s4186_s16 + $0x70] sm:$0xff]   ;;  %v4362_v40 = vadd.f32 %v4213_v3, %v456_v22  ;;  %v3910_v41 = vld [vmem:[%s4341_s9 + $0x8] sm:$0xff]  }
  0x9e   : > { %v720_v55 = vpop.permute.xlu1 %719  ;;  %v715_v56 = vpop.permute.xlu0 %714  ;;  %1389 = vrot.lane.b32.xlu0 %v1336_v50, %s3961_s30  ;;  %v3339_v45 = vunpack.c.h.bf16 %v4346_v23 }
  0x9f   : > { %v953_v62 = vmul.f32 %v720_v55, %v561_v17  ;;  %v952_v63 = vmul.f32 %v715_v56, %v560_v24  ;;  %v1337_v0 = vrot.slane %v4307_v49, 1  ;;  %v3330_v17 = vunpack.c.l.bf16 %v3403_v48  ;;  %v3909_v24 = vld [vmem:[%s4341_s9] sm:$0xff]  }
  0xa0   : > { %3500 = vmatprep.subr.bf16.mxu1 %v3909_v24  ;;  %v573_v34 = vmax.f32 %v4335_v16, 0.0  ;;  %v1028_v55 = vshrl.u32 %v4244_v53, 16 }
  0xa1   : > { %v4326_v7 = vpack.c.bf16 %v953_v62, %v952_v63  ;;  %v1338_v8 = vsel %vm1329_vm0, %v1335_v42, %v1337_v0  ;;  %v455_v35 = vmul.f32 %v3330_v17, %v4198_v58  ;;  %3501 = vmatpush3.bf16.msra.mxu1 %v3909_v24  ;;  %v1039_v42 = vshrl.u32 %v4242_v52, 16 }
  0xa2   : > { %v730_v12 = vpop.permute.xlu1 %729  ;;  %v725_v13 = vpop.permute.xlu0 %724  ;;  %1391 = vrot.lane.b32.xlu1 %v1338_v8, %s3961_s30  ;;  %3502 = vmatprep.subr.bf16.mxu1 %v3910_v41  ;;  %v3338_v63 = vunpack.c.l.bf16 %v4346_v23  ;;  %v457_v17 = vmul.f32 %v3334_v44, %v4198_v58  ;;  %v575_v24 = vmax.f32 %v4362_v40, 0.0 }
  0xa3   : > { %v955_v19 = vmul.f32 %v730_v12, %v563_v36  ;;  %v954_v20 = vmul.f32 %v725_v13, %v562_v43  ;;  %v1339_v21 = vrot.slane %v4326_v7, 1  ;;  %v3335_v36 = vunpack.c.h.bf16 %v3404_v18  ;;  %v3911_v12 = vld [vmem:[%s4341_s9 + $0x10] sm:$0xff]  }
  0xa4   : > { %v1032_v43 = vrot.slane %v1030_v26, 1  ;;  %v4375_v61 = vadd.f32 %v4213_v3, %v455_v35  ;;  %v460_v18 = vmul.f32 %v3339_v45, %v4198_v58  ;;  %v1067_v45 = vshll.u32 %v4326_v7, 16 }
  0xa5   : > { %v4351_v27 = vpack.c.bf16 %v955_v19, %v954_v20  ;;  %v1340_v28 = vsel %vm1329_vm0, %v1337_v0, %v1339_v21  ;;  %v458_v62 = vmul.f32 %v3335_v36, %v4198_v58  ;;  %3503 = vmatpush3.bf16.msra.mxu1 %v3910_v41 }
  0xa6   : > { %v740_v31 = vpop.permute.xlu1 %739  ;;  %v735_v32 = vpop.permute.xlu0 %734  ;;  %1393 = vrot.lane.b32.xlu0 %v1340_v28, %s3961_s30  ;;  %v1033_v13 = vor.u32 %v1032_v43, %v1028_v55  ;;  %3504 = vmatprep.subr.bf16.mxu1 %v3911_v12  ;;  %v574_v25 = vmax.f32 %v4375_v61, 0.0  ;;  %v459_v28 = vmul.f32 %v3338_v63, %v4198_v58  ;;  %v4413_v41 = vadd.f32 %v4213_v3, %v460_v18 }
  0xa7   : > { %v957_v37 = vmul.f32 %v740_v31, %v565_v57  ;;  %v956_v38 = vmul.f32 %v735_v32, %v564_v59  ;;  %v1341_v39 = vrot.slane %v4351_v27, 1  ;;  %v1041_v59 = vor.u32 %v1039_v42, %v1037_v33  ;;  %v4401_v31 = vld [vmem:[%s4341_s9 + $0x18] sm:$0xff]  }
  0xa8   : > { %v4397_v26 = vadd.f32 %v4213_v3, %v458_v62  ;;  %3554 = vmatprep.subr.bf16.mxu0 %v4401_v31 }
  0xa9   : > { %v4367_v48 = vpack.c.bf16 %v957_v37, %v956_v38  ;;  %v1342_v50 = vsel %vm1329_vm0, %v1339_v21, %v1341_v39  ;;  %v1046_v20 = vsel %vm1026_vm1, %v1041_v59, %v4370_v54  ;;  %v3406_v21 = vld [vmem:[%s4186_s16 + $0x78] sm:$0xff]   ;;  %v1053_v37 = vrot.slane %v1051_v10, 1  ;;  %3505 = vmatpush3.bf16.msra.mxu1 %v3911_v12  ;;  %3555 = vmatpush3.bf16.msra.mxu0 %v4401_v31 }
  0xaa   : > { %v750_v56 = vpop.permute.xlu1 %749  ;;  %v745_v57 = vpop.permute.xlu0 %744  ;;  %1395 = vrot.lane.b32.xlu1 %v1342_v50, %s3961_s30  ;;  %v1038_v38 = vsel %vm1026_vm1, %v1033_v13, %v1037_v33  ;;  %v3343_v42 = vunpack.c.h.bf16 %v3406_v21  ;;  %3662 = vmatprep.subr.bf16.mxu1 %v4401_v31  ;;  %v577_v44 = vmax.f32 %v4397_v26, 0.0  ;;  %v4427_v50 = vadd.f32 %v4213_v3, %v459_v28 }
  0xab   : > { %v959_v0 = vmul.f32 %v750_v56, %v567_v2  ;;  %v958_v1 = vmul.f32 %v745_v57, %v566_v4  ;;  %v1343_v8 = vrot.slane %v4367_v48, 1  ;;  %v1059_v4 = vshll.u32 %v4307_v49, 16  ;;  %v4430_v56 = vld [vmem:[%s4341_s9 + $0x20] sm:$0xff]  }
  0xac   : > { %v3342_v55 = vunpack.c.l.bf16 %v3406_v21  ;;  %v579_v10 = vmax.f32 %v4413_v41, 0.0  ;;  %3556 = vmatprep.subr.bf16.mxu0 %v4430_v56  ;;  %v4455_v21 = vld [vmem:[%s4341_s9 + $0x28] sm:$0xff]  }
  0xad   : > { %v4385_v19 = vpack.c.bf16 %v959_v0, %v958_v1  ;;  %v1344_v2 = vsel %vm1329_vm0, %v1341_v39, %v1343_v8  ;;  %v4410_v39 = vadd.f32 %v4213_v3, %v457_v17  ;;  %v1047_v0 = vshrl.u32 %v4260_v11, 16  ;;  %3557 = vmatpush3.bf16.msra.mxu0 %v4430_v56 }
  0xae   : > { %v760_v22 = vpop.permute.xlu1 %759  ;;  %v755_v23 = vpop.permute.xlu0 %754  ;;  %1249 = vrot.lane.b32.xlu1 %v1046_v20, %s3962_s10  ;;  %1397 = vrot.lane.b32.xlu0 %v1344_v2, %s3961_s30  ;;  %v1069_v20 = vrot.slane %v1067_v45, 1  ;;  %v578_v2 = vmax.f32 %v4427_v50, 0.0 }
  0xaf   : > { %v961_v32 = vmul.f32 %v760_v22, %v569_v5  ;;  %v960_v35 = vmul.f32 %v755_v23, %v568_v6  ;;  %v1345_v36 = vrot.slane %v4385_v19, 1  ;;  %v1055_v5 = vshrl.u32 %v4279_v30, 16  ;;  %3558 = vmatprep.subr.bf16.mxu0 %v4455_v21 }
  0xb0   : > { %v1061_v6 = vrot.slane %v1059_v4, 1  ;;  %v576_v1 = vmax.f32 %v4410_v39, 0.0  ;;  %v1049_v18 = vor.u32 %v1047_v0, %v4370_v54  ;;  %v461_v4 = vmul.f32 %v3342_v55, %v4198_v58 }
  0xb1   : > { %v4417_v46 = vpack.c.bf16 %v961_v32, %v960_v35  ;;  %v1346_v47 = vsel %vm1329_vm0, %v1343_v8, %v1345_v36  ;;  %v1057_v62 = vor.u32 %v1055_v5, %v1053_v37  ;;  %v1075_v8 = vshll.u32 %v4351_v27, 16  ;;  %3559 = vmatpush3.bf16.msra.mxu0 %v4455_v21 }
  0xb2   : > { %v770_v33 = vpop.permute.xlu1 %769  ;;  %v765_v43 = vpop.permute.xlu0 %764  ;;  %1399 = vrot.lane.b32.xlu1 %v1346_v47, %s3961_s30  ;;  %1247 = vrot.lane.b32.xlu0 %v1038_v38, %s3962_s10  ;;  %v1083_v32 = vshll.u32 %v4367_v48, 16  ;;  %v1071_v35 = vshrl.u32 %v4326_v7, 16  ;;  %v1091_v29 = vshll.u32 %v4385_v19, 16 }
  0xb3   : > { %v963_v57 = vmul.f32 %v770_v33, %v571_v9  ;;  %v962_v59 = vmul.f32 %v765_v43, %v570_v15  ;;  %v1347_v63 = vrot.slane %v4417_v46, 1  ;;  %v1062_v51 = vsel %vm1026_vm1, %v1057_v62, %v1061_v6  ;;  %v3407_v15 = vld [vmem:[%s4186_s16 + $0x80] sm:$0xff]  }
  0xb4   : > { %v462_v9 = vmul.f32 %v3343_v42, %v4198_v58  ;;  %v1077_v54 = vrot.slane %v1075_v8, 1  ;;  %v3347_v38 = vunpack.c.h.bf16 %v3407_v15  ;;  %v1073_v47 = vor.u32 %v1071_v35, %v1069_v20 }
  0xb5   : > { %v4442_v12 = vpack.c.bf16 %v963_v57, %v962_v59  ;;  %v1348_v60 = vsel %vm1329_vm0, %v1345_v36, %v1347_v63  ;;  %v1063_v36 = vshrl.u32 %v4307_v49, 16  ;;  %v1099_v33 = vshll.u32 %v4417_v46, 16 }
  0xb6   : > { %v780_v13 = vpop.permute.xlu1 %779  ;;  %v775_v17 = vpop.permute.xlu0 %774  ;;  %1253 = vrot.lane.b32.xlu1 %v1062_v51, %s3962_s10  ;;  %1401 = vrot.lane.b32.xlu0 %v1348_v60, %s3961_s30  ;;  %v3346_v43 = vunpack.c.l.bf16 %v3407_v15  ;;  %v1085_v57 = vrot.slane %v1083_v32, 1  ;;  %v1078_v59 = vsel %vm1026_vm1, %v1073_v47, %v1077_v54  ;;  %v1087_v8 = vshrl.u32 %v4367_v48, 16 }
  0xb7   : > { %v965_v22 = vmul.f32 %v780_v13, %v573_v34  ;;  %v964_v23 = vmul.f32 %v775_v17, %v572_v14  ;;  %v1349_v28 = vrot.slane %v4442_v12, 1  ;;  %v1054_v34 = vsel %vm1026_vm1, %v1049_v18, %v1053_v37 }
  0xb8   : > { %v4472_v14 = vadd.f32 %v4213_v3, %v462_v9  ;;  %v1065_v5 = vor.u32 %v1063_v36, %v1061_v6  ;;  %v464_v6 = vmul.f32 %v3347_v38, %v4198_v58  ;;  %v1093_v51 = vrot.slane %v1091_v29, 1 }
  0xb9   : > { %v1350_v16 = vsel %vm1329_vm0, %v1347_v63, %v1349_v28  ;;  %v4478_v45 = vpack.c.bf16 %v965_v22, %v964_v23  ;;  %v1079_v63 = vshrl.u32 %v4351_v27, 16  ;;  %v1107_v40 = vshll.u32 %v4442_v12, 16 }
  0xba   : > { %v790_v39 = vpop.permute.xlu1 %789  ;;  %v785_v42 = vpop.permute.xlu0 %784  ;;  %1403 = vrot.lane.b32.xlu1 %v1350_v16, %s3961_s30  ;;  %1251 = vrot.lane.b32.xlu0 %v1054_v34, %s3962_s10  ;;  %v1070_v62 = vsel %vm1026_vm1, %v1065_v5, %v1069_v20  ;;  %v1101_v9 = vrot.slane %v1099_v33, 1  ;;  %v463_v15 = vmul.f32 %v3346_v43, %v4198_v58  ;;  %v1089_v18 = vor.u32 %v1087_v8, %v1085_v57  ;;  %v3409_v33 = vld [vmem:[%s4186_s16 + $0x90] sm:$0xff]  }
  0xbb   : > { %v967_v37 = vmul.f32 %v790_v39, %v575_v24  ;;  %v966_v55 = vmul.f32 %v785_v42, %v574_v25  ;;  %v1081_v61 = vor.u32 %v1079_v63, %v1077_v54  ;;  %v524_v25 = vadd.f32 %v4213_v3, %v461_v4 }
  0xbc   : > { %v1115_v20 = vshll.u32 %v4478_v45, 16  ;;  %v581_v22 = vmax.f32 %v4472_v14, 0.0  ;;  %v1103_v23 = vshrl.u32 %v4417_v46, 16  ;;  %v1095_v32 = vshrl.u32 %v4385_v19, 16 }
  0xbd   : > { %v4488_v0 = vpack.c.bf16 %v967_v37, %v966_v55  ;;  %v527_v35 = vadd.f32 %v4213_v3, %v464_v6  ;;  %v1094_v4 = vsel %vm1026_vm1, %v1089_v18, %v1093_v51  ;;  %v1086_v54 = vsel %vm1026_vm1, %v1081_v61, %v1085_v57 }
  0xbe   : > { %v800_v24 = vpop.permute.xlu1 %799  ;;  %v795_v60 = vpop.permute.xlu0 %794  ;;  %1257 = vrot.lane.b32.xlu1 %v1078_v59, %s3962_s10  ;;  %1255 = vrot.lane.b32.xlu0 %v1070_v62, %s3962_s10  ;;  %v1109_v36 = vrot.slane %v1107_v40, 1  ;;  %v580_v16 = vmax.f32 %v524_v25, 0.0  ;;  %v1105_v34 = vor.u32 %v1103_v23, %v1101_v9  ;;  %v1097_v29 = vor.u32 %v1095_v32, %v1093_v51 }
  0xbf   : > { %v969_v13 = vmul.f32 %v800_v24, %v577_v44  ;;  %v968_v17 = vmul.f32 %v795_v60, %v576_v1  ;;  %v1123_v26 = vshll.u32 %v4488_v0, 16  ;;  %v3408_v44 = vld [vmem:[%s4186_s16 + $0x88] sm:$0xff]   ;;  %v526_v14 = vadd.f32 %v4213_v3, %v463_v15 }
  0xc0   : > { %v1117_v5 = vrot.slane %v1115_v20, 1  ;;  %v1102_v43 = vsel %vm1026_vm1, %v1097_v29, %v1101_v9  ;;  %v1111_v37 = vshrl.u32 %v4442_v12, 16  ;;  %v3351_v55 = vunpack.c.h.bf16 %v3408_v44 }
  0xc1   : > { %v4510_v39 = vpack.c.bf16 %v969_v13, %v968_v17  ;;  %v3350_v57 = vunpack.c.l.bf16 %v3408_v44  ;;  %v1110_v62 = vsel %vm1026_vm1, %v1105_v34, %v1109_v36  ;;  %v1119_v63 = vshrl.u32 %v4478_v45, 16 }
  0xc2   : > { %v810_v1 = vpop.permute.xlu1 %809  ;;  %v805_v38 = vpop.permute.xlu0 %804  ;;  %1261 = vrot.lane.b32.xlu1 %v1094_v4, %s3962_s10  ;;  %1259 = vrot.lane.b32.xlu0 %v1086_v54, %s3962_s10  ;;  %v1125_v6 = vrot.slane %v1123_v26, 1  ;;  %v583_v50 = vmax.f32 %v527_v35, 0.0  ;;  %v1113_v8 = vor.u32 %v1111_v37, %v1109_v36  ;;  %v3355_v51 = vunpack.c.h.bf16 %v3409_v33 }
  0xc3   : > { %v971_v42 = vmul.f32 %v810_v1, %v579_v10  ;;  %v970_v47 = vmul.f32 %v805_v38, %v578_v2  ;;  %v582_v2 = vmax.f32 %v526_v14, 0.0  ;;  %v1121_v60 = vor.u32 %v1119_v63, %v1117_v5 }
  0xc4   : > { %v1131_v61 = vshll.u32 %v4510_v39, 16  ;;  %v1351_v25 = vrot.slane %v4478_v45, 1  ;;  %v3354_v9 = vunpack.c.l.bf16 %v3409_v33  ;;  %v1118_v13 = vsel %vm1026_vm1, %v1113_v8, %v1117_v5 }
  0xc5   : > { %v4519_v59 = vpack.c.bf16 %v971_v42, %v970_v47  ;;  %v1126_v15 = vsel %vm1026_vm1, %v1121_v60, %v1125_v6  ;;  %v1353_v17 = vrot.slane %v4488_v0, 1  ;;  %v465_v32 = vmul.f32 %v3350_v57, %v4198_v58 }
  0xc6   : > { %v820_v41 = vpop.permute.xlu1 %819  ;;  %v815_v10 = vpop.permute.xlu0 %814  ;;  %1265 = vrot.lane.b32.xlu1 %v1110_v62, %s3962_s10  ;;  %1263 = vrot.lane.b32.xlu0 %v1102_v43, %s3962_s10  ;;  %v468_v35 = vmul.f32 %v3355_v51, %v4198_v58  ;;  %v1133_v26 = vrot.slane %v1131_v61, 1  ;;  %v1352_v44 = vsel %vm1329_vm0, %v1349_v28, %v1351_v25  ;;  %v467_v1 = vmul.f32 %v3354_v9, %v4198_v58 }
  0xc7   : > { %v973_v40 = vmul.f32 %v820_v41, %v581_v22  ;;  %v972_v24 = vmul.f32 %v815_v10, %v580_v16  ;;  %v1139_v18 = vshll.u32 %v4519_v59, 16  ;;  %v466_v22 = vmul.f32 %v3351_v55, %v4198_v58  ;;  %v3410_v55 = vld [vmem:[%s4186_s16 + $0x98] sm:$0xff]  }
  0xc8   : > { %v1127_v38 = vshrl.u32 %v4488_v0, 16  ;;  %v1354_v34 = vsel %vm1329_vm0, %v1351_v25, %v1353_v17  ;;  %v1135_v29 = vshrl.u32 %v4510_v39, 16  ;;  %v528_v33 = vadd.f32 %v4213_v3, %v465_v32 }
  0xc9   : > { %v4536_v4 = vpack.c.bf16 %v973_v40, %v972_v24  ;;  %v1141_v14 = vrot.slane %v1139_v18, 1  ;;  %v529_v47 = vadd.f32 %v4213_v3, %v466_v22  ;;  %v531_v28 = vadd.f32 %v4213_v3, %v468_v35 }
  0xca   : > { %v830_v20 = vpop.permute.xlu1 %829  ;;  %v825_v23 = vpop.permute.xlu0 %824  ;;  %1269 = vrot.lane.b32.xlu1 %v1126_v15, %s3962_s10  ;;  %1267 = vrot.lane.b32.xlu0 %v1118_v13, %s3962_s10  ;;  %v1137_v43 = vor.u32 %v1135_v29, %v1133_v26  ;;  %v1129_v37 = vor.u32 %v1127_v38, %v1125_v6  ;;  %v530_v62 = vadd.f32 %v4213_v3, %v467_v1  ;;  %v1355_v63 = vrot.slane %v4510_v39, 1  ;;  %v3412_v29 = vld [vmem:[%s4186_s16 + $0xa8] sm:$0xff]  }
  0xcb   : > { %v975_v54 = vmul.f32 %v830_v20, %v583_v50  ;;  %v974_v36 = vmul.f32 %v825_v23, %v582_v2  ;;  %v1147_v57 = vshll.u32 %v4536_v4, 16  ;;  %v1357_v50 = vrot.slane %v4519_v59, 1  ;;  %v3411_v2 = vld [vmem:[%s4186_s16 + $0xa0] sm:$0xff]  }
  0xcc   : > { %v1142_v41 = vsel %vm1026_vm1, %v1137_v43, %v1141_v14  ;;  %v1134_v10 = vsel %vm1026_vm1, %v1129_v37, %v1133_v26  ;;  %v3359_v6 = vunpack.c.h.bf16 %v3410_v55  ;;  %v3358_v24 = vunpack.c.l.bf16 %v3410_v55 }
  0xcd   : > { %v4543_v16 = vpack.c.bf16 %v975_v54, %v974_v36  ;;  %v585_v60 = vmax.f32 %v529_v47, 0.0  ;;  %v584_v61 = vmax.f32 %v528_v33, 0.0  ;;  %v587_v25 = vmax.f32 %v531_v28, 0.0  ;;  %v3413_v47 = vld [vmem:[%s4186_s16 + $0xb0] sm:$0xff]  }
  0xce   : > { %v840_v42 = vpop.permute.xlu1 %839  ;;  %v835_v5 = vpop.permute.xlu0 %834  ;;  %1407 = vrot.lane.b32.xlu1 %v1354_v34, %s3961_s30  ;;  %1405 = vrot.lane.b32.xlu0 %v1352_v44, %s3961_s30  ;;  %v1149_v9 = vrot.slane %v1147_v57, 1  ;;  %v586_v15 = vmax.f32 %v530_v62, 0.0  ;;  %v1356_v13 = vsel %vm1329_vm0, %v1353_v17, %v1355_v63  ;;  %v3363_v18 = vunpack.c.h.bf16 %v3411_v2 }
  0xcf   : > { %v1155_v8 = vshll.u32 %v4543_v16, 16  ;;  %v3362_v20 = vunpack.c.l.bf16 %v3411_v2  ;;  %v1358_v23 = vsel %vm1329_vm0, %v1355_v63, %v1357_v50  ;;  %v1151_v22 = vshrl.u32 %v4536_v4, 16 }
  0xd0   : > { %v1143_v35 = vshrl.u32 %v4519_v59, 16  ;;  %v470_v36 = vmul.f32 %v3359_v6, %v4198_v58  ;;  %v469_v44 = vmul.f32 %v3358_v24, %v4198_v58  ;;  %v977_v17 = vmul.f32 %v840_v42, %v585_v60 }
  0xd1   : > { %v4566_v32 = vrot.slane %v1155_v8, 1  ;;  %v976_v1 = vmul.f32 %v835_v5, %v584_v61  ;;  %v1153_v38 = vor.u32 %v1151_v22, %v1149_v9  ;;  %v472_v33 = vmul.f32 %v3363_v18, %v4198_v58  ;;  %v4601_v18 = vld [vmem:[%s4341_s9 + $0x30] sm:$0xff]   ;;  %v3414_v22 = vld [vmem:[%s4186_s16 + $0xb8] sm:$0xff]  }
  0xd2   : > { %v850_v51 = vpop.permute.xlu1 %849  ;;  %v845_v40 = vpop.permute.xlu0 %844  ;;  %1273 = vrot.lane.b32.xlu1 %v1142_v41, %s3962_s10  ;;  %1271 = vrot.lane.b32.xlu0 %v1134_v10, %s3962_s10  ;;  %v1145_v34 = vor.u32 %v1143_v35, %v1141_v14  ;;  %v471_v28 = vmul.f32 %v3362_v20, %v4198_v58  ;;  %v1359_v43 = vrot.slane %v4536_v4, 1  ;;  %v3367_v14 = vunpack.c.h.bf16 %v3412_v29 }
  0xd3   : > { %v979_v37 = vmul.f32 %v850_v51, %v587_v25  ;;  %v978_v55 = vmul.f32 %v845_v40, %v586_v15  ;;  %v1158_v57 = vsel %vm1026_vm1, %v1153_v38, %v4566_v32  ;;  %v3366_v5 = vunpack.c.l.bf16 %v3412_v29  ;;  %v656_v51 = vld [vmem:[%s5148_s1 + $0x190] sm:$0xff]  ;;  %3608 = vmatprep.subr.bf16.mxu0 %v4601_v18  ;;  %v3415_v29 = vld [vmem:[%s4186_s16 + $0xc0] sm:$0xff]  }
  0xd4   : > { %v1150_v62 = vsel %vm1026_vm1, %v1145_v34, %v1149_v9  ;;  %v3370_v41 = vunpack.c.l.bf16 %v3413_v47  ;;  %v4583_v10 = vpack.c.bf16 %v977_v17, %v976_v1  ;;  %v533_v2 = vadd.f32 %v4213_v3, %v470_v36 }
  0xd5   : > { %v532_v8 = vadd.f32 %v4213_v3, %v469_v44  ;;  %v535_v40 = vadd.f32 %v4213_v3, %v472_v33  ;;  %v3371_v6 = vunpack.c.h.bf16 %v3413_v47  ;;  %v4591_v24 = vpack.c.bf16 %v979_v37, %v978_v55 }
  0xd6   : > { %v860_v54 = vpop.permute.xlu1 %859  ;;  %v855_v26 = vpop.permute.xlu0 %854  ;;  %1411 = vrot.lane.b32.xlu1 %v1358_v23, %s3961_s30  ;;  %1409 = vrot.lane.b32.xlu0 %v1356_v13, %s3961_s30  ;;  %v534_v60 = vadd.f32 %v4213_v3, %v471_v28  ;;  %v1360_v61 = vsel %vm1329_vm0, %v1357_v50, %v1359_v43  ;;  %v1361_v25 = vrot.slane %v4543_v16, 1  ;;  %v474_v9 = vmul.f32 %v3367_v14, %v4198_v58  ;;  %v657_v50 = vld [vmem:[%s5148_s1 + $0x198] sm:$0xff]  ;;  %v658_v14 = vld [vmem:[%s5148_s1 + $0x1a0] sm:$0xff] }
  0xd7   : > { %v473_v15 = vmul.f32 %v3366_v5, %v4198_v58  ;;  %v475_v13 = vmul.f32 %v3370_v41, %v4198_v58  ;;  %v589_v20 = vmax.f32 %v533_v2, 0.0  ;;  %v588_v23 = vmax.f32 %v532_v8, 0.0 }
  0xd8   : > { %v1163_v35 = vshll.u32 %v4583_v10, 16  ;;  %v476_v17 = vmul.f32 %v3371_v6, %v4198_v58  ;;  %v591_v1 = vmax.f32 %v535_v40, 0.0  ;;  %v590_v38 = vmax.f32 %v534_v60, 0.0 }
  0xd9   : > { %v1362_v34 = vsel %vm1329_vm0, %v1359_v43, %v1361_v25  ;;  %v1171_v47 = vshll.u32 %v4591_v24, 16  ;;  %v537_v33 = vadd.f32 %v4213_v3, %v474_v9  ;;  %v536_v28 = vadd.f32 %v4213_v3, %v473_v15  ;;  %v659_v43 = vld [vmem:[%s5148_s1 + $0x1a8] sm:$0xff] }
  0xda   : > { %v870_v63 = vpop.permute.xlu1 %869  ;;  %v865_v42 = vpop.permute.xlu0 %864  ;;  %1277 = vrot.lane.b32.xlu1 %v1158_v57, %s3962_s10  ;;  %1275 = vrot.lane.b32.xlu0 %v1150_v62, %s3962_s10  ;;  %v538_v37 = vadd.f32 %v4213_v3, %v475_v13  ;;  %v3375_v58 = vunpack.c.h.bf16 %v3414_v22  ;;  %v981_v55 = vmul.f32 %v860_v54, %v589_v20  ;;  %v980_v57 = vmul.f32 %v855_v26, %v588_v23  ;;  %v4629_v20 = vld [vmem:[%s4194_s26] ss:$0 sm:$0xff] }
  0xdb   : > { %v3374_v62 = vunpack.c.l.bf16 %v3414_v22  ;;  %v1165_v5 = vrot.slane %v1163_v35, 1  ;;  %v539_v41 = vadd.f32 %v4213_v3, %v476_v17  ;;  %v3378_v2 = vunpack.c.l.bf16 %v3415_v29 }
  0xdc   : > { %v3379_v8 = vunpack.c.h.bf16 %v3415_v29  ;;  %v983_v40 = vmul.f32 %v870_v63, %v591_v1  ;;  %v982_v54 = vmul.f32 %v865_v42, %v590_v38  ;;  %v1167_v26 = vshrl.u32 %v4583_v10, 16 }
  0xdd   : > { %v1173_v6 = vrot.slane %v1171_v47, 1  ;;  %v593_v60 = vmax.f32 %v537_v33, 0.0  ;;  %v594_v15 = vmax.f32 %v538_v37, 0.0  ;;  %v478_v23 = vmul.f32 %v4629_v20, %v3375_v58  ;;  %v4645_v33 = vld [vmem:[%s4204_s29] ss:$0 sm:$0xff] }
  0xde   : > { %914 = vperm.xlu1 %3908, %v656_v51   ;;  %1413 = vrot.lane.b32.xlu0 %v1360_v61, %s3961_s30  ;;  %v880_v36 = vpop.permute.xlu1 %879  ;;  %v875_v44 = vpop.permute.xlu0 %874  ;;  %v1159_v51 = vshrl.u32 %v4543_v16, 16  ;;  %v592_v61 = vmax.f32 %v536_v28, 0.0  ;;  %v4632_v3 = vpack.c.bf16 %v981_v55, %v980_v57  ;;  %v477_v63 = vmul.f32 %v4629_v20, %v3374_v62 }
  0xdf   : > { %v1169_v42 = vor.u32 %v1167_v26, %v1165_v5  ;;  %v595_v22 = vmax.f32 %v539_v41, 0.0  ;;  %v479_v35 = vmul.f32 %v4629_v20, %v3378_v2  ;;  %v480_v17 = vmul.f32 %v4629_v20, %v3379_v8 }
  0xe0   : > { %v1363_v1 = vrot.slane %v4583_v10, 1  ;;  %v4639_v38 = vpack.c.bf16 %v983_v40, %v982_v54  ;;  %v1365_v47 = vrot.slane %v4591_v24, 1  ;;  %v541_v28 = vadd.f32 %v4645_v33, %v478_v23  ;;  %v661_v54 = vld [vmem:[%s5148_s1 + $0x1b8] sm:$0xff] }
  0xe1   : > { %v984_v37 = vmul.f32 %v875_v44, %v592_v61  ;;  %v540_v58 = vadd.f32 %v4645_v33, %v477_v63  ;;  %v1179_v55 = vshll.u32 %v4632_v3, 16  ;;  %v1175_v61 = vshrl.u32 %v4591_v24, 16 }
  0xe2   : > { %1415 = vrot.lane.b32.xlu1 %v1362_v34, %s3961_s30  ;;  %919 = vperm.xlu0 %3907, %v657_v50   ;;  %v885_v9 = vpop.permute.xlu1 %884  ;;  %v890_v13 = vpop.permute.xlu0 %889  ;;  %v1161_v50 = vor.u32 %v1159_v51, %v4566_v32  ;;  %v1174_v34 = vsel %vm1026_vm1, %v1169_v42, %v1173_v6  ;;  %v985_v32 = vmul.f32 %v880_v36, %v593_v60  ;;  %v1187_v36 = vshll.u32 %v4639_v38, 16 }
  0xe3   : > { %v986_v41 = vmul.f32 %v885_v9, %v594_v15  ;;  %v987_v2 = vmul.f32 %v890_v13, %v595_v22  ;;  %v1366_v8 = vsel %vm1329_vm0, %v1363_v1, %v1365_v47  ;;  %v597_v51 = vmax.f32 %v541_v28, 0.0 }
  0xe4   : > { %v1166_v29 = vsel %vm1026_vm1, %v1161_v50, %v1165_v5  ;;  %v1364_v5 = vsel %vm1329_vm0, %v1361_v25, %v1363_v1  ;;  %v4661_v44 = vpack.c.bf16 %v985_v32, %v984_v37  ;;  %v596_v40 = vmax.f32 %v540_v58, 0.0  ;;  %v660_v25 = vld [vmem:[%s5148_s1 + $0x1b0] sm:$0xff] }
  0xe5   : > { %v1181_v26 = vrot.slane %v1179_v55, 1  ;;  %v4670_v9 = vpack.c.bf16 %v987_v2, %v986_v41  ;;  %v1183_v13 = vshrl.u32 %v4632_v3, 16  ;;  %v1189_v23 = vrot.slane %v1187_v36, 1 }
  0xe6   : > { %929 = vperm.xlu1 %3908, %v659_v43   ;;  %924 = vperm.xlu0 %3907, %v658_v14   ;;  %v900_v57 = vpop.permute.xlu1 %899  ;;  %v895_v62 = vpop.permute.xlu0 %894  ;;  %v542_v43 = vadd.f32 %v4645_v33, %v479_v35  ;;  %v543_v14 = vadd.f32 %v4645_v33, %v480_v17  ;;  %v1177_v50 = vor.u32 %v1175_v61, %v1173_v6  ;;  %v1195_v1 = vshll.u32 %v4661_v44, 16 }
  0xe7   : > { %v989_v22 = vmul.f32 %v900_v57, %v597_v51  ;;  %v988_v35 = vmul.f32 %v895_v62, %v596_v40  ;;  %v1185_v17 = vor.u32 %v1183_v13, %v1181_v26  ;;  %v1369_v28 = vrot.slane %v4639_v38, 1 }
  0xe8   : > { %v598_v60 = vmax.f32 %v542_v43, 0.0  ;;  %v599_v15 = vmax.f32 %v543_v14, 0.0  ;;  %v1203_v55 = vshll.u32 %v4670_v9, 16  ;;  %v1197_v57 = vrot.slane %v1195_v1, 1 }
  0xe9   : > { %v1190_v58 = vsel %vm1026_vm1, %v1185_v17, %v1189_v23  ;;  %v4681_v6 = vpack.c.bf16 %v989_v22, %v988_v35  ;;  %v1191_v43 = vshrl.u32 %v4639_v38, 16  ;;  %v1199_v41 = vshrl.u32 %v4661_v44, 16 }
  0xea   : > { %1281 = vrot.lane.b32.xlu1 %v1174_v34, %s3962_s10  ;;  %1279 = vrot.lane.b32.xlu0 %v1166_v29, %s3962_s10  ;;  %v905_v63 = vpop.permute.xlu1 %904  ;;  %v910_v42 = vpop.permute.xlu0 %909  ;;  %v1182_v34 = vsel %vm1026_vm1, %v1177_v50, %v1181_v26  ;;  %v1367_v29 = vrot.slane %v4632_v3, 1  ;;  %v1205_v2 = vrot.slane %v1203_v55, 1  ;;  %v1371_v40 = vrot.slane %v4661_v44, 1 }
  0xeb   : > { %v990_v32 = vmul.f32 %v905_v63, %v598_v60  ;;  %v991_v37 = vmul.f32 %v910_v42, %v599_v15  ;;  %v1193_v36 = vor.u32 %v1191_v43, %v1189_v23  ;;  %v1211_v51 = vshll.u32 %v4681_v6, 16 }
  0xec   : > { %v1368_v62 = vsel %vm1329_vm0, %v1365_v47, %v1367_v29  ;;  %v1372_v61 = vsel %vm1329_vm0, %v1369_v28, %v1371_v40  ;;  %v1215_v13 = vshrl.u32 %v4681_v6, 16  ;;  %v1207_v63 = vshrl.u32 %v4670_v9, 16 }
  0xed   : > { %v4685_v14 = vpack.c.bf16 %v991_v37, %v990_v32  ;;  %v1213_v60 = vrot.slane %v1211_v51, 1  ;;  %v1375_v17 = vrot.slane %v4681_v6, 1 }
  0xee   : > { %1419 = vrot.lane.b32.xlu1 %v1366_v8, %s3961_s30  ;;  %1417 = vrot.lane.b32.xlu0 %v1364_v5, %s3961_s30  ;;  %v1370_v5 = vsel %vm1329_vm0, %v1367_v29, %v1369_v28  ;;  %v1201_v8 = vor.u32 %v1199_v41, %v1197_v57  ;;  %v1209_v50 = vor.u32 %v1207_v63, %v1205_v2 }
  0xef   : > { %v1219_v26 = vshll.u32 %v4685_v14, 16  ;;  %v1217_v42 = vor.u32 %v1215_v13, %v1213_v60  ;;  %v1377_v1 = vrot.slane %v4685_v14, 1 }
  0xf0   : > { %v1206_v47 = vsel %vm1026_vm1, %v1201_v8, %v1205_v2  ;;  %v1214_v35 = vsel %vm1026_vm1, %v1209_v50, %v1213_v60 }
  0xf1   : > { %v4702_v23 = vrot.slane %v1219_v26, 1 }
  0xf2   : > { %939 = vperm.xlu1 %3908, %v661_v54   ;;  %934 = vperm.xlu0 %3907, %v660_v25   ;;  %v1198_v54 = vsel %vm1026_vm1, %v1193_v36, %v1197_v57  ;;  %v1373_v25 = vrot.slane %v4670_v9, 1 }
  0xf3   : > { %v1222_v22 = vsel %vm1026_vm1, %v1217_v42, %v4702_v23 }
  0xf4   : > { %v1374_v15 = vsel %vm1329_vm0, %v1371_v40, %v1373_v25  ;;  %v1376_v29 = vsel %vm1329_vm0, %v1373_v25, %v1375_v17 }
  0xf6   : > { %1285 = vrot.lane.b32.xlu1 %v1190_v58, %s3962_s10  ;;  %1283 = vrot.lane.b32.xlu0 %v1182_v34, %s3962_s10  ;;  %v1378_v34 = vsel %vm1329_vm0, %v1375_v17, %v1377_v1 }
  0xfa   : > { %1423 = vrot.lane.b32.xlu1 %v1370_v5, %s3961_s30  ;;  %1421 = vrot.lane.b32.xlu0 %v1368_v62, %s3961_s30 }
  0xfe   : > { %1289 = vrot.lane.b32.xlu1 %v1206_v47, %s3962_s10  ;;  %1287 = vrot.lane.b32.xlu0 %v1198_v54, %s3962_s10 }
 0x102   : > { %1427 = vrot.lane.b32.xlu1 %v1374_v15, %s3961_s30  ;;  %1425 = vrot.lane.b32.xlu0 %v1372_v61, %s3961_s30 }
 0x106   : > { %1293 = vrot.lane.b32.xlu1 %v1222_v22, %s3962_s10  ;;  %1291 = vrot.lane.b32.xlu0 %v1214_v35, %s3962_s10 }
 0x108   : > { %v1386_v28 = vpop.permute.xlu0 %1385 }
 0x10a   : > { %1431 = vrot.lane.b32.xlu1 %v1378_v34, %s3961_s30  ;;  %1429 = vrot.lane.b32.xlu0 %v1376_v29, %s3961_s30 }
 0x10c   : > { %v1388_v32 = vpop.permute.xlu1 %1387 }
 0x110   : > { %v1390_v37 = vpop.permute.xlu0 %1389 }
 0x114   : > { %v1392_v58 = vpop.permute.xlu1 %1391 }
 0x118   : > { %v1394_v55 = vpop.permute.xlu0 %1393 }
 0x11c   : > { %v1396_v57 = vpop.permute.xlu1 %1395 }
 0x120   : > { %v1250_v62 = vpop.permute.xlu1 %1249  ;;  %v1398_v43 = vpop.permute.xlu0 %1397 }
 0x121   : > { %v1443_v5 = vsel %vm1439_vm2, %v4242_v52, %v1250_v62 }
 0x122   : > { %v1499_v41 = vsel %vm1494_vm3, %v1443_v5, %v1388_v32 }
 0x123   : > { %1578 = vst.msk [vmem:[#allocation2 + $0x8] sm:$0xff] %vm1576_vm4, %v1499_v41 }
 0x124   : > { %v1400_v2 = vpop.permute.xlu1 %1399  ;;  %v1248_v8 = vpop.permute.xlu0 %1247 }
 0x125   : > { %v1441_v36 = vsel %vm1439_vm2, %v4244_v53, %v1248_v8 }
 0x126   : > { %v1496_v51 = vsel %vm1494_vm3, %v1441_v36, %v1386_v28 }
 0x127   : > { %1577 = vst.msk [vmem:[#allocation2] sm:$0xff] %vm1576_vm4, %v1496_v51 }
 0x128   : > { %v1254_v40 = vpop.permute.xlu1 %1253  ;;  %v1402_v47 = vpop.permute.xlu0 %1401 }
 0x129   : > { %v1447_v54 = vsel %vm1439_vm2, %v4279_v30, %v1254_v40 }
 0x12a   : > { %v1505_v52 = vsel %vm1494_vm3, %v1447_v54, %v1392_v58  ;;  %v1605_v15 = vld [vmem:[#allocation2 + $0x8] sm:$0xff] }
 0x12b   : > { %1580 = vst.msk [vmem:[#allocation2 + $0x18] sm:$0xff] %vm1576_vm4, %v1505_v52 }
 0x12c   : > { %v1404_v25 = vpop.permute.xlu1 %1403  ;;  %v1252_v26 = vpop.permute.xlu0 %1251 }
 0x12d   : > { %v1445_v60 = vsel %vm1439_vm2, %v4260_v11, %v1252_v26 }
 0x12e   : > { %v1502_v53 = vsel %vm1494_vm3, %v1445_v60, %v1390_v37  ;;  %v1604_v61 = vld [vmem:[#allocation2] sm:$0xff] }
 0x12f   : > { %1579 = vst.msk [vmem:[#allocation2 + $0x10] sm:$0xff] %vm1576_vm4, %v1502_v53  ;;  %3506 = vmatprep.mubr.msk.bf16.mxu1 %vm1576_vm4, %v1604_v61 }
 0x130   : > { %v1258_v13 = vpop.permute.xlu1 %1257  ;;  %3507 = vmatmul.mubr.msk.bf16.vlgmr.msra.gmra.mrb[0].mxu1 %vm1576_vm4, %v1605_v15  ;;  %v1256_v30 = vpop.permute.xlu0 %1255 }
 0x131   : > { %v1451_v63 = vsel %vm1439_vm2, %v4326_v7, %v1258_v13  ;;  %v1449_v42 = vsel %vm1439_vm2, %v4307_v49, %v1256_v30  ;;  %3665 = vmatpush3.bf16.msra.mxu1 %v4401_v31  ;;  %v2045_v7 = vld [vmem:[#allocation2 + $0x8] sm:$0xf0] }
 0x132   : > { %v1511_v11 = vsel %vm1494_vm3, %v1451_v63, %v1396_v57  ;;  %v1508_v50 = vsel %vm1494_vm3, %v1449_v42, %v1394_v55  ;;  %3663 = vmatprep.subr.bf16.mxu1 %v4430_v56  ;;  %v4748_v17 = vld [vmem:[#allocation2 + $0x18] sm:$0xff] }
 0x133   : > { %1582 = vst.msk [vmem:[#allocation2 + $0x28] sm:$0xff] %vm1576_vm4, %v1511_v11  ;;  %1581 = vst.msk [vmem:[#allocation2 + $0x20] sm:$0xff] %vm1576_vm4, %v1508_v50 }
 0x134   : > { %v1262_v22 = vpop.permute.xlu1 %1261  ;;  %v1260_v35 = vpop.permute.xlu0 %1259 }
 0x135   : > { %v1455_v49 = vsel %vm1439_vm2, %v4367_v48, %v1262_v22  ;;  %v1453_v31 = vsel %vm1439_vm2, %v4351_v27, %v1260_v35  ;;  %3666 = vmatpush3.bf16.msra.mxu1 %v4430_v56  ;;  %v2103_v48 = vrot.slane %v2045_v7, 4  ;;  %v2106_v27 = vrot.slane %v4748_v17, 4 }
 0x136   : > { %v1517_v34 = vsel %vm1494_vm3, %v1455_v49, %v1400_v2  ;;  %v1514_v29 = vsel %vm1494_vm3, %v1453_v31, %v1398_v43  ;;  %v1606_v28 = vld [vmem:[#allocation2 + $0x10] sm:$0xff]  ;;  %3664 = vmatprep.subr.bf16.mxu1 %v4455_v21  ;;  %v3916_v43 = vld [vmem:[%s4341_s9 + $0x38] sm:$0xff]  }
 0x137   : > { %1584 = vst.msk [vmem:[#allocation2 + $0x38] sm:$0xff] %vm1576_vm4, %v1517_v34  ;;  %1583 = vst.msk [vmem:[#allocation2 + $0x30] sm:$0xff] %vm1576_vm4, %v1514_v29  ;;  %3510 = vmatprep.mubr.msk.bf16.mxu1 %vm1576_vm4, %v1606_v28  ;;  %v2104_v32 = vrot.slane %v1606_v28, 4 }
 0x138   : > { %v1266_v56 = vpop.permute.xlu1 %1265  ;;  %3511 = vmatmul.mubr.msk.bf16.gmra.mrb[4].mxu1 %vm1576_vm4, %v4748_v17  ;;  %v1264_v37 = vpop.permute.xlu0 %1263 }
 0x139   : > { %v1459_v58 = vsel %vm1439_vm2, %v4417_v46, %v1266_v56  ;;  %v1457_v55 = vsel %vm1439_vm2, %v4385_v19, %v1264_v37  ;;  %v2105_v57 = vsel %vm2102_vm5, %v2103_v48, %v2104_v32  ;;  %v2107_v62 = vsel %vm2102_vm5, %v2104_v32, %v2106_v27  ;;  %3667 = vmatpush3.bf16.msra.mxu1 %v4455_v21  ;;  %v3416_v32 = vld [vmem:[%s4186_s16 + $0xc8] sm:$0xff]  }
 0x13a   : > { %v1523_v5 = vsel %vm1494_vm3, %v1459_v58, %v1404_v25  ;;  %v1520_v41 = vsel %vm1494_vm3, %v1457_v55, %v1402_v47  ;;  %3560 = vmatprep.mubr.msk.bf16.mxu0 %vm1576_vm4, %v2105_v57  ;;  %v4775_v2 = vld [vmem:[#allocation2 + $0x20] sm:$0xff]  ;;  %v4783_v46 = vld [vmem:[#allocation2 + $0x28] sm:$0xff]  ;;  %v3417_v58 = vld [vmem:[%s4186_s16 + $0xd0] sm:$0xff]   ;;  %v3382_v57 = vunpack.c.l.bf16 %v3416_v32 }
 0x13b   : > { %1586 = vst.msk [vmem:[#allocation2 + $0x48] sm:$0xff] %vm1576_vm4, %v1523_v5  ;;  %1585 = vst.msk [vmem:[#allocation2 + $0x40] sm:$0xff] %vm1576_vm4, %v1520_v41  ;;  %3514 = vmatprep.mubr.msk.bf16.mxu1 %vm1576_vm4, %v4775_v2  ;;  %3561 = vmatmul.mubr.msk.bf16.vlgmr.msra.gmra.mrb[0].mxu0 %vm1576_vm4, %v2107_v62  ;;  %v2108_v19 = vrot.slane %v4775_v2, 4  ;;  %v2110_v40 = vrot.slane %v4783_v46, 4  ;;  %v3917_v47 = vld [vmem:[%s4341_s9 + $0x40] sm:$0xff]   ;;  %v3383_v62 = vunpack.c.h.bf16 %v3416_v32  ;;  %v3387_v41 = vunpack.c.h.bf16 %v3417_v58 }
 0x13c   : > { %v1270_v21 = vpop.permute.xlu1 %1269  ;;  %v1268_v8 = vpop.permute.xlu0 %1267  ;;  %3609 = vmatpush3.bf16.msra.mxu0 %v4601_v18 }
 0x13d   : > { %v2109_v36 = vsel %vm2102_vm5, %v2106_v27, %v2108_v19  ;;  %3610 = vmatprep.subr.bf16.mxu0 %v3916_v43  ;;  %v1463_v52 = vsel %vm1439_vm2, %v4478_v45, %v1270_v21  ;;  %v1461_v25 = vsel %vm1439_vm2, %v4442_v12, %v1268_v8  ;;  %v2111_v45 = vsel %vm2102_vm5, %v2108_v19, %v2110_v40 }
 0x13e   : > { %3564 = vmatprep.mubr.msk.bf16.mxu0 %vm1576_vm4, %v2109_v36  ;;  %v4788_v51 = vld [vmem:[#allocation2 + $0x30] sm:$0xff]  ;;  %v4808_v61 = vld [vmem:[#allocation2 + $0x38] sm:$0xff]  ;;  %v3386_v19 = vunpack.c.l.bf16 %v3417_v58  ;;  %v481_v8 = vmul.f32 %v4629_v20, %v3382_v57  ;;  %v482_v36 = vmul.f32 %v4629_v20, %v3383_v62  ;;  %v1223_v58 = vshrl.u32 %v4685_v14, 16 }
 0x13f   : > { %v2112_v54 = vrot.slane %v4788_v51, 4  ;;  %v2114_v63 = vrot.slane %v4808_v61, 4 }
 0x140   : > { %v1408_v26 = vpop.permute.xlu1 %1407  ;;  %3515 = vmatmul.mubr.msk.bf16.gmra.mrb[8].mxu1 %vm1576_vm4, %v4783_v46  ;;  %v1406_v18 = vpop.permute.xlu0 %1405  ;;  %3611 = vmatpush3.bf16.msra.mxu0 %v3916_v43 }
 0x141   : > { %v1529_v60 = vsel %vm1494_vm3, %v1463_v52, %v1408_v26  ;;  %v1526_v53 = vsel %vm1494_vm3, %v1461_v25, %v1406_v18  ;;  %3518 = vmatprep.mubr.msk.bf16.mxu1 %vm1576_vm4, %v4788_v51  ;;  %3612 = vmatprep.subr.bf16.mxu0 %v3917_v47  ;;  %v2113_v12 = vsel %vm2102_vm5, %v2110_v40, %v2112_v54 }
 0x142   : > { %1588 = vst.msk [vmem:[#allocation2 + $0x58] sm:$0xff] %vm1576_vm4, %v1529_v60  ;;  %1587 = vst.msk [vmem:[#allocation2 + $0x50] sm:$0xff] %vm1576_vm4, %v1526_v53  ;;  %v4811_v30 = vld [vmem:[#allocation2 + $0x40] sm:$0xff]  ;;  %v4830_v31 = vld [vmem:[#allocation2 + $0x48] sm:$0xff]  ;;  %v483_v52 = vmul.f32 %v4629_v20, %v3386_v19  ;;  %v544_v26 = vadd.f32 %v4645_v33, %v481_v8  ;;  %v545_v18 = vadd.f32 %v4645_v33, %v482_v36 }
 0x143   : > { %3565 = vmatmul.mubr.msk.bf16.gmra.mrb[4].mxu0 %vm1576_vm4, %v2111_v45  ;;  %v2116_v42 = vrot.slane %v4811_v30, 4  ;;  %v2118_v28 = vrot.slane %v4830_v31, 4 }
 0x144   : > { %v1274_v15 = vpop.permute.xlu1 %1273  ;;  %3568 = vmatprep.mubr.msk.bf16.mxu0 %vm1576_vm4, %v2113_v12  ;;  %v1272_v13 = vpop.permute.xlu0 %1271  ;;  %3613 = vmatpush3.bf16.msra.mxu0 %v3917_v47  ;;  %v484_v47 = vmul.f32 %v4629_v20, %v3387_v41 }
 0x145   : > { %v1467_v11 = vsel %vm1439_vm2, %v4510_v39, %v1274_v15  ;;  %v1465_v50 = vsel %vm1439_vm2, %v4488_v0, %v1272_v13  ;;  %v2115_v0 = vsel %vm2102_vm5, %v2112_v54, %v2114_v63  ;;  %v2117_v39 = vsel %vm2102_vm5, %v2114_v63, %v2116_v42 }
 0x146   : > { %v2119_v55 = vsel %vm2102_vm5, %v2116_v42, %v2118_v28  ;;  %v547_v45 = vadd.f32 %v4645_v33, %v484_v47  ;;  %v546_v15 = vadd.f32 %v4645_v33, %v483_v52  ;;  %v600_v13 = vmax.f32 %v544_v26, 0.0 }
 0x147   : > { %v601_v63 = vmax.f32 %v545_v18, 0.0 }
 0x148   : > { %v1412_v22 = vpop.permute.xlu1 %1411  ;;  %3519 = vmatmul.mubr.msk.bf16.gmra.mrb[12].mxu1 %vm1576_vm4, %v4808_v61  ;;  %v1410_v35 = vpop.permute.xlu0 %1409 }
 0x149   : > { %v1535_v7 = vsel %vm1494_vm3, %v1467_v11, %v1412_v22  ;;  %v1532_v49 = vsel %vm1494_vm3, %v1465_v50, %v1410_v35  ;;  %3522 = vmatprep.mubr.msk.bf16.mxu1 %vm1576_vm4, %v4811_v30  ;;  %v4833_v29 = vld [vmem:[#allocation2 + $0x50] sm:$0xff]  ;;  %v4850_v43 = vld [vmem:[#allocation2 + $0x58] sm:$0xff]  ;;  %v603_v22 = vmax.f32 %v547_v45, 0.0 }
 0x14a   : > { %1590 = vst.msk [vmem:[#allocation2 + $0x68] sm:$0xff] %vm1576_vm4, %v1535_v7  ;;  %1589 = vst.msk [vmem:[#allocation2 + $0x60] sm:$0xff] %vm1576_vm4, %v1532_v49  ;;  %v2120_v48 = vrot.slane %v4833_v29, 4  ;;  %v2122_v21 = vrot.slane %v4850_v43, 4  ;;  %v3418_v11 = vld [vmem:[%s4186_s16 + $0xd8] sm:$0xff]   ;;  %s3862_s16 = smul.u32 48, %s5164_s18 }
 0x14b   : > { %3569 = vmatmul.mubr.msk.bf16.gmra.mrb[8].mxu0 %vm1576_vm4, %v2115_v0  ;;  %v602_v0 = vmax.f32 %v546_v15, 0.0 }
 0x14c   : > { %3572 = vmatprep.mubr.msk.bf16.mxu0 %vm1576_vm4, %v2117_v39  ;;  %v1276_v34 = vpop.permute.xlu0 %1275  ;;  %v1278_v54 = vpop.permute.xlu1 %1277  ;;  %v2123_v25 = vsel %vm2102_vm5, %v2120_v48, %v2122_v21  ;;  %v3391_v39 = vunpack.c.h.bf16 %v3418_v11 }
 0x14d   : > { %v1469_v27 = vsel %vm1439_vm2, %v4519_v59, %v1276_v34  ;;  %v2121_v59 = vsel %vm2102_vm5, %v2118_v28, %v2120_v48  ;;  %v1471_v35 = vsel %vm1439_vm2, %v4536_v4, %v1278_v54  ;;  %v3390_v34 = vunpack.c.l.bf16 %v3418_v11 }
 0x14f   : > { %v485_v41 = vmul.f32 %v4629_v20, %v3390_v34 }
 0x150   : > { %3523 = vmatmul.mubr.msk.bf16.gmra.mrb[16].mxu1 %vm1576_vm4, %v4830_v31  ;;  %v1414_v56 = vpop.permute.xlu0 %1413 }
 0x151   : > { %v1538_v37 = vsel %vm1494_vm3, %v1469_v27, %v1414_v56  ;;  %3526 = vmatprep.mubr.msk.bf16.mxu1 %vm1576_vm4, %v4833_v29  ;;  %v4853_v5 = vld [vmem:[#allocation2 + $0x60] sm:$0xff]  ;;  %v4870_v53 = vld [vmem:[#allocation2 + $0x68] sm:$0xff]  ;;  %v548_v52 = vadd.f32 %v4645_v33, %v485_v41 }
 0x152   : > { %1591 = vst.msk [vmem:[#allocation2 + $0x70] sm:$0xff] %vm1576_vm4, %v1538_v37  ;;  %v2124_v40 = vrot.slane %v4853_v5, 4  ;;  %v2126_v42 = vrot.slane %v4870_v53, 4 }
 0x153   : > { %3573 = vmatmul.mubr.msk.bf16.gmra.mrb[12].mxu0 %vm1576_vm4, %v2119_v55  ;;  %v486_v55 = vmul.f32 %v4629_v20, %v3391_v39 }
 0x154   : > { %3576 = vmatprep.mubr.msk.bf16.mxu0 %vm1576_vm4, %v2121_v59  ;;  %v2125_v60 = vsel %vm2102_vm5, %v2122_v21, %v2124_v40  ;;  %v2127_v27 = vsel %vm2102_vm5, %v2124_v40, %v2126_v42  ;;  %v1225_v21 = vor.u32 %v1223_v58, %v4702_v23 }
 0x155   : > { %v549_v54 = vadd.f32 %v4645_v33, %v486_v55 }
 0x158   : > { %3527 = vmatmul.mubr.msk.bf16.gmra.mrb[20].mxu1 %vm1576_vm4, %v4850_v43 }
 0x159   : > { %3530 = vmatprep.mubr.msk.bf16.mxu1 %vm1576_vm4, %v4853_v5  ;;  %v4879_v50 = vld [vmem:[#allocation2 + $0x70] sm:$0xff] }
 0x15b   : > { %3577 = vmatmul.mubr.msk.bf16.gmra.mrb[16].mxu0 %vm1576_vm4, %v2123_v25 }
 0x15c   : > { %3580 = vmatprep.mubr.msk.bf16.mxu0 %vm1576_vm4, %v2125_v60 }
 0x15d   : > { %v915_v12 = vpop.permute.xlu1 %914 }
 0x15e   : > { %v992_v28 = vmul.f32 %v915_v12, %v600_v13  ;;  %v605_v13 = vmax.f32 %v549_v54, 0.0 }
 0x160   : > { %3531 = vmatmul.mubr.msk.bf16.gmra.mrb[24].mxu1 %vm1576_vm4, %v4870_v53 }
 0x161   : > { %v1416_v7 = vpop.permute.xlu1 %1415  ;;  %3534 = vmatprep.mubr.msk.bf16.mxu1 %vm1576_vm4, %v4879_v50  ;;  %v920_v49 = vpop.permute.xlu0 %919 }
 0x162   : > { %v1541_v48 = vsel %vm1494_vm3, %v1471_v35, %v1416_v7  ;;  %v993_v32 = vmul.f32 %v920_v49, %v601_v63  ;;  %v604_v63 = vmax.f32 %v548_v52, 0.0 }
 0x163   : > { %1592 = vst.msk [vmem:[#allocation2 + $0x78] sm:$0xff] %vm1576_vm4, %v1541_v48  ;;  %3581 = vmatmul.mubr.msk.bf16.gmra.mrb[20].mxu0 %vm1576_vm4, %v2127_v27 }
 0x164   : > { %v4891_v4 = vpack.c.bf16 %v993_v32, %v992_v28  ;;  %3614 = vmatprep.mubr.msk.bf16.mxu0 %vm1576_vm4, %v4748_v17 }
 0x165   : > { %v930_v56 = vpop.permute.xlu1 %929  ;;  %v925_v37 = vpop.permute.xlu0 %924 }
 0x166   : > { %v995_v57 = vmul.f32 %v930_v56, %v603_v22  ;;  %v994_v62 = vmul.f32 %v925_v37, %v602_v0  ;;  %v1227_v59 = vshll.u32 %v4891_v4, 16  ;;  %v1379_v20 = vrot.slane %v4891_v4, 1 }
 0x167   : > { %v1231_v23 = vshrl.u32 %v4891_v4, 16 }
 0x168   : > { %v4899_v19 = vpack.c.bf16 %v995_v57, %v994_v62  ;;  %v1229_v8 = vrot.slane %v1227_v59, 1 }
 0x169   : > { %v1282_v36 = vpop.permute.xlu1 %1281  ;;  %v1280_v40 = vpop.permute.xlu0 %1279 }
 0x16a   : > { %v4902_v17 = vld [vmem:[#allocation2 + $0x78] sm:$0xff]  ;;  %v1230_v47 = vsel %vm1026_vm1, %v1225_v21, %v1229_v8  ;;  %v1235_v25 = vshll.u32 %v4899_v19, 16  ;;  %v1475_v33 = vsel %vm1439_vm2, %v4583_v10, %v1282_v36  ;;  %v1473_v26 = vsel %vm1439_vm2, %v4543_v16, %v1280_v40 }
 0x16b   : > { %3535 = vmatmul.mubr.msk.bf16.gmra.mrb[28].mxu1 %vm1576_vm4, %v4902_v17  ;;  %3615 = vmatmul.mubr.msk.bf16.vlgmr.msra.gmra.mrb[0].mxu0 %vm1576_vm4, %v4775_v2  ;;  %v1233_v2 = vor.u32 %v1231_v23, %v1229_v8  ;;  %v1380_v10 = vsel %vm1329_vm0, %v1377_v1, %v1379_v20  ;;  %v1239_v27 = vshrl.u32 %v4899_v19, 16 }
 0x16c   : > { %1295 = vrot.lane.b32.xlu0 %v1230_v47, %s3962_s10  ;;  %3618 = vmatprep.mubr.msk.bf16.mxu0 %vm1576_vm4, %v4783_v46  ;;  %v1237_v45 = vrot.slane %v1235_v25, 1  ;;  %v1381_v46 = vrot.slane %v4899_v19, 1 }
 0x16d   : > { %v1420_v18 = vpop.permute.xlu1 %1419  ;;  %v1418_v60 = vpop.permute.xlu0 %1417 }
 0x16e   : > { %v1547_v12 = vsel %vm1494_vm3, %v1475_v33, %v1420_v18  ;;  %v1544_v15 = vsel %vm1494_vm3, %v1473_v26, %v1418_v60  ;;  %v1238_v16 = vsel %vm1026_vm1, %v1233_v2, %v1237_v45  ;;  %v1382_v49 = vsel %vm1329_vm0, %v1379_v20, %v1381_v46 }
 0x16f   : > { %1594 = vst.msk [vmem:[#allocation2 + $0x88] sm:$0xff] %vm1576_vm4, %v1547_v12  ;;  %1593 = vst.msk [vmem:[#allocation2 + $0x80] sm:$0xff] %vm1576_vm4, %v1544_v15  ;;  %1297 = vrot.lane.b32.xlu1 %v1238_v16, %s3962_s10  ;;  %v2130_v60 = vrot.slane %v4902_v17, 4 }
 0x170   : > { %1433 = vrot.lane.b32.xlu0 %v1380_v10, %s3961_s30 }
 0x171   : > { %v940_v11 = vpop.permute.xlu1 %939  ;;  %v935_v22 = vpop.permute.xlu0 %934 }
 0x172   : > { %v997_v35 = vmul.f32 %v940_v11, %v605_v13  ;;  %v996_v7 = vmul.f32 %v935_v22, %v604_v63 }
 0x173   : > { %3619 = vmatmul.mubr.msk.bf16.gmra.mrb[4].mxu0 %vm1576_vm4, %v4788_v51  ;;  %1435 = vrot.lane.b32.xlu1 %v1382_v49, %s3961_s30 }
 0x174   : > { %v1025_v0 = vpack.c.bf16 %v997_v35, %v996_v7  ;;  %3622 = vmatprep.mubr.msk.bf16.mxu0 %vm1576_vm4, %v4808_v61  ;;  %v1241_v61 = vor.u32 %v1239_v27, %v1237_v45 }
 0x175   : > { %v1286_v1 = vpop.permute.xlu1 %1285  ;;  %v1284_v39 = vpop.permute.xlu0 %1283 }
 0x176   : > { %v1243_v34 = vshll.u32 %v1025_v0, 16  ;;  %v1383_v28 = vrot.slane %v1025_v0, 1  ;;  %v4938_v48 = vld [vmem:[#allocation2 + $0x80] sm:$0xff]  ;;  %v4940_v32 = vld [vmem:[#allocation2 + $0x88] sm:$0xff]  ;;  %v1479_v37 = vsel %vm1439_vm2, %v4632_v3, %v1286_v1  ;;  %v1477_v58 = vsel %vm1439_vm2, %v4591_v24, %v1284_v39 }
 0x177   : > { %3538 = vmatprep.mubr.msk.bf16.mxu1 %vm1576_vm4, %v4938_v48  ;;  %v2132_v2 = vrot.slane %v4938_v48, 4 }
 0x178   : > { %v1245_v51 = vrot.slane %v1243_v34, 1  ;;  %3539 = vmatmul.mubr.msk.bf16.gmra.mrb[32].mxu1 %vm1576_vm4, %v4940_v32  ;;  %v1384_v56 = vsel %vm1329_vm0, %v1381_v46, %v1383_v28 }
 0x179   : > { %v1424_v55 = vpop.permute.xlu1 %1423  ;;  %1437 = vrot.lane.b32.xlu1 %v1384_v56, %s3961_s30  ;;  %v1422_v57 = vpop.permute.xlu0 %1421  ;;  %s3863_s30 = smul.u32 192, %s5168_s19 }
 0x17a   : > { %v1553_v62 = vsel %vm1494_vm3, %v1479_v37, %v1424_v55  ;;  %v1550_v59 = vsel %vm1494_vm3, %v1477_v58, %v1422_v57  ;;  %v1246_v41 = vsel %vm1026_vm1, %v1241_v61, %v1245_v51 }
 0x17b   : > { %1596 = vst.msk [vmem:[#allocation2 + $0x98] sm:$0xff] %vm1576_vm4, %v1553_v62  ;;  %1595 = vst.msk [vmem:[#allocation2 + $0x90] sm:$0xff] %vm1576_vm4, %v1550_v59  ;;  %3623 = vmatmul.mubr.msk.bf16.gmra.mrb[8].mxu0 %vm1576_vm4, %v4811_v30  ;;  %1299 = vrot.lane.b32.xlu0 %v1246_v41, %s3962_s10  ;;  %s308_s7 = sadd.s32 %s3863_s30, %s3862_s16 }
 0x17c   : > { %3626 = vmatprep.mubr.msk.bf16.mxu0 %vm1576_vm4, %v4830_v31  ;;  %s3182_s8 = sshll.u32 %s308_s7, 3 }
 0x17d   : > { %v1290_v24 = vpop.permute.xlu1 %1289  ;;  %v1288_v3 = vpop.permute.xlu0 %1287  ;;  %s5074_s11 = scalar_lea.vmem %s5152_s5, %s3182_s8 }
 0x17e   : > { %v1483_v21 = vsel %vm1439_vm2, %v4661_v44, %v1290_v24  ;;  %v1481_v8 = vsel %vm1439_vm2, %v4639_v38, %v1288_v3 }
 0x181   : > { %v1428_v36 = vpop.permute.xlu1 %1427  ;;  %v1426_v40 = vpop.permute.xlu0 %1425 }
 0x182   : > { %v1559_v47 = vsel %vm1494_vm3, %v1483_v21, %v1428_v36  ;;  %v1556_v54 = vsel %vm1494_vm3, %v1481_v8, %v1426_v40  ;;  %v1622_v30 = vld [vmem:[#allocation2 + $0x90] sm:$0xff]  ;;  %v1623_v52 = vld [vmem:[#allocation2 + $0x98] sm:$0xff] }
 0x183   : > { %1598 = vst.msk [vmem:[#allocation2 + $0xa8] sm:$0xff] %vm1576_vm4, %v1559_v47  ;;  %1597 = vst.msk [vmem:[#allocation2 + $0xa0] sm:$0xff] %vm1576_vm4, %v1556_v54  ;;  %3542 = vmatprep.mubr.msk.bf16.mxu1 %vm1576_vm4, %v1622_v30  ;;  %3627 = vmatmul.mubr.msk.bf16.gmra.mrb[12].mxu0 %vm1576_vm4, %v4833_v29  ;;  %v2136_v45 = vrot.slane %v1622_v30, 4  ;;  %v2138_v15 = vrot.slane %v1623_v52, 4 }
 0x184   : > { %3543 = vmatmul.mubr.msk.bf16.gmra.mrb[36].mxu1 %vm1576_vm4, %v1623_v52  ;;  %3630 = vmatprep.mubr.msk.bf16.mxu0 %vm1576_vm4, %v4850_v43 }
 0x185   : > { %v1294_v38 = vpop.permute.xlu1 %1293  ;;  %v1292_v44 = vpop.permute.xlu0 %1291  ;;  %v2139_v63 = vsel %vm2102_vm5, %v2136_v45, %v2138_v15 }
 0x186   : > { %v1487_v31 = vsel %vm1439_vm2, %v4681_v6, %v1294_v38  ;;  %v1485_v20 = vsel %vm1439_vm2, %v4670_v9, %v1292_v44  ;;  %v2128_v9 = vrot.slane %v4879_v50, 4 }
 0x189   : > { %v1432_v23 = vpop.permute.xlu1 %1431  ;;  %v1430_v25 = vpop.permute.xlu0 %1429 }
 0x18a   : > { %v1565_v33 = vsel %vm1494_vm3, %v1487_v31, %v1432_v23  ;;  %v1562_v26 = vsel %vm1494_vm3, %v1485_v20, %v1430_v25  ;;  %v1624_v29 = vld [vmem:[#allocation2 + $0xa0] sm:$0xff]  ;;  %v1625_v18 = vld [vmem:[#allocation2 + $0xa8] sm:$0xff] }
 0x18b   : > { %1600 = vst.msk [vmem:[#allocation2 + $0xb8] sm:$0xff] %vm1576_vm4, %v1565_v33  ;;  %1599 = vst.msk [vmem:[#allocation2 + $0xb0] sm:$0xff] %vm1576_vm4, %v1562_v26  ;;  %3546 = vmatprep.mubr.msk.bf16.mxu1 %vm1576_vm4, %v1624_v29  ;;  %3631 = vmatmul.mubr.msk.bf16.gmra.mrb[16].mxu0 %vm1576_vm4, %v4853_v5  ;;  %v2129_v5 = vsel %vm2102_vm5, %v2126_v42, %v2128_v9  ;;  %v2134_v42 = vrot.slane %v4940_v32, 4  ;;  %v2140_v13 = vrot.slane %v1624_v29, 4  ;;  %v2142_v16 = vrot.slane %v1625_v18, 4 }
 0x18c   : > { %3547 = vmatmul.mubr.msk.bf16.gmra.mrb[40].mxu1 %vm1576_vm4, %v1625_v18  ;;  %3634 = vmatprep.mubr.msk.bf16.mxu0 %vm1576_vm4, %v4870_v53  ;;  %v2133_v53 = vsel %vm2102_vm5, %v2130_v60, %v2132_v2 }
 0x18d   : > { %v2137_v12 = vsel %vm2102_vm5, %v2134_v42, %v2136_v45  ;;  %v2141_v10 = vsel %vm2102_vm5, %v2138_v15, %v2140_v13  ;;  %v2143_v11 = vsel %vm2102_vm5, %v2140_v13, %v2142_v16 }
 0x192   : > { %v1626_v6 = vld [vmem:[#allocation2 + $0xb0] sm:$0xff]  ;;  %v1627_v43 = vld [vmem:[#allocation2 + $0xb8] sm:$0xff] }
 0x193   : > { %3550 = vmatprep.mubr.msk.bf16.mxu1 %vm1576_vm4, %v1626_v6  ;;  %3635 = vmatmul.mubr.msk.bf16.gmra.mrb[20].mxu0 %vm1576_vm4, %v4879_v50  ;;  %v2131_v50 = vsel %vm2102_vm5, %v2128_v9, %v2130_v60  ;;  %v2144_v46 = vrot.slane %v1626_v6, 4  ;;  %v2146_v35 = vrot.slane %v1627_v43, 4 }
 0x194   : > { %3551 = vmatmul.mubr.msk.bf16.gmra.mrb[44].mxu1 %vm1576_vm4, %v1627_v43  ;;  %3638 = vmatprep.mubr.msk.bf16.mxu0 %vm1576_vm4, %v4902_v17  ;;  %v2135_v17 = vsel %vm2102_vm5, %v2132_v2, %v2134_v42 }
 0x195   : > { %3584 = vmatprep.mubr.msk.bf16.mxu1 %vm1576_vm4, %v2129_v5  ;;  %v2145_v22 = vsel %vm2102_vm5, %v2142_v16, %v2144_v46  ;;  %v2147_v7 = vsel %vm2102_vm5, %v2144_v46, %v2146_v35 }
 0x19b   : > { %3639 = vmatmul.mubr.msk.bf16.gmra.mrb[24].mxu0 %vm1576_vm4, %v4938_v48 }
 0x19c   : > { %3585 = vmatmul.mubr.msk.bf16.vlgmr.msra.gmra.mrb[24].mxu1 %vm1576_vm4, %v2131_v50  ;;  %3642 = vmatprep.mubr.msk.bf16.mxu0 %vm1576_vm4, %v4940_v32 }
 0x19d   : > { %3588 = vmatprep.mubr.msk.bf16.mxu1 %vm1576_vm4, %v2133_v53 }
 0x1a3   : > { %3643 = vmatmul.mubr.msk.bf16.gmra.mrb[28].mxu0 %vm1576_vm4, %v1622_v30 }
 0x1a4   : > { %3589 = vmatmul.mubr.msk.bf16.gmra.mrb[28].mxu1 %vm1576_vm4, %v2135_v17  ;;  %3646 = vmatprep.mubr.msk.bf16.mxu0 %vm1576_vm4, %v1623_v52 }
 0x1a5   : > { %3592 = vmatprep.mubr.msk.bf16.mxu1 %vm1576_vm4, %v2137_v12 }
 0x1ab   : > { %3647 = vmatmul.mubr.msk.bf16.gmra.mrb[32].mxu0 %vm1576_vm4, %v1624_v29 }
 0x1ac   : > { %3593 = vmatmul.mubr.msk.bf16.gmra.mrb[32].mxu1 %vm1576_vm4, %v2139_v63  ;;  %3650 = vmatprep.mubr.msk.bf16.mxu0 %vm1576_vm4, %v1625_v18 }
 0x1ad   : > { %3596 = vmatprep.mubr.msk.bf16.mxu1 %vm1576_vm4, %v2141_v10 }
 0x1b3   : > { %3651 = vmatmul.mubr.msk.bf16.gmra.mrb[36].mxu0 %vm1576_vm4, %v1626_v6 }
 0x1b4   : > { %3597 = vmatmul.mubr.msk.bf16.gmra.mrb[36].mxu1 %vm1576_vm4, %v2143_v11  ;;  %3654 = vmatprep.mubr.msk.bf16.mxu0 %vm1576_vm4, %v1627_v43 }
 0x1b5   : > { %3600 = vmatprep.mubr.msk.bf16.mxu1 %vm1576_vm4, %v2145_v22 }
 0x1bc   : > { %3601 = vmatmul.mubr.msk.bf16.gmra.mrb[40].mxu1 %vm1576_vm4, %v2147_v7 }
 0x1de   : > { %v1296_v49 = vpop.permute.xlu0 %1295 }
 0x1df   : > { %v1489_v0 = vsel %vm1439_vm2, %v4685_v14, %v1296_v49 }
 0x1e1   : > { %v1298_v1 = vpop.permute.xlu1 %1297 }
 0x1e2   : > { %v1434_v39 = vpop.permute.xlu0 %1433  ;;  %v1491_v28 = vsel %vm1439_vm2, %v4891_v4, %v1298_v1 }
 0x1e3   : > { %v1568_v34 = vsel %vm1494_vm3, %v1489_v0, %v1434_v39 }
 0x1e4   : > { %1601 = vst.msk [vmem:[#allocation2 + $0xc0] sm:$0xff] %vm1576_vm4, %v1568_v34 }
 0x1e5   : > { %v1436_v48 = vpop.permute.xlu1 %1435 }
 0x1e6   : > { %v1571_v32 = vsel %vm1494_vm3, %v1491_v28, %v1436_v48 }
 0x1e7   : > { %1602 = vst.msk [vmem:[#allocation2 + $0xc8] sm:$0xff] %vm1576_vm4, %v1571_v32 }
 0x1eb   : > { %v2632_v27 = vld [vmem:[#allocation2 + $0xc0] sm:$0xff]  ;;  %v1438_v14 = vpop.permute.xlu1 %1437 }
 0x1ec   : > { %3655 = vmatmul.mubr.msk.bf16.gmra.mrb[40].mxu0 %vm1576_vm4, %v2632_v27  ;;  %v2148_v51 = vrot.slane %v2632_v27, 4 }
 0x1ed   : > { %v1300_v56 = vpop.permute.xlu0 %1299 }
 0x1ee   : > { %v1493_v61 = vsel %vm1439_vm2, %v4899_v19, %v1300_v56  ;;  %v2149_v37 = vsel %vm2102_vm5, %v2146_v35, %v2148_v51  ;;  %v2633_v4 = vld [vmem:[#allocation2 + $0xc8] sm:$0xff] }
 0x1ef   : > { %v1574_v58 = vsel %vm1494_vm3, %v1493_v61, %v1438_v14  ;;  %3604 = vmatprep.mubr.msk.bf16.mxu1 %vm1576_vm4, %v2149_v37  ;;  %v2069_v55 = vld [vmem:[#allocation2 + $0xc8] sm:$0xf]  ;;  %3658 = vmatprep.mubr.msk.bf16.mxu0 %vm1576_vm4, %v2633_v4 }
 0x1f0   : > { %1603 = vst.msk [vmem:[#allocation2 + $0xd0] sm:$0xff] %vm1576_vm4, %v1574_v58  ;;  %v2150_v57 = vrot.slane %v2069_v55, 4 }
 0x1f2   : > { %v2151_v62 = vsel %vm2102_vm5, %v2148_v51, %v2150_v57 }
 0x1f3   : > { %3605 = vmatmul.mubr.msk.bf16.gmra.mrb[44].mxu1 %vm1576_vm4, %v2151_v62 }
 0x1f7   : > { %v2634_v59 = vld [vmem:[#allocation2 + $0xd0] sm:$0xff] }
 0x1f8   : > { %3659 = vmatmul.mubr.msk.bf16.gmra.mrb[44].mxu0 %vm1576_vm4, %v2634_v59 }
 0x203   : > { %v3508_v19 = vpop.f32.mrb[0].mxu1 }
 0x204   : > { %v1758_v41 = vpop.f32.mrb[1].mxu1 }
 0x205   : > { %v3509_v24 = vpop.f32.mrb[2].mxu1 }
 0x206   : > { %v1761_v3 = vpop.f32.mrb[3].mxu1 }
 0x20b   : > { %v3512_v21 = vpop.f32.mrb[4].mxu1 }
 0x20c   : > { %v1774_v8 = vpop.f32.mrb[5].mxu1 }
 0x20d   : > { %v3513_v36 = vpop.f32.mrb[6].mxu1 }
 0x20e   : > { %v1777_v40 = vpop.f32.mrb[7].mxu1 }
 0x213   : > { %v3516_v47 = vpop.f32.mrb[8].mxu1 }
 0x214   : > { %v1790_v54 = vpop.f32.mrb[9].mxu1 }
 0x215   : > { %v3517_v30 = vpop.f32.mrb[10].mxu1 }
 0x216   : > { %v1793_v52 = vpop.f32.mrb[11].mxu1 }
 0x21b   : > { %v3520_v38 = vpop.f32.mrb[12].mxu1 }
 0x21c   : > { %v1806_v44 = vpop.f32.mrb[13].mxu1 }
 0x21d   : > { %v3521_v31 = vpop.f32.mrb[14].mxu1 }
 0x21e   : > { %v1809_v20 = vpop.f32.mrb[15].mxu1 }
 0x223   : > { %v5052_v23 = vpop.f32.mrb[16].mxu1 }
 0x224   : > { %v5054_v25 = vpop.f32.mrb[17].mxu1 }
 0x225   : > { %v5056_v33 = vpop.f32.mrb[18].mxu1 }
 0x226   : > { %v5058_v26 = vpop.f32.mrb[19].mxu1 }
 0x22b   : > { %v5060_v29 = vpop.f32.mrb[20].mxu1 }
 0x22c   : > { %v5063_v18 = vpop.f32.mrb[21].mxu1 }
 0x22d   : > { %v5065_v9 = vpop.f32.mrb[22].mxu1 }
 0x22e   : > { %v5067_v6 = vpop.f32.mrb[23].mxu1 }
 0x23e   : > { %v3616_v43 = vpop.f32.mrb[0].mxu0 }
 0x23f   : > { %v3670_v5 = vadd.f32 %v3616_v43, %v3508_v19  ;;  %v2766_v60 = vpop.f32.mrb[1].mxu0 }
 0x240   : > { %v3673_v2 = vadd.f32 %v2766_v60, %v1758_v41  ;;  %v3617_v50 = vpop.f32.mrb[2].mxu0 }
 0x241   : > { %3007 = vst [vmem:[%s5074_s11 + $0x10] sm:$0xff] %v3670_v5  ;;  %v3676_v53 = vadd.f32 %v3617_v50, %v3509_v24  ;;  %v2769_v42 = vpop.f32.mrb[3].mxu0 }
 0x242   : > { %3005 = vst [vmem:[%s5074_s11] sm:$0xff] %v3673_v2  ;;  %v3679_v45 = vadd.f32 %v2769_v42, %v1761_v3 }
 0x243   : > { %3008 = vst [vmem:[%s5074_s11 + $0x18] sm:$0xff] %v3676_v53 }
 0x244   : > { %3006 = vst [vmem:[%s5074_s11 + $0x8] sm:$0xff] %v3679_v45 }
 0x246   : > { %v3620_v17 = vpop.f32.mrb[4].mxu0 }
 0x247   : > { %v3682_v12 = vadd.f32 %v3620_v17, %v3512_v21  ;;  %v2782_v15 = vpop.f32.mrb[5].mxu0 }
 0x248   : > { %v3685_v13 = vadd.f32 %v2782_v15, %v1774_v8  ;;  %v3621_v63 = vpop.f32.mrb[6].mxu0 }
 0x249   : > { %3011 = vst [vmem:[%s5074_s11 + $0x30] sm:$0xff] %v3682_v12  ;;  %v3688_v10 = vadd.f32 %v3621_v63, %v3513_v36  ;;  %v2785_v16 = vpop.f32.mrb[7].mxu0 }
 0x24a   : > { %3009 = vst [vmem:[%s5074_s11 + $0x20] sm:$0xff] %v3685_v13  ;;  %v3691_v46 = vadd.f32 %v2785_v16, %v1777_v40 }
 0x24b   : > { %3012 = vst [vmem:[%s5074_s11 + $0x38] sm:$0xff] %v3688_v10 }
 0x24c   : > { %3010 = vst [vmem:[%s5074_s11 + $0x28] sm:$0xff] %v3691_v46 }
 0x24e   : > { %v3624_v11 = vpop.f32.mrb[8].mxu0 }
 0x24f   : > { %v3694_v22 = vadd.f32 %v3624_v11, %v3516_v47  ;;  %v2798_v35 = vpop.f32.mrb[9].mxu0 }
 0x250   : > { %v3697_v7 = vadd.f32 %v2798_v35, %v1790_v54  ;;  %v3625_v49 = vpop.f32.mrb[10].mxu0 }
 0x251   : > { %3015 = vst [vmem:[%s5074_s11 + $0x50] sm:$0xff] %v3694_v22  ;;  %v3700_v0 = vadd.f32 %v3625_v49, %v3517_v30  ;;  %v2801_v1 = vpop.f32.mrb[11].mxu0 }
 0x252   : > { %3013 = vst [vmem:[%s5074_s11 + $0x40] sm:$0xff] %v3697_v7  ;;  %v3703_v39 = vadd.f32 %v2801_v1, %v1793_v52 }
 0x253   : > { %3016 = vst [vmem:[%s5074_s11 + $0x58] sm:$0xff] %v3700_v0 }
 0x254   : > { %3014 = vst [vmem:[%s5074_s11 + $0x48] sm:$0xff] %v3703_v39 }
 0x256   : > { %v3628_v34 = vpop.f32.mrb[12].mxu0 }
 0x257   : > { %v3706_v28 = vadd.f32 %v3628_v34, %v3520_v38  ;;  %v2814_v48 = vpop.f32.mrb[13].mxu0 }
 0x258   : > { %v3709_v32 = vadd.f32 %v2814_v48, %v1806_v44  ;;  %v3629_v27 = vpop.f32.mrb[14].mxu0 }
 0x259   : > { %3019 = vst [vmem:[%s5074_s11 + $0x70] sm:$0xff] %v3706_v28  ;;  %v3712_v51 = vadd.f32 %v3629_v27, %v3521_v31  ;;  %v2817_v56 = vpop.f32.mrb[15].mxu0 }
 0x25a   : > { %3017 = vst [vmem:[%s5074_s11 + $0x60] sm:$0xff] %v3709_v32  ;;  %v3715_v14 = vadd.f32 %v2817_v56, %v1809_v20 }
 0x25b   : > { %3020 = vst [vmem:[%s5074_s11 + $0x78] sm:$0xff] %v3712_v51 }
 0x25c   : > { %3018 = vst [vmem:[%s5074_s11 + $0x68] sm:$0xff] %v3715_v14 }
 0x25e   : > { %v3632_v61 = vpop.f32.mrb[16].mxu0 }
 0x25f   : > { %v3718_v37 = vadd.f32 %v3632_v61, %v5052_v23  ;;  %v2830_v58 = vpop.f32.mrb[17].mxu0 }
 0x260   : > { %v3721_v4 = vadd.f32 %v2830_v58, %v5054_v25  ;;  %v3633_v55 = vpop.f32.mrb[18].mxu0 }
 0x261   : > { %3023 = vst [vmem:[%s5074_s11 + $0x90] sm:$0xff] %v3718_v37  ;;  %v3724_v57 = vadd.f32 %v3633_v55, %v5056_v33  ;;  %v2833_v62 = vpop.f32.mrb[19].mxu0 }
 0x262   : > { %3021 = vst [vmem:[%s5074_s11 + $0x80] sm:$0xff] %v3721_v4  ;;  %v3727_v59 = vadd.f32 %v2833_v62, %v5058_v26 }
 0x263   : > { %3024 = vst [vmem:[%s5074_s11 + $0x98] sm:$0xff] %v3724_v57 }
 0x264   : > { %3022 = vst [vmem:[%s5074_s11 + $0x88] sm:$0xff] %v3727_v59 }
 0x266   : > { %v3636_v19 = vpop.f32.mrb[20].mxu0 }
 0x267   : > { %v3730_v41 = vadd.f32 %v3636_v19, %v5060_v29  ;;  %v2846_v24 = vpop.f32.mrb[21].mxu0 }
 0x268   : > { %v3733_v3 = vadd.f32 %v2846_v24, %v5063_v18  ;;  %v3637_v21 = vpop.f32.mrb[22].mxu0 }
 0x269   : > { %3027 = vst [vmem:[%s5074_s11 + $0xb0] sm:$0xff] %v3730_v41  ;;  %v3736_v8 = vadd.f32 %v3637_v21, %v5065_v9  ;;  %v2849_v36 = vpop.f32.mrb[23].mxu0 }
 0x26a   : > { %3025 = vst [vmem:[%s5074_s11 + $0xa0] sm:$0xff] %v3733_v3  ;;  %v3739_v40 = vadd.f32 %v2849_v36, %v5067_v6 }
 0x26b   : > { %3028 = vst [vmem:[%s5074_s11 + $0xb8] sm:$0xff] %v3736_v8 }
 0x26c   : > { %3026 = vst [vmem:[%s5074_s11 + $0xa8] sm:$0xff] %v3739_v40 }
 0x26e   : > { %v3640_v47 = vpop.f32.mrb[24].mxu0 }
 0x26f   : > { %v3586_v54 = vpop.f32.mrb[24].mxu1  ;;  %v2862_v30 = vpop.f32.mrb[25].mxu0 }
 0x270   : > { %v3742_v52 = vadd.f32 %v3640_v47, %v3586_v54  ;;  %v2372_v38 = vpop.f32.mrb[25].mxu1  ;;  %v3641_v44 = vpop.f32.mrb[26].mxu0 }
 0x271   : > { %v3745_v31 = vadd.f32 %v2862_v30, %v2372_v38  ;;  %v3587_v20 = vpop.f32.mrb[26].mxu1  ;;  %v2865_v23 = vpop.f32.mrb[27].mxu0 }
 0x272   : > { %3031 = vst [vmem:[%s5074_s11 + $0xd0] sm:$0xff] %v3742_v52  ;;  %v3748_v25 = vadd.f32 %v3641_v44, %v3587_v20  ;;  %v2375_v33 = vpop.f32.mrb[27].mxu1 }
 0x273   : > { %3029 = vst [vmem:[%s5074_s11 + $0xc0] sm:$0xff] %v3745_v31  ;;  %v3751_v26 = vadd.f32 %v2865_v23, %v2375_v33 }
 0x274   : > { %3032 = vst [vmem:[%s5074_s11 + $0xd8] sm:$0xff] %v3748_v25 }
 0x275   : > { %3030 = vst [vmem:[%s5074_s11 + $0xc8] sm:$0xff] %v3751_v26 }
 0x276   : > { %v3644_v29 = vpop.f32.mrb[28].mxu0 }
 0x277   : > { %v3590_v18 = vpop.f32.mrb[28].mxu1  ;;  %v2878_v9 = vpop.f32.mrb[29].mxu0 }
 0x278   : > { %v3754_v6 = vadd.f32 %v3644_v29, %v3590_v18  ;;  %v2388_v43 = vpop.f32.mrb[29].mxu1  ;;  %v3645_v5 = vpop.f32.mrb[30].mxu0 }
 0x279   : > { %v3757_v60 = vadd.f32 %v2878_v9, %v2388_v43  ;;  %v3591_v2 = vpop.f32.mrb[30].mxu1  ;;  %v2881_v50 = vpop.f32.mrb[31].mxu0 }
 0x27a   : > { %3035 = vst [vmem:[%s5074_s11 + $0xf0] sm:$0xff] %v3754_v6  ;;  %v3760_v53 = vadd.f32 %v3645_v5, %v3591_v2  ;;  %v2391_v42 = vpop.f32.mrb[31].mxu1 }
 0x27b   : > { %3033 = vst [vmem:[%s5074_s11 + $0xe0] sm:$0xff] %v3757_v60  ;;  %v3763_v45 = vadd.f32 %v2881_v50, %v2391_v42 }
 0x27c   : > { %3036 = vst [vmem:[%s5074_s11 + $0xf8] sm:$0xff] %v3760_v53 }
 0x27d   : > { %3034 = vst [vmem:[%s5074_s11 + $0xe8] sm:$0xff] %v3763_v45 }
 0x27e   : > { %v3648_v17 = vpop.f32.mrb[32].mxu0 }
 0x27f   : > { %v3594_v12 = vpop.f32.mrb[32].mxu1  ;;  %v2894_v15 = vpop.f32.mrb[33].mxu0 }
 0x280   : > { %v3766_v13 = vadd.f32 %v3648_v17, %v3594_v12  ;;  %v2404_v63 = vpop.f32.mrb[33].mxu1  ;;  %v3649_v10 = vpop.f32.mrb[34].mxu0 }
 0x281   : > { %v3769_v16 = vadd.f32 %v2894_v15, %v2404_v63  ;;  %v3595_v46 = vpop.f32.mrb[34].mxu1  ;;  %v2897_v11 = vpop.f32.mrb[35].mxu0 }
 0x282   : > { %3039 = vst [vmem:[%s5074_s11 + $0x110] sm:$0xff] %v3766_v13  ;;  %v3772_v22 = vadd.f32 %v3649_v10, %v3595_v46  ;;  %v2407_v35 = vpop.f32.mrb[35].mxu1 }
 0x283   : > { %3037 = vst [vmem:[%s5074_s11 + $0x100] sm:$0xff] %v3769_v16  ;;  %v3775_v7 = vadd.f32 %v2897_v11, %v2407_v35 }
 0x284   : > { %3040 = vst [vmem:[%s5074_s11 + $0x118] sm:$0xff] %v3772_v22 }
 0x285   : > { %3038 = vst [vmem:[%s5074_s11 + $0x108] sm:$0xff] %v3775_v7 }
 0x286   : > { %v3652_v49 = vpop.f32.mrb[36].mxu0 }
 0x287   : > { %v3598_v0 = vpop.f32.mrb[36].mxu1  ;;  %v2910_v1 = vpop.f32.mrb[37].mxu0 }
 0x288   : > { %v3778_v39 = vadd.f32 %v3652_v49, %v3598_v0  ;;  %v2420_v34 = vpop.f32.mrb[37].mxu1  ;;  %v3653_v28 = vpop.f32.mrb[38].mxu0 }
 0x289   : > { %v3781_v48 = vadd.f32 %v2910_v1, %v2420_v34  ;;  %v3599_v32 = vpop.f32.mrb[38].mxu1  ;;  %v2913_v27 = vpop.f32.mrb[39].mxu0 }
 0x28a   : > { %3043 = vst [vmem:[%s5074_s11 + $0x130] sm:$0xff] %v3778_v39  ;;  %v3784_v51 = vadd.f32 %v3653_v28, %v3599_v32  ;;  %v2423_v56 = vpop.f32.mrb[39].mxu1 }
 0x28b   : > { %3041 = vst [vmem:[%s5074_s11 + $0x120] sm:$0xff] %v3781_v48  ;;  %v3787_v14 = vadd.f32 %v2913_v27, %v2423_v56 }
 0x28c   : > { %3044 = vst [vmem:[%s5074_s11 + $0x138] sm:$0xff] %v3784_v51 }
 0x28d   : > { %3042 = vst [vmem:[%s5074_s11 + $0x128] sm:$0xff] %v3787_v14 }
 0x28f   : > { %v3602_v61 = vpop.f32.mrb[40].mxu1 }
 0x290   : > { %v2436_v37 = vpop.f32.mrb[41].mxu1 }
 0x291   : > { %v3603_v58 = vpop.f32.mrb[42].mxu1 }
 0x292   : > { %v2439_v4 = vpop.f32.mrb[43].mxu1 }
 0x2bf   : > { %v3656_v55 = vpop.f32.mrb[40].mxu0 }
 0x2c0   : > { %v3790_v57 = vadd.f32 %v3656_v55, %v3602_v61  ;;  %v2926_v62 = vpop.f32.mrb[41].mxu0 }
 0x2c1   : > { %v3793_v59 = vadd.f32 %v2926_v62, %v2436_v37  ;;  %v3657_v19 = vpop.f32.mrb[42].mxu0 }
 0x2c2   : > { %3047 = vst [vmem:[%s5074_s11 + $0x150] sm:$0xff] %v3790_v57  ;;  %v3796_v41 = vadd.f32 %v3657_v19, %v3603_v58  ;;  %v2929_v24 = vpop.f32.mrb[43].mxu0 }
 0x2c3   : > { %3045 = vst [vmem:[%s5074_s11 + $0x140] sm:$0xff] %v3793_v59  ;;  %v3799_v3 = vadd.f32 %v2929_v24, %v2439_v4 }
 0x2c4   : > { %3048 = vst [vmem:[%s5074_s11 + $0x158] sm:$0xff] %v3796_v41 }
 0x2c5   : > { %3046 = vst [vmem:[%s5074_s11 + $0x148] sm:$0xff] %v3799_v3 }
 0x2c6   : > { %v3606_v21 = vpop.f32.mrb[44].mxu1 }
 0x2c7   : > { %v2452_v8 = vpop.f32.mrb[45].mxu1 }
 0x2c8   : > { %v3607_v36 = vpop.f32.mrb[46].mxu1 }
 0x2c9   : > { %v2455_v40 = vpop.f32.mrb[47].mxu1 }
 0x2cb   : > { %v3660_v47 = vpop.f32.mrb[44].mxu0 }
 0x2cc   : > { %v3802_v54 = vadd.f32 %v3660_v47, %v3606_v21  ;;  %v2942_v30 = vpop.f32.mrb[45].mxu0 }
 0x2cd   : > { %v3805_v52 = vadd.f32 %v2942_v30, %v2452_v8  ;;  %v3661_v38 = vpop.f32.mrb[46].mxu0 }
 0x2ce   : > { %3051 = vst [vmem:[%s5074_s11 + $0x170] sm:$0xff] %v3802_v54  ;;  %v3808_v44 = vadd.f32 %v3661_v38, %v3607_v36  ;;  %v2945_v31 = vpop.f32.mrb[47].mxu0 }
 0x2cf   : > { %3049 = vst [vmem:[%s5074_s11 + $0x160] sm:$0xff] %v3805_v52  ;;  %v3811_v20 = vadd.f32 %v2945_v31, %v2455_v40 }
 0x2d0   : > { %3052 = vst [vmem:[%s5074_s11 + $0x178] sm:$0xff] %v3808_v44 }
 0x2d1   : > { %3050 = vst [vmem:[%s5074_s11 + $0x168] sm:$0xff] %v3811_v20 }
 0x2d2 PF: > { %s15_s22 = sadd.s32 1, %s3958_s22   ;;  %s5153_s18 = smov %s3950_s20 }
 0x2d3   : > { %p12_p8 = scmp.ge.s32.totalorder %s15_s22, 10   ;;  %s5154_s19 = smov %s3954_s21 }
 0x2d4   : > { %s5155_s20 = smov %s5158_s23  ;;  %s5156_s21 = smov %s5162_s24 }
 0x2d5   :  { %14 = sbr.rel (!%p12_p8) target bundleno = 3 (0x3), region = 81 }

</bundles_post_ra>
